<compile_context>
chip_gen: v7x
topology: tpu7x:2x2x1
jax: 0.10.0
libtpu: 0.0.40
codegen_flags: <defaults>
</compile_context>

<pallas_src>
import functools

import jax
import jax.numpy as jnp
from jax.experimental import pallas as pl
from jax.experimental.pallas import tpu as pltpu


def _round_up(x, m):
    return (x + m - 1) // m * m


def _fused_cnn_kernel(x_ref, w1_ref, b1_ref, w2t_ref, b2_ref, o_ref,
                      xpad_scr, y1_scr, *, H, W, M):
    """Fused conv1 -> conv2 for one batch element.

    x_ref    : (1, H*W, Cin)     input, NHWC flattened over (H, W), f32
    w1_ref   : (9, Cin, C1)      conv1 weights, taps flattened (kh*3+kw), f32
    b1_ref   : (1, C1)           conv1 bias
    w2t_ref  : (9, C2, C1)       conv2 weights, taps flattened, per-tap transposed, bf16
    b2_ref   : (C2, 1)           conv2 bias
    o_ref    : (1, C2, H*W)      output, NCHW flattened over (H, W) (lane dense)
    xpad_scr : (2*M + H*W, Cin)  f32 scratch: conv1 input with zero margins
    y1_scr   : (2*M + H*W, C1)   f32 scratch: conv1 output with zero margins
    """
    HW = H * W
    Cin = x_ref.shape[2]
    C1 = w1_ref.shape[2]
    C2 = w2t_ref.shape[1]

    # Zero the vertical-halo margins (top / bottom M rows) of both scratches.
    # (Re-done per grid step: cheap, and stays correct if the batch axis is
    #  split across TensorCores.)
    xpad_scr[pl.ds(0, M), :] = jnp.zeros((M, Cin), jnp.float32)
    xpad_scr[pl.ds(M + HW, M), :] = jnp.zeros((M, Cin), jnp.float32)
    y1_scr[pl.ds(0, M), :] = jnp.zeros((M, C1), jnp.float32)
    y1_scr[pl.ds(M + HW, M), :] = jnp.zeros((M, C1), jnp.float32)

    # Stage the input into the padded scratch with one contiguous, 8-aligned store.
    xpad_scr[pl.ds(M, HW), :] = x_ref[0]

    # Column masks implementing the horizontal zero padding.
    col = jax.lax.broadcasted_iota(jnp.int32, (HW, 1), 0) % W
    not_left = col != 0            # kw == 0 taps must not wrap to previous row
    not_right = col != (W - 1)     # kw == 2 taps must not wrap to next row

    def tap_lhs(src_ref, kh, kw):
        # Flat shift of tap (kh, kw): (kh-1)*W + (kw-1).  The zeroed margins
        # absorb the vertical out-of-range reads; the column masks kill the
        # horizontal wraparound.
        off = M + (kh - 1) * W + (kw - 1)
        lhs = src_ref[pl.ds(off, HW), :]
        if kw == 0:
            lhs = jnp.where(not_left, lhs, 0.0)
        elif kw == 2:
            lhs = jnp.where(not_right, lhs, 0.0)
        return lhs

    # ---- conv1: 9 shifted (HW, Cin) @ (Cin, C1) matmuls, f32 accumulation ----
    acc1 = jnp.zeros((HW, C1), jnp.float32)
    for kh in range(3):
        for kw in range(3):
            k = kh * 3 + kw
            acc1 = acc1 + jnp.dot(tap_lhs(xpad_scr, kh, kw), w1_ref[k],
                                  preferred_element_type=jnp.float32)
    acc1 = acc1 + b1_ref[...]
    # Conv1 result stays in VMEM (margins around it are already zero).
    y1_scr[pl.ds(M, HW), :] = acc1

    # ---- conv2: 9 shifted bf16 NT matmuls, f32 accumulation, transposed out ----
    # acc2t[c2, p] += sum_c1 w2[kh, kw, c1, c2] * y1_shifted[p, c1]
    acc2t = jnp.zeros((C2, HW), jnp.float32)
    nt_dims = (((1,), (1,)), ((), ()))   # contract C1 of (C2,C1) with C1 of (HW,C1)
    for kh in range(3):
        for kw in range(3):
            k = kh * 3 + kw
            lhs = tap_lhs(y1_scr, kh, kw).astype(jnp.bfloat16)
            acc2t = acc2t + jax.lax.dot_general(
                w2t_ref[k], lhs, dimension_numbers=nt_dims,
                preferred_element_type=jnp.float32)
    acc2t = acc2t + b2_ref[...]

    # Channel-major store: last dim H*W is a multiple of 128 -> dense stores.
    o_ref[0] = acc2t.astype(o_ref.dtype)


def cnn_forward(x_nchw, params):
    """Matches CNN.forward: conv1 then conv2, no nonlinearity. Input/output NCHW."""
    w1, b1, w2, b2 = params          # HWIO weights, 1-D biases
    N, Cin, H, W = x_nchw.shape
    C1 = w1.shape[-1]
    C2 = w2.shape[-1]
    HW = H * W
    M = _round_up(W + 1, 8)          # zero-margin rows above/below the image
    CinP = max(_round_up(Cin, 8), 8)  # pad tiny input-channel dim to 8

    # NCHW -> flattened NHWC for the (tiny, 3-channel) input; the expensive
    # output-side layout change is produced directly by the kernel.
    x_flat = jnp.transpose(x_nchw, (0, 2, 3, 1)).reshape(N, HW, Cin)
    x_flat = jnp.pad(x_flat.astype(jnp.float32),
                     ((0, 0), (0, 0), (0, CinP - Cin)))
    w1_f = jnp.pad(w1.astype(jnp.float32),
                   ((0, 0), (0, 0), (0, CinP - Cin), (0, 0))).reshape(9, CinP, C1)
    b1_row = b1.reshape(1, C1).astype(jnp.float32)
    w2t_bf = jnp.transpose(w2, (0, 1, 3, 2)).reshape(9, C2, C1).astype(jnp.bfloat16)
    b2_col = b2.reshape(C2, 1).astype(jnp.float32)

    kernel = functools.partial(_fused_cnn_kernel, H=H, W=W, M=M)

    out = pl.pallas_call(
        kernel,
        out_shape=jax.ShapeDtypeStruct((N, C2, HW), x_nchw.dtype),
        grid_spec=pltpu.PrefetchScalarGridSpec(
            num_scalar_prefetch=0,
            grid=(N,),
            in_specs=[
                pl.BlockSpec((1, HW, CinP), lambda n: (n, 0, 0)),
                pl.BlockSpec((9, CinP, C1), lambda n: (0, 0, 0)),
                pl.BlockSpec((1, C1), lambda n: (0, 0)),
                pl.BlockSpec((9, C2, C1), lambda n: (0, 0, 0)),
                pl.BlockSpec((C2, 1), lambda n: (0, 0)),
            ],
            out_specs=pl.BlockSpec((1, C2, HW), lambda n: (n, 0, 0)),
            scratch_shapes=[
                pltpu.VMEM((2 * M + HW, CinP), jnp.float32),
                pltpu.VMEM((2 * M + HW, C1), jnp.float32),
            ],
        ),
        compiler_params=pltpu.CompilerParams(
            dimension_semantics=("parallel",)),
    )(x_flat, w1_f, b1_row, w2t_bf, b2_col)

    # Free reshape: kernel output is already channel-major (NCHW).
    return out.reshape(N, C2, H, W)


def init_params(key):
    """Deterministic init mimicking PyTorch Conv2d defaults (uniform, fan_in based)."""
    k1, k2, k3, k4 = jax.random.split(key, 4)

    def conv_init(kw, kb, cin, cout, ksize=3):
        fan_in = cin * ksize * ksize
        bound = 1.0 / jnp.sqrt(fan_in)
        w = jax.random.uniform(kw, (ksize, ksize, cin, cout),
                               jnp.float32, -bound, bound)
        b = jax.random.uniform(kb, (cout,), jnp.float32, -bound, bound)
        return w, b

    w1, b1 = conv_init(k1, k2, 3, 64)
    w2, b2 = conv_init(k3, k4, 64, 64)
    return w1, b1, w2, b2


def _reference(x_nchw, params):
    """Pure-JAX reference using lax.conv_general_dilated (NCHW/OIHW like PyTorch)."""
    w1, b1, w2, b2 = params
    w1_oihw = jnp.transpose(w1, (3, 2, 0, 1))
    w2_oihw = jnp.transpose(w2, (3, 2, 0, 1))

    def conv(x, w, b):
        y = jax.lax.conv_general_dilated(
            x, w, window_strides=(1, 1), padding=((1, 1), (1, 1)),
            dimension_numbers=("NCHW", "OIHW", "NCHW"))
        return y + b[None, :, None, None]

    return conv(conv(x_nchw, w1_oihw, b1), w2_oihw, b2)


if __name__ == "__main__":
    key = jax.random.PRNGKey(0)
    kx, kp = jax.random.split(key)

    # Small deterministic input consistent with the module (in_channels=3).
    x = jax.random.normal(kx, (2, 3, 16, 16), jnp.float32)   # NCHW
    params = init_params(kp)

    out = jax.block_until_ready(cnn_forward(x, params))
    ref = jax.block_until_ready(_reference(x, params))

    assert out.shape == (2, 64, 16, 16), out.shape
    max_err = float(jnp.max(jnp.abs(out - ref)))
    assert jnp.allclose(out, ref, rtol=3e-2, atol=3e-2), max_err

    print("KERNEL_OK")
</pallas_src>

<mosaic_0001>
module attributes {stable_mosaic.version = 11 : i64} {
  func.func @_fused_cnn_kernel(%arg0: i32, %arg1: memref<1x256x8xf32, #tpu.memory_space<vmem>>, %arg2: memref<9x8x64xf32, #tpu.memory_space<vmem>>, %arg3: memref<1x64xf32, #tpu.memory_space<vmem>>, %arg4: memref<9x64x64xbf16, #tpu.memory_space<vmem>>, %arg5: memref<64x1xf32, #tpu.memory_space<vmem>>, %arg6: memref<1x64x256xf32, #tpu.memory_space<vmem>>, %arg7: memref<304x8xf32, #tpu.memory_space<vmem>>, %arg8: memref<304x64xf32, #tpu.memory_space<vmem>>) attributes {dimension_semantics = [#tpu.dimension_semantics<parallel>], iteration_bounds = array<i64: 2>, scalar_prefetch = 0 : i64, scratch_operands = 2 : i64, tpu.core_type = #tpu.core_type<tc>, window_params = [{transform_indices = @transform_0, window_bounds = array<i64: 1, 256, 8>}, {pipeline_mode = #tpu.pipeline_mode<synchronous>, transform_indices = @transform_1, window_bounds = array<i64: 9, 8, 64>}, {pipeline_mode = #tpu.pipeline_mode<synchronous>, transform_indices = @transform_2, window_bounds = array<i64: 1, 64>}, {pipeline_mode = #tpu.pipeline_mode<synchronous>, transform_indices = @transform_3, window_bounds = array<i64: 9, 64, 64>}, {pipeline_mode = #tpu.pipeline_mode<synchronous>, transform_indices = @transform_4, window_bounds = array<i64: 64, 1>}, {transform_indices = @transform_5, window_bounds = array<i64: 1, 64, 256>}]} {
    %cst = arith.constant 0.000000e+00 : f32
    %0 = vector.broadcast %cst : f32 to vector<24x8xf32>
    %c0 = arith.constant 0 : index
    %c0_0 = arith.constant 0 : index
    %1 = vector.load %arg7[%c0, %c0_0] : memref<304x8xf32, #tpu.memory_space<vmem>>, vector<24x8xf32>
    tpu.vector_store %arg7[%c0, %c0_0], %0 {strides = array<i32>} : memref<304x8xf32, #tpu.memory_space<vmem>>, vector<24x8xf32>,
    %cst_1 = arith.constant 0.000000e+00 : f32
    %2 = vector.broadcast %cst_1 : f32 to vector<24x8xf32>
    %c280 = arith.constant 280 : index
    %c0_2 = arith.constant 0 : index
    %3 = vector.load %arg7[%c280, %c0_2] : memref<304x8xf32, #tpu.memory_space<vmem>>, vector<24x8xf32>
    tpu.vector_store %arg7[%c280, %c0_2], %2 {strides = array<i32>} : memref<304x8xf32, #tpu.memory_space<vmem>>, vector<24x8xf32>,
    %cst_3 = arith.constant 0.000000e+00 : f32
    %4 = vector.broadcast %cst_3 : f32 to vector<24x64xf32>
    %c0_4 = arith.constant 0 : index
    %c0_5 = arith.constant 0 : index
    %5 = vector.load %arg8[%c0_4, %c0_5] : memref<304x64xf32, #tpu.memory_space<vmem>>, vector<24x64xf32>
    tpu.vector_store %arg8[%c0_4, %c0_5], %4 {strides = array<i32>} : memref<304x64xf32, #tpu.memory_space<vmem>>, vector<24x64xf32>,
    %cst_6 = arith.constant 0.000000e+00 : f32
    %6 = vector.broadcast %cst_6 : f32 to vector<24x64xf32>
    %c280_7 = arith.constant 280 : index
    %c0_8 = arith.constant 0 : index
    %7 = vector.load %arg8[%c280_7, %c0_8] : memref<304x64xf32, #tpu.memory_space<vmem>>, vector<24x64xf32>
    tpu.vector_store %arg8[%c280_7, %c0_8], %6 {strides = array<i32>} : memref<304x64xf32, #tpu.memory_space<vmem>>, vector<24x64xf32>,
    %c0_9 = arith.constant 0 : index
    %c0_10 = arith.constant 0 : index
    %c0_11 = arith.constant 0 : index
    %8 = vector.load %arg1[%c0_9, %c0_10, %c0_11] : memref<1x256x8xf32, #tpu.memory_space<vmem>>, vector<1x256x8xf32>
    %9 = vector.shape_cast %8 : vector<1x256x8xf32> to vector<256x8xf32>
    %c24 = arith.constant 24 : index
    %c0_12 = arith.constant 0 : index
    %10 = vector.load %arg7[%c24, %c0_12] : memref<304x8xf32, #tpu.memory_space<vmem>>, vector<256x8xf32>
    tpu.vector_store %arg7[%c24, %c0_12], %9 {strides = array<i32>} : memref<304x8xf32, #tpu.memory_space<vmem>>, vector<256x8xf32>,
    %11 = tpu.iota {dimensions = array<i32: 0>} : vector<256x1xi32>
    %c16_i32 = arith.constant 16 : i32
    %c0_i32 = arith.constant 0 : i32
    %12 = arith.cmpi eq, %c16_i32, %c0_i32 : i32
    %c1_i32 = arith.constant 1 : i32
    %13 = arith.select %12, %c1_i32, %c16_i32 : i32
    %14 = vector.broadcast %13 : i32 to vector<256x1xi32>
    %15 = arith.remsi %11, %14 : vector<256x1xi32>
    %c0_i32_13 = arith.constant 0 : i32
    %16 = vector.broadcast %c0_i32_13 : i32 to vector<256x1xi32>
    %17 = arith.cmpi ne, %15, %16 : vector<256x1xi32>
    %c0_i32_14 = arith.constant 0 : i32
    %18 = vector.broadcast %c0_i32_14 : i32 to vector<256x1xi32>
    %19 = arith.cmpi slt, %15, %18 : vector<256x1xi32>
    %c0_i32_15 = arith.constant 0 : i32
    %20 = arith.cmpi slt, %13, %c0_i32_15 : i32
    %21 = vector.broadcast %20 : i1 to vector<256x1xi1>
    %22 = vector.broadcast %21 : vector<256x1xi1> to vector<256x1xi1>
    %23 = arith.xori %19, %22 : vector<256x1xi1>
    %24 = arith.andi %23, %17 : vector<256x1xi1>
    %25 = vector.broadcast %13 : i32 to vector<256x1xi32>
    %26 = arith.addi %15, %25 : vector<256x1xi32>
    %27 = arith.select %24, %26, %15 : vector<256x1xi1>, vector<256x1xi32>
    %c0_i32_16 = arith.constant 0 : i32
    %28 = vector.broadcast %c0_i32_16 : i32 to vector<256x1xi32>
    %29 = arith.cmpi ne, %27, %28 : vector<256x1xi32>
    %c15_i32 = arith.constant 15 : i32
    %30 = vector.broadcast %c15_i32 : i32 to vector<256x1xi32>
    %31 = arith.cmpi ne, %27, %30 : vector<256x1xi32>
    %cst_17 = arith.constant 0.000000e+00 : f32
    %32 = vector.broadcast %cst_17 : f32 to vector<256x64xf32>
    %c7 = arith.constant 7 : index
    %c0_18 = arith.constant 0 : index
    %33 = vector.load %arg7[%c7, %c0_18] : memref<304x8xf32, #tpu.memory_space<vmem>>, vector<256x8xf32>
    %cst_19 = arith.constant 0.000000e+00 : f32
    %34 = vector.shape_cast %29 : vector<256x1xi1> to vector<256x1xi1>
    %35 = vector.broadcast %34 : vector<256x1xi1> to vector<256x8xi1>
    %36 = vector.broadcast %cst_19 : f32 to vector<256x8xf32>
    %37 = arith.select %35, %33, %36 : vector<256x8xi1>, vector<256x8xf32>
    %c0_20 = arith.constant 0 : index
    %c0_21 = arith.constant 0 : index
    %c0_22 = arith.constant 0 : index
    %38 = vector.load %arg2[%c0_20, %c0_21, %c0_22] : memref<9x8x64xf32, #tpu.memory_space<vmem>>, vector<1x8x64xf32>
    %39 = vector.shape_cast %38 : vector<1x8x64xf32> to vector<8x64xf32>
    %cst_23 = arith.constant dense<0.000000e+00> : vector<256x64xf32>
    %40 = tpu.matmul %37, %39, %cst_23 {dimension_numbers = #tpu.dot_dimension_numbers<[1], [0], [0], [1], [0, 0, 1, 1], [], []>} : vector<256x8xf32>, vector<8x64xf32>, vector<256x64xf32> -> vector<256x64xf32>
    %41 = arith.addf %32, %40 : vector<256x64xf32>
    %c8 = arith.constant 8 : index
    %c0_24 = arith.constant 0 : index
    %42 = vector.load %arg7[%c8, %c0_24] : memref<304x8xf32, #tpu.memory_space<vmem>>, vector<256x8xf32>
    %c1 = arith.constant 1 : index
    %c0_25 = arith.constant 0 : index
    %c0_26 = arith.constant 0 : index
    %43 = vector.load %arg2[%c1, %c0_25, %c0_26] : memref<9x8x64xf32, #tpu.memory_space<vmem>>, vector<1x8x64xf32>
    %44 = vector.shape_cast %43 : vector<1x8x64xf32> to vector<8x64xf32>
    %cst_27 = arith.constant dense<0.000000e+00> : vector<256x64xf32>
    %45 = tpu.matmul %42, %44, %cst_27 {dimension_numbers = #tpu.dot_dimension_numbers<[1], [0], [0], [1], [0, 0, 1, 1], [], []>} : vector<256x8xf32>, vector<8x64xf32>, vector<256x64xf32> -> vector<256x64xf32>
    %46 = arith.addf %41, %45 : vector<256x64xf32>
    %c9 = arith.constant 9 : index
    %c0_28 = arith.constant 0 : index
    %47 = vector.load %arg7[%c9, %c0_28] : memref<304x8xf32, #tpu.memory_space<vmem>>, vector<256x8xf32>
    %cst_29 = arith.constant 0.000000e+00 : f32
    %48 = vector.shape_cast %31 : vector<256x1xi1> to vector<256x1xi1>
    %49 = vector.broadcast %48 : vector<256x1xi1> to vector<256x8xi1>
    %50 = vector.broadcast %cst_29 : f32 to vector<256x8xf32>
    %51 = arith.select %49, %47, %50 : vector<256x8xi1>, vector<256x8xf32>
    %c2 = arith.constant 2 : index
    %c0_30 = arith.constant 0 : index
    %c0_31 = arith.constant 0 : index
    %52 = vector.load %arg2[%c2, %c0_30, %c0_31] : memref<9x8x64xf32, #tpu.memory_space<vmem>>, vector<1x8x64xf32>
    %53 = vector.shape_cast %52 : vector<1x8x64xf32> to vector<8x64xf32>
    %cst_32 = arith.constant dense<0.000000e+00> : vector<256x64xf32>
    %54 = tpu.matmul %51, %53, %cst_32 {dimension_numbers = #tpu.dot_dimension_numbers<[1], [0], [0], [1], [0, 0, 1, 1], [], []>} : vector<256x8xf32>, vector<8x64xf32>, vector<256x64xf32> -> vector<256x64xf32>
    %55 = arith.addf %46, %54 : vector<256x64xf32>
    %c23 = arith.constant 23 : index
    %c0_33 = arith.constant 0 : index
    %56 = vector.load %arg7[%c23, %c0_33] : memref<304x8xf32, #tpu.memory_space<vmem>>, vector<256x8xf32>
    %cst_34 = arith.constant 0.000000e+00 : f32
    %57 = vector.shape_cast %29 : vector<256x1xi1> to vector<256x1xi1>
    %58 = vector.broadcast %57 : vector<256x1xi1> to vector<256x8xi1>
    %59 = vector.broadcast %cst_34 : f32 to vector<256x8xf32>
    %60 = arith.select %58, %56, %59 : vector<256x8xi1>, vector<256x8xf32>
    %c3 = arith.constant 3 : index
    %c0_35 = arith.constant 0 : index
    %c0_36 = arith.constant 0 : index
    %61 = vector.load %arg2[%c3, %c0_35, %c0_36] : memref<9x8x64xf32, #tpu.memory_space<vmem>>, vector<1x8x64xf32>
    %62 = vector.shape_cast %61 : vector<1x8x64xf32> to vector<8x64xf32>
    %cst_37 = arith.constant dense<0.000000e+00> : vector<256x64xf32>
    %63 = tpu.matmul %60, %62, %cst_37 {dimension_numbers = #tpu.dot_dimension_numbers<[1], [0], [0], [1], [0, 0, 1, 1], [], []>} : vector<256x8xf32>, vector<8x64xf32>, vector<256x64xf32> -> vector<256x64xf32>
    %64 = arith.addf %55, %63 : vector<256x64xf32>
    %c24_38 = arith.constant 24 : index
    %c0_39 = arith.constant 0 : index
    %65 = vector.load %arg7[%c24_38, %c0_39] : memref<304x8xf32, #tpu.memory_space<vmem>>, vector<256x8xf32>
    %c4 = arith.constant 4 : index
    %c0_40 = arith.constant 0 : index
    %c0_41 = arith.constant 0 : index
    %66 = vector.load %arg2[%c4, %c0_40, %c0_41] : memref<9x8x64xf32, #tpu.memory_space<vmem>>, vector<1x8x64xf32>
    %67 = vector.shape_cast %66 : vector<1x8x64xf32> to vector<8x64xf32>
    %cst_42 = arith.constant dense<0.000000e+00> : vector<256x64xf32>
    %68 = tpu.matmul %65, %67, %cst_42 {dimension_numbers = #tpu.dot_dimension_numbers<[1], [0], [0], [1], [0, 0, 1, 1], [], []>} : vector<256x8xf32>, vector<8x64xf32>, vector<256x64xf32> -> vector<256x64xf32>
    %69 = arith.addf %64, %68 : vector<256x64xf32>
    %c25 = arith.constant 25 : index
    %c0_43 = arith.constant 0 : index
    %70 = vector.load %arg7[%c25, %c0_43] : memref<304x8xf32, #tpu.memory_space<vmem>>, vector<256x8xf32>
    %cst_44 = arith.constant 0.000000e+00 : f32
    %71 = vector.shape_cast %31 : vector<256x1xi1> to vector<256x1xi1>
    %72 = vector.broadcast %71 : vector<256x1xi1> to vector<256x8xi1>
    %73 = vector.broadcast %cst_44 : f32 to vector<256x8xf32>
    %74 = arith.select %72, %70, %73 : vector<256x8xi1>, vector<256x8xf32>
    %c5 = arith.constant 5 : index
    %c0_45 = arith.constant 0 : index
    %c0_46 = arith.constant 0 : index
    %75 = vector.load %arg2[%c5, %c0_45, %c0_46] : memref<9x8x64xf32, #tpu.memory_space<vmem>>, vector<1x8x64xf32>
    %76 = vector.shape_cast %75 : vector<1x8x64xf32> to vector<8x64xf32>
    %cst_47 = arith.constant dense<0.000000e+00> : vector<256x64xf32>
    %77 = tpu.matmul %74, %76, %cst_47 {dimension_numbers = #tpu.dot_dimension_numbers<[1], [0], [0], [1], [0, 0, 1, 1], [], []>} : vector<256x8xf32>, vector<8x64xf32>, vector<256x64xf32> -> vector<256x64xf32>
    %78 = arith.addf %69, %77 : vector<256x64xf32>
    %c39 = arith.constant 39 : index
    %c0_48 = arith.constant 0 : index
    %79 = vector.load %arg7[%c39, %c0_48] : memref<304x8xf32, #tpu.memory_space<vmem>>, vector<256x8xf32>
    %cst_49 = arith.constant 0.000000e+00 : f32
    %80 = vector.shape_cast %29 : vector<256x1xi1> to vector<256x1xi1>
    %81 = vector.broadcast %80 : vector<256x1xi1> to vector<256x8xi1>
    %82 = vector.broadcast %cst_49 : f32 to vector<256x8xf32>
    %83 = arith.select %81, %79, %82 : vector<256x8xi1>, vector<256x8xf32>
    %c6 = arith.constant 6 : index
    %c0_50 = arith.constant 0 : index
    %c0_51 = arith.constant 0 : index
    %84 = vector.load %arg2[%c6, %c0_50, %c0_51] : memref<9x8x64xf32, #tpu.memory_space<vmem>>, vector<1x8x64xf32>
    %85 = vector.shape_cast %84 : vector<1x8x64xf32> to vector<8x64xf32>
    %cst_52 = arith.constant dense<0.000000e+00> : vector<256x64xf32>
    %86 = tpu.matmul %83, %85, %cst_52 {dimension_numbers = #tpu.dot_dimension_numbers<[1], [0], [0], [1], [0, 0, 1, 1], [], []>} : vector<256x8xf32>, vector<8x64xf32>, vector<256x64xf32> -> vector<256x64xf32>
    %87 = arith.addf %78, %86 : vector<256x64xf32>
    %c40 = arith.constant 40 : index
    %c0_53 = arith.constant 0 : index
    %88 = vector.load %arg7[%c40, %c0_53] : memref<304x8xf32, #tpu.memory_space<vmem>>, vector<256x8xf32>
    %c7_54 = arith.constant 7 : index
    %c0_55 = arith.constant 0 : index
    %c0_56 = arith.constant 0 : index
    %89 = vector.load %arg2[%c7_54, %c0_55, %c0_56] : memref<9x8x64xf32, #tpu.memory_space<vmem>>, vector<1x8x64xf32>
    %90 = vector.shape_cast %89 : vector<1x8x64xf32> to vector<8x64xf32>
    %cst_57 = arith.constant dense<0.000000e+00> : vector<256x64xf32>
    %91 = tpu.matmul %88, %90, %cst_57 {dimension_numbers = #tpu.dot_dimension_numbers<[1], [0], [0], [1], [0, 0, 1, 1], [], []>} : vector<256x8xf32>, vector<8x64xf32>, vector<256x64xf32> -> vector<256x64xf32>
    %92 = arith.addf %87, %91 : vector<256x64xf32>
    %c41 = arith.constant 41 : index
    %c0_58 = arith.constant 0 : index
    %93 = vector.load %arg7[%c41, %c0_58] : memref<304x8xf32, #tpu.memory_space<vmem>>, vector<256x8xf32>
    %cst_59 = arith.constant 0.000000e+00 : f32
    %94 = vector.shape_cast %31 : vector<256x1xi1> to vector<256x1xi1>
    %95 = vector.broadcast %94 : vector<256x1xi1> to vector<256x8xi1>
    %96 = vector.broadcast %cst_59 : f32 to vector<256x8xf32>
    %97 = arith.select %95, %93, %96 : vector<256x8xi1>, vector<256x8xf32>
    %c8_60 = arith.constant 8 : index
    %c0_61 = arith.constant 0 : index
    %c0_62 = arith.constant 0 : index
    %98 = vector.load %arg2[%c8_60, %c0_61, %c0_62] : memref<9x8x64xf32, #tpu.memory_space<vmem>>, vector<1x8x64xf32>
    %99 = vector.shape_cast %98 : vector<1x8x64xf32> to vector<8x64xf32>
    %cst_63 = arith.constant dense<0.000000e+00> : vector<256x64xf32>
    %100 = tpu.matmul %97, %99, %cst_63 {dimension_numbers = #tpu.dot_dimension_numbers<[1], [0], [0], [1], [0, 0, 1, 1], [], []>} : vector<256x8xf32>, vector<8x64xf32>, vector<256x64xf32> -> vector<256x64xf32>
    %101 = arith.addf %92, %100 : vector<256x64xf32>
    %c0_64 = arith.constant 0 : index
    %c0_65 = arith.constant 0 : index
    %102 = vector.load %arg3[%c0_64, %c0_65] : memref<1x64xf32, #tpu.memory_space<vmem>>, vector<1x64xf32>
    %103 = vector.broadcast %102 : vector<1x64xf32> to vector<256x64xf32>
    %104 = arith.addf %101, %103 : vector<256x64xf32>
    %c24_66 = arith.constant 24 : index
    %c0_67 = arith.constant 0 : index
    %105 = vector.load %arg8[%c24_66, %c0_67] : memref<304x64xf32, #tpu.memory_space<vmem>>, vector<256x64xf32>
    tpu.vector_store %arg8[%c24_66, %c0_67], %104 {strides = array<i32>} : memref<304x64xf32, #tpu.memory_space<vmem>>, vector<256x64xf32>,
    %cst_68 = arith.constant 0.000000e+00 : f32
    %106 = vector.broadcast %cst_68 : f32 to vector<64x256xf32>
    %c7_69 = arith.constant 7 : index
    %c0_70 = arith.constant 0 : index
    %107 = vector.load %arg8[%c7_69, %c0_70] : memref<304x64xf32, #tpu.memory_space<vmem>>, vector<256x64xf32>
    %cst_71 = arith.constant 0.000000e+00 : f32
    %108 = vector.shape_cast %29 : vector<256x1xi1> to vector<256x1xi1>
    %109 = vector.broadcast %108 : vector<256x1xi1> to vector<256x64xi1>
    %110 = vector.broadcast %cst_71 : f32 to vector<256x64xf32>
    %111 = arith.select %109, %107, %110 : vector<256x64xi1>, vector<256x64xf32>
    %112 = arith.truncf %111 : vector<256x64xf32> to vector<256x64xbf16>
    %c0_72 = arith.constant 0 : index
    %c0_73 = arith.constant 0 : index
    %c0_74 = arith.constant 0 : index
    %113 = vector.load %arg4[%c0_72, %c0_73, %c0_74] : memref<9x64x64xbf16, #tpu.memory_space<vmem>>, vector<1x64x64xbf16>
    %114 = vector.shape_cast %113 : vector<1x64x64xbf16> to vector<64x64xbf16>
    %cst_75 = arith.constant dense<0.000000e+00> : vector<64x256xf32>
    %115 = tpu.matmul %114, %112, %cst_75 {dimension_numbers = #tpu.dot_dimension_numbers<[1], [1], [0], [0], [0, 0, 1, 0], [], []>} : vector<64x64xbf16>, vector<256x64xbf16>, vector<64x256xf32> -> vector<64x256xf32>
    %116 = arith.addf %106, %115 : vector<64x256xf32>
    %c8_76 = arith.constant 8 : index
    %c0_77 = arith.constant 0 : index
    %117 = vector.load %arg8[%c8_76, %c0_77] : memref<304x64xf32, #tpu.memory_space<vmem>>, vector<256x64xf32>
    %118 = arith.truncf %117 : vector<256x64xf32> to vector<256x64xbf16>
    %c1_78 = arith.constant 1 : index
    %c0_79 = arith.constant 0 : index
    %c0_80 = arith.constant 0 : index
    %119 = vector.load %arg4[%c1_78, %c0_79, %c0_80] : memref<9x64x64xbf16, #tpu.memory_space<vmem>>, vector<1x64x64xbf16>
    %120 = vector.shape_cast %119 : vector<1x64x64xbf16> to vector<64x64xbf16>
    %cst_81 = arith.constant dense<0.000000e+00> : vector<64x256xf32>
    %121 = tpu.matmul %120, %118, %cst_81 {dimension_numbers = #tpu.dot_dimension_numbers<[1], [1], [0], [0], [0, 0, 1, 0], [], []>} : vector<64x64xbf16>, vector<256x64xbf16>, vector<64x256xf32> -> vector<64x256xf32>
    %122 = arith.addf %116, %121 : vector<64x256xf32>
    %c9_82 = arith.constant 9 : index
    %c0_83 = arith.constant 0 : index
    %123 = vector.load %arg8[%c9_82, %c0_83] : memref<304x64xf32, #tpu.memory_space<vmem>>, vector<256x64xf32>
    %cst_84 = arith.constant 0.000000e+00 : f32
    %124 = vector.shape_cast %31 : vector<256x1xi1> to vector<256x1xi1>
    %125 = vector.broadcast %124 : vector<256x1xi1> to vector<256x64xi1>
    %126 = vector.broadcast %cst_84 : f32 to vector<256x64xf32>
    %127 = arith.select %125, %123, %126 : vector<256x64xi1>, vector<256x64xf32>
    %128 = arith.truncf %127 : vector<256x64xf32> to vector<256x64xbf16>
    %c2_85 = arith.constant 2 : index
    %c0_86 = arith.constant 0 : index
    %c0_87 = arith.constant 0 : index
    %129 = vector.load %arg4[%c2_85, %c0_86, %c0_87] : memref<9x64x64xbf16, #tpu.memory_space<vmem>>, vector<1x64x64xbf16>
    %130 = vector.shape_cast %129 : vector<1x64x64xbf16> to vector<64x64xbf16>
    %cst_88 = arith.constant dense<0.000000e+00> : vector<64x256xf32>
    %131 = tpu.matmul %130, %128, %cst_88 {dimension_numbers = #tpu.dot_dimension_numbers<[1], [1], [0], [0], [0, 0, 1, 0], [], []>} : vector<64x64xbf16>, vector<256x64xbf16>, vector<64x256xf32> -> vector<64x256xf32>
    %132 = arith.addf %122, %131 : vector<64x256xf32>
    %c23_89 = arith.constant 23 : index
    %c0_90 = arith.constant 0 : index
    %133 = vector.load %arg8[%c23_89, %c0_90] : memref<304x64xf32, #tpu.memory_space<vmem>>, vector<256x64xf32>
    %cst_91 = arith.constant 0.000000e+00 : f32
    %134 = vector.shape_cast %29 : vector<256x1xi1> to vector<256x1xi1>
    %135 = vector.broadcast %134 : vector<256x1xi1> to vector<256x64xi1>
    %136 = vector.broadcast %cst_91 : f32 to vector<256x64xf32>
    %137 = arith.select %135, %133, %136 : vector<256x64xi1>, vector<256x64xf32>
    %138 = arith.truncf %137 : vector<256x64xf32> to vector<256x64xbf16>
    %c3_92 = arith.constant 3 : index
    %c0_93 = arith.constant 0 : index
    %c0_94 = arith.constant 0 : index
    %139 = vector.load %arg4[%c3_92, %c0_93, %c0_94] : memref<9x64x64xbf16, #tpu.memory_space<vmem>>, vector<1x64x64xbf16>
    %140 = vector.shape_cast %139 : vector<1x64x64xbf16> to vector<64x64xbf16>
    %cst_95 = arith.constant dense<0.000000e+00> : vector<64x256xf32>
    %141 = tpu.matmul %140, %138, %cst_95 {dimension_numbers = #tpu.dot_dimension_numbers<[1], [1], [0], [0], [0, 0, 1, 0], [], []>} : vector<64x64xbf16>, vector<256x64xbf16>, vector<64x256xf32> -> vector<64x256xf32>
    %142 = arith.addf %132, %141 : vector<64x256xf32>
    %c24_96 = arith.constant 24 : index
    %c0_97 = arith.constant 0 : index
    %143 = vector.load %arg8[%c24_96, %c0_97] : memref<304x64xf32, #tpu.memory_space<vmem>>, vector<256x64xf32>
    %144 = arith.truncf %143 : vector<256x64xf32> to vector<256x64xbf16>
    %c4_98 = arith.constant 4 : index
    %c0_99 = arith.constant 0 : index
    %c0_100 = arith.constant 0 : index
    %145 = vector.load %arg4[%c4_98, %c0_99, %c0_100] : memref<9x64x64xbf16, #tpu.memory_space<vmem>>, vector<1x64x64xbf16>
    %146 = vector.shape_cast %145 : vector<1x64x64xbf16> to vector<64x64xbf16>
    %cst_101 = arith.constant dense<0.000000e+00> : vector<64x256xf32>
    %147 = tpu.matmul %146, %144, %cst_101 {dimension_numbers = #tpu.dot_dimension_numbers<[1], [1], [0], [0], [0, 0, 1, 0], [], []>} : vector<64x64xbf16>, vector<256x64xbf16>, vector<64x256xf32> -> vector<64x256xf32>
    %148 = arith.addf %142, %147 : vector<64x256xf32>
    %c25_102 = arith.constant 25 : index
    %c0_103 = arith.constant 0 : index
    %149 = vector.load %arg8[%c25_102, %c0_103] : memref<304x64xf32, #tpu.memory_space<vmem>>, vector<256x64xf32>
    %cst_104 = arith.constant 0.000000e+00 : f32
    %150 = vector.shape_cast %31 : vector<256x1xi1> to vector<256x1xi1>
    %151 = vector.broadcast %150 : vector<256x1xi1> to vector<256x64xi1>
    %152 = vector.broadcast %cst_104 : f32 to vector<256x64xf32>
    %153 = arith.select %151, %149, %152 : vector<256x64xi1>, vector<256x64xf32>
    %154 = arith.truncf %153 : vector<256x64xf32> to vector<256x64xbf16>
    %c5_105 = arith.constant 5 : index
    %c0_106 = arith.constant 0 : index
    %c0_107 = arith.constant 0 : index
    %155 = vector.load %arg4[%c5_105, %c0_106, %c0_107] : memref<9x64x64xbf16, #tpu.memory_space<vmem>>, vector<1x64x64xbf16>
    %156 = vector.shape_cast %155 : vector<1x64x64xbf16> to vector<64x64xbf16>
    %cst_108 = arith.constant dense<0.000000e+00> : vector<64x256xf32>
    %157 = tpu.matmul %156, %154, %cst_108 {dimension_numbers = #tpu.dot_dimension_numbers<[1], [1], [0], [0], [0, 0, 1, 0], [], []>} : vector<64x64xbf16>, vector<256x64xbf16>, vector<64x256xf32> -> vector<64x256xf32>
    %158 = arith.addf %148, %157 : vector<64x256xf32>
    %c39_109 = arith.constant 39 : index
    %c0_110 = arith.constant 0 : index
    %159 = vector.load %arg8[%c39_109, %c0_110] : memref<304x64xf32, #tpu.memory_space<vmem>>, vector<256x64xf32>
    %cst_111 = arith.constant 0.000000e+00 : f32
    %160 = vector.shape_cast %29 : vector<256x1xi1> to vector<256x1xi1>
    %161 = vector.broadcast %160 : vector<256x1xi1> to vector<256x64xi1>
    %162 = vector.broadcast %cst_111 : f32 to vector<256x64xf32>
    %163 = arith.select %161, %159, %162 : vector<256x64xi1>, vector<256x64xf32>
    %164 = arith.truncf %163 : vector<256x64xf32> to vector<256x64xbf16>
    %c6_112 = arith.constant 6 : index
    %c0_113 = arith.constant 0 : index
    %c0_114 = arith.constant 0 : index
    %165 = vector.load %arg4[%c6_112, %c0_113, %c0_114] : memref<9x64x64xbf16, #tpu.memory_space<vmem>>, vector<1x64x64xbf16>
    %166 = vector.shape_cast %165 : vector<1x64x64xbf16> to vector<64x64xbf16>
    %cst_115 = arith.constant dense<0.000000e+00> : vector<64x256xf32>
    %167 = tpu.matmul %166, %164, %cst_115 {dimension_numbers = #tpu.dot_dimension_numbers<[1], [1], [0], [0], [0, 0, 1, 0], [], []>} : vector<64x64xbf16>, vector<256x64xbf16>, vector<64x256xf32> -> vector<64x256xf32>
    %168 = arith.addf %158, %167 : vector<64x256xf32>
    %c40_116 = arith.constant 40 : index
    %c0_117 = arith.constant 0 : index
    %169 = vector.load %arg8[%c40_116, %c0_117] : memref<304x64xf32, #tpu.memory_space<vmem>>, vector<256x64xf32>
    %170 = arith.truncf %169 : vector<256x64xf32> to vector<256x64xbf16>
    %c7_118 = arith.constant 7 : index
    %c0_119 = arith.constant 0 : index
    %c0_120 = arith.constant 0 : index
    %171 = vector.load %arg4[%c7_118, %c0_119, %c0_120] : memref<9x64x64xbf16, #tpu.memory_space<vmem>>, vector<1x64x64xbf16>
    %172 = vector.shape_cast %171 : vector<1x64x64xbf16> to vector<64x64xbf16>
    %cst_121 = arith.constant dense<0.000000e+00> : vector<64x256xf32>
    %173 = tpu.matmul %172, %170, %cst_121 {dimension_numbers = #tpu.dot_dimension_numbers<[1], [1], [0], [0], [0, 0, 1, 0], [], []>} : vector<64x64xbf16>, vector<256x64xbf16>, vector<64x256xf32> -> vector<64x256xf32>
    %174 = arith.addf %168, %173 : vector<64x256xf32>
    %c41_122 = arith.constant 41 : index
    %c0_123 = arith.constant 0 : index
    %175 = vector.load %arg8[%c41_122, %c0_123] : memref<304x64xf32, #tpu.memory_space<vmem>>, vector<256x64xf32>
    %cst_124 = arith.constant 0.000000e+00 : f32
    %176 = vector.shape_cast %31 : vector<256x1xi1> to vector<256x1xi1>
    %177 = vector.broadcast %176 : vector<256x1xi1> to vector<256x64xi1>
    %178 = vector.broadcast %cst_124 : f32 to vector<256x64xf32>
    %179 = arith.select %177, %175, %178 : vector<256x64xi1>, vector<256x64xf32>
    %180 = arith.truncf %179 : vector<256x64xf32> to vector<256x64xbf16>
    %c8_125 = arith.constant 8 : index
    %c0_126 = arith.constant 0 : index
    %c0_127 = arith.constant 0 : index
    %181 = vector.load %arg4[%c8_125, %c0_126, %c0_127] : memref<9x64x64xbf16, #tpu.memory_space<vmem>>, vector<1x64x64xbf16>
    %182 = vector.shape_cast %181 : vector<1x64x64xbf16> to vector<64x64xbf16>
    %cst_128 = arith.constant dense<0.000000e+00> : vector<64x256xf32>
    %183 = tpu.matmul %182, %180, %cst_128 {dimension_numbers = #tpu.dot_dimension_numbers<[1], [1], [0], [0], [0, 0, 1, 0], [], []>} : vector<64x64xbf16>, vector<256x64xbf16>, vector<64x256xf32> -> vector<64x256xf32>
    %184 = arith.addf %174, %183 : vector<64x256xf32>
    %c0_129 = arith.constant 0 : index
    %c0_130 = arith.constant 0 : index
    %185 = vector.load %arg5[%c0_129, %c0_130] : memref<64x1xf32, #tpu.memory_space<vmem>>, vector<64x1xf32>
    %186 = vector.broadcast %185 : vector<64x1xf32> to vector<64x256xf32>
    %187 = arith.addf %184, %186 : vector<64x256xf32>
    %c0_131 = arith.constant 0 : index
    %c0_132 = arith.constant 0 : index
    %c0_133 = arith.constant 0 : index
    %188 = vector.load %arg6[%c0_131, %c0_132, %c0_133] : memref<1x64x256xf32, #tpu.memory_space<vmem>>, vector<1x64x256xf32>
    %189 = vector.shape_cast %188 : vector<1x64x256xf32> to vector<64x256xf32>
    %190 = vector.shape_cast %187 : vector<64x256xf32> to vector<1x64x256xf32>
    tpu.vector_store %arg6[%c0_131, %c0_132, %c0_133], %190 {strides = array<i32>} : memref<1x64x256xf32, #tpu.memory_space<vmem>>, vector<1x64x256xf32>,
    return
  }
  func.func @transform_0(%arg0: i32) -> (i32, i32, i32) {
    %c0_i32 = arith.constant 0 : i32
    %c0_i32_0 = arith.constant 0 : i32
    %c0_i32_1 = arith.constant 0 : i32
    return %arg0, %c0_i32, %c0_i32_0 : i32, i32, i32
  }
  func.func @transform_1(%arg0: i32) -> (i32, i32, i32) {
    %c0_i32 = arith.constant 0 : i32
    %c0_i32_0 = arith.constant 0 : i32
    %c0_i32_1 = arith.constant 0 : i32
    %c0_i32_2 = arith.constant 0 : i32
    return %c0_i32, %c0_i32_0, %c0_i32_1 : i32, i32, i32
  }
  func.func @transform_2(%arg0: i32) -> (i32, i32) {
    %c0_i32 = arith.constant 0 : i32
    %c0_i32_0 = arith.constant 0 : i32
    %c0_i32_1 = arith.constant 0 : i32
    return %c0_i32, %c0_i32_0 : i32, i32
  }
  func.func @transform_3(%arg0: i32) -> (i32, i32, i32) {
    %c0_i32 = arith.constant 0 : i32
    %c0_i32_0 = arith.constant 0 : i32
    %c0_i32_1 = arith.constant 0 : i32
    %c0_i32_2 = arith.constant 0 : i32
    return %c0_i32, %c0_i32_0, %c0_i32_1 : i32, i32, i32
  }
  func.func @transform_4(%arg0: i32) -> (i32, i32) {
    %c0_i32 = arith.constant 0 : i32
    %c0_i32_0 = arith.constant 0 : i32
    %c0_i32_1 = arith.constant 0 : i32
    return %c0_i32, %c0_i32_0 : i32, i32
  }
  func.func @transform_5(%arg0: i32) -> (i32, i32, i32) {
    %c0_i32 = arith.constant 0 : i32
    %c0_i32_0 = arith.constant 0 : i32
    %c0_i32_1 = arith.constant 0 : i32
    return %arg0, %c0_i32, %c0_i32_0 : i32, i32, i32
  }
}

</mosaic_0001>

<bundles_post_ra>
// kernel: tpu_custom_call.1
= control target key start
LH: loop header
LB: loop body
LE: loop exit
PB: predicated region body
PF: predicated region fallthrough
CT: control target
= control target key end

     0   :  { %10 = vsyncpa [#allocation5], 0  ;;  %s11441_s0 = inlined_call_operand.vmem [shape: f32[2,256,8], index: 0, kind: input, shape index: {}]   ;;  %s11442_s1 = inlined_call_operand.vmem [shape: f32[9,8,64], index: 1, kind: input, shape index: {}]   ;;  %s11443_s2 = inlined_call_operand.vmem [shape: f32[1,64], index: 2, kind: input, shape index: {}]   ;;  %s11444_s3 = inlined_call_operand.vmem [shape: bf16[9,64,64], index: 3, kind: input, shape index: {}]   ;;  %s11445_s4 = inlined_call_operand.vmem [shape: f32[64,1], index: 4, kind: input, shape index: {}]   ;;  %s11446_s5 = inlined_call_operand.hbm [shape: f32[2,64,256], index: 5, kind: output, shape index: {}]  }
   0x1   :  { %12 = vsyncpa [#allocation5 + $0x1], 0  ;;  %s9011_s18 = smov 0   ;;  %s9013_s19 = smov 0  }
   0x2   :  { %s9015_s20 = smov 0   ;;  %s9017_s21 = smov 0  }
   0x3 LB: > { %s9032_s22 = sadd.s32 4294967295, %s8974_s21   ;;  %s6941_s23 = sadd.s32 4294967294, %s8974_s21   ;;  %s8974_s21 = sphi %s9017_s21, %s12389_s21   ;;  %s8970_s20 = sphi %s9015_s20, %s12388_s20   ;;  %s8966_s19 = sphi %s9013_s19, %s12387_s19   ;;  %s8962_s18 = sphi %s9011_s18, %s12386_s18  }
   0x4   : > { %s9036_s24 = sadd.s32 1, %s8974_s21   ;;  %s135_s25 = sadd.s32 1, %s8970_s20 }
   0x5   : > { %s132_s26 = ssub.s32 %s8974_s21, %s9036_s24  ;;  %p145_p0 = scmp.ne.s32.totalorder %s8970_s20, %s8966_s19 }
   0x6   : > { %p133_p1 = scmp.eq.s32.totalorder %s132_s26, 0  ;;  %p146_p2 = scmp.eq.s32.totalorder %s9032_s22, 1 }
   0x7   : > { %p151_p3 = scmp.ne.s32.totalorder %s8966_s19, %s8962_s18  ;;  %p152_p4 = scmp.eq.s32.totalorder %s6941_s23, 1 }
   0x8   : > { %s9047_s27 = scalar_select %p133_p1, %s8970_s20, %s135_s25  }
   0x9   : > { %p9049_p5 = por %p146_p2, %p145_p0  ;;  %p9053_p6 = por %p152_p4, %p151_p3 }
   0xa   : > { %p6944_p7 = scmp.ge.s32.totalorder %s8974_s21, 1  ;;  %p190_p8 = scmp.lt.s32.totalorder %s8974_s21, 3 }
   0xc   : > { %p191_p9 = pnand %p6944_p7, %p190_p8 }
   0xe   : > { %194 = sbr.rel (%p191_p9) target bundleno = 1631 (0x65f), region = 40 }
  0x15   : > { %v6948_v0 = vld [vmem:[%s11442_s1 + $0x8] sm:$0xff]  ;;  %vm224_vm0 = vcmask 64512   ;;  %v911_v1 = vld [vmem:[%s11442_s1] sm:$0xff]  ;;  %p218_p10 = scmp.lt.s32.totalorder %s9032_s22, 1  ;;  %v11447_v2 = vmov 0.0   ;;  %v9096_v9 = vld [vmem:[%s11442_s1 + $0x10] sm:$0xff]  ;;  %v302_v59 = vlaneseq }
  0x16   : > { %7901 = vmatprep.subr.mxu0 %v6948_v0  ;;  %226 = vst.msk [vmem:[#allocation2 + $0x8] sm:$0xff] %vm224_vm0, %v11447_v2  ;;  %225 = vst.msk [vmem:[#allocation2] sm:$0xff] %vm224_vm0, %v11447_v2  ;;  %s215_s6 = sand.u32 1, %s8966_s19   ;;  %s8978_s15 = smov [#allocation4]  }
  0x17   : > { %227 = vst.msk [vmem:[#allocation2 + $0x10] sm:$0xff] %vm224_vm0, %v11447_v2  ;;  %228 = vst.msk [vmem:[#allocation2 + $0x118] sm:$0xff] %vm224_vm0, %v11447_v2  ;;  %7902 = vmatpush3.msra.mxu0 %v6948_v0  ;;  %s219_s9 = scalar_select %p218_p10, %s9032_s22, 1  ;;  %v9248_v62 = vshrl.u32 %v302_v59, 7 }
  0x18   : > { %229 = vst.msk [vmem:[#allocation2 + $0x120] sm:$0xff] %vm224_vm0, %v11447_v2  ;;  %230 = vst.msk [vmem:[#allocation2 + $0x128] sm:$0xff] %vm224_vm0, %v11447_v2  ;;  %7951 = vmatprep.subr.mxu0 %v911_v1  ;;  %s6945_s7 = sshll.u32 %s215_s6, 7  ;;  %s8916_s16 = sshll.u32 %s8978_s15, 4  ;;  %s8917_s16 = int_to_ptr.vmem [resolvable:$false] %s8916_s16 }
  0x19   : > { %s7386_s10 = sshll.u32 %s219_s9, 8  ;;  %v305_v63 = vadd.s32 16, %v9248_v62  ;;  %v325_v2 = vadd.s32 176, %v9248_v62  ;;  %s11371_s8 = scalar_lea.vmem [#allocation4], %s6945_s7 }
  0x1a   : > { %s9082_s13 = scalar_lea.vmem %s11441_s0, %s7386_s10  ;;  %s7387_s9 = sshll.u32 %s9032_s22, 11 }
  0x1b   : > { %v238_v3 = vld [vmem:[%s9082_s13] sm:$0xff]  ;;  %v239_v4 = vld [vmem:[%s9082_s13 + $0x8] sm:$0xff]  ;;  %v240_v5 = vld [vmem:[%s9082_s13 + $0x10] sm:$0xff]  ;;  %s6879_s10 = sshll.u32 %s11371_s8, 4  ;;  %s11400_s22 = scalar_lea.sflag [#allocation5], %s215_s6  ;;  %s11393_s10 = int_to_ptr.vmem [resolvable:$true] %s6879_s10 }
  0x1c   : > { %270 = vst.msk [vmem:[#allocation2 + $0x18] sm:$0xff] %vm224_vm0, %v238_v3  ;;  %271 = vst.msk [vmem:[#allocation2 + $0x20] sm:$0xff] %vm224_vm0, %v239_v4  ;;  %v241_v6 = vld [vmem:[%s9082_s13 + $0x18] sm:$0xff]  ;;  %v242_v7 = vld [vmem:[%s9082_s13 + $0x20] sm:$0xff]  ;;  %v339_v4 = vand.u32 15, %v9248_v62  ;;  %s8912_s14 = scalar_lea.vmem %s11393_s10, 2048  ;;  %p8919_p0 = scmp.lt.s32.totalorder %s11393_s10, %s8917_s16 }
  0x1d   : > { %272 = vst.msk [vmem:[#allocation2 + $0x28] sm:$0xff] %vm224_vm0, %v240_v5  ;;  %v243_v8 = vld [vmem:[%s9082_s13 + $0x28] sm:$0xff]  ;;  %273 = vst.msk [vmem:[#allocation2 + $0x30] sm:$0xff] %vm224_vm0, %v241_v6  ;;  %v244_v12 = vld [vmem:[%s9082_s13 + $0x30] sm:$0xff]  ;;  %v353_v5 = vand.u32 15, %v305_v63  ;;  %p8913_p11 = scmp.ne.s32.totalorder %s11393_s10, %s8912_s14  ;;  %s8918_s17 = scalar_lea.vmem %s8917_s16, 4096 }
  0x1e   : > { %v912_v10 = vld [vmem:[#allocation2 + $0x8] sm:$0xff]  ;;  %v913_v11 = vld [vmem:[#allocation2 + $0x10] sm:$0xff]  ;;  %274 = vst.msk [vmem:[#allocation2 + $0x38] sm:$0xff] %vm224_vm0, %v242_v7  ;;  %275 = vst.msk [vmem:[#allocation2 + $0x40] sm:$0xff] %vm224_vm0, %v243_v8  ;;  %v307_v8 = vadd.s32 32, %v9248_v62  ;;  %vm9271_vm1 = vcmp.ne.s32.totalorder %v339_v4, 0  ;;  %p8920_p1 = scmp.lt.s32.totalorder %s8918_s17, %s8912_s14 }
  0x1f   : > { %7903 = vmatprep.mubr.msk.f32.mxu0 %vm224_vm0, %v912_v10  ;;  %276 = vst.msk [vmem:[#allocation2 + $0x48] sm:$0xff] %vm224_vm0, %v244_v12  ;;  %v245_v13 = vld [vmem:[%s9082_s13 + $0x38] sm:$0xff]  ;;  %v246_v14 = vld [vmem:[%s9082_s13 + $0x40] sm:$0xff]  ;;  %v247_v15 = vld [vmem:[%s9082_s13 + $0x48] sm:$0xff]  ;;  %v11707_v10 = vmov 0  ;;  %vm9279_vm2 = vcmp.ne.s32.totalorder %v353_v5, 0  ;;  %p8914_p12 = pnand %p8913_p11, %p9049_p5 }
  0x20   : > { %7904 = vmatmul.mubr.msk.f32.vlgmr.msra.gmra.mrb[0].mxu0 %vm224_vm0, %v913_v11  ;;  %277 = vst.msk [vmem:[#allocation2 + $0x50] sm:$0xff] %vm224_vm0, %v245_v13  ;;  %278 = vst.msk [vmem:[#allocation2 + $0x58] sm:$0xff] %vm224_vm0, %v246_v14  ;;  %v248_v16 = vld [vmem:[%s9082_s13 + $0x50] sm:$0xff]  ;;  %v249_v17 = vld [vmem:[%s9082_s13 + $0x58] sm:$0xff]  ;;  %v11708_v10 = vsel %vm9271_vm1, 4294967295, %v11707_v10  ;;  %p8921_p2 = por %p8920_p1, %p8919_p0 }
  0x21   : > { %279 = vst.msk [vmem:[#allocation2 + $0x60] sm:$0xff] %vm224_vm0, %v247_v15  ;;  %v250_v18 = vld [vmem:[%s9082_s13 + $0x60] sm:$0xff]  ;;  %7952 = vmatpush3.msra.mxu0 %v911_v1  ;;  %280 = vst.msk [vmem:[#allocation2 + $0x68] sm:$0xff] %vm224_vm0, %v248_v16  ;;  %v251_v19 = vld [vmem:[%s9082_s13 + $0x68] sm:$0xff]  ;;  %v367_v16 = vand.u32 15, %v307_v8  ;;  %v317_v8 = vadd.s32 112, %v9248_v62  ;;  %p8915_p13 = pneg %p8914_p12 }
  0x22   : > { %281 = vst.msk [vmem:[#allocation2 + $0x70] sm:$0xff] %vm224_vm0, %v249_v17  ;;  %282 = vst.msk [vmem:[#allocation2 + $0x78] sm:$0xff] %vm224_vm0, %v250_v18  ;;  %v252_v20 = vld [vmem:[%s9082_s13 + $0x70] sm:$0xff]  ;;  %v253_v21 = vld [vmem:[%s9082_s13 + $0x78] sm:$0xff]  ;;  %8001 = vmatprep.subr.mxu0 %v9096_v9  ;;  %v309_v17 = vadd.s32 48, %v9248_v62 }
  0x23   : > { %283 = vst.msk [vmem:[#allocation2 + $0x80] sm:$0xff] %vm224_vm0, %v251_v19  ;;  %284 = vst.msk [vmem:[#allocation2 + $0x88] sm:$0xff] %vm224_vm0, %v252_v20  ;;  %v254_v22 = vld [vmem:[%s9082_s13 + $0x80] sm:$0xff]  ;;  %v255_v23 = vld [vmem:[%s9082_s13 + $0x88] sm:$0xff]  ;;  %vm9296_vm3 = vcmp.ne.s32.totalorder %v367_v16, 0  ;;  %v11722_v16 = vmov 0  ;;  %p8922_p3 = pnand %p8921_p2, %p8915_p13 }
  0x24   : > { %285 = vst.msk [vmem:[#allocation2 + $0x90] sm:$0xff] %vm224_vm0, %v253_v21  ;;  %v256_v24 = vld [vmem:[%s9082_s13 + $0x90] sm:$0xff]  ;;  %286 = vst.msk [vmem:[#allocation2 + $0x98] sm:$0xff] %vm224_vm0, %v254_v22  ;;  %v257_v25 = vld [vmem:[%s9082_s13 + $0x98] sm:$0xff]  ;;  %v381_v22 = vand.u32 15, %v309_v17 }
  0x25   : > { %287 = vst.msk [vmem:[#allocation2 + $0xa0] sm:$0xff] %vm224_vm0, %v255_v23  ;;  %288 = vst.msk [vmem:[#allocation2 + $0xa8] sm:$0xff] %vm224_vm0, %v256_v24  ;;  %v258_v26 = vld [vmem:[%s9082_s13 + $0xa0] sm:$0xff]  ;;  %v259_v27 = vld [vmem:[%s9082_s13 + $0xa8] sm:$0xff]  ;;  %v311_v23 = vadd.s32 64, %v9248_v62 }
  0x26   : > { %v9133_v28 = vld [vmem:[#allocation2 + $0x18] sm:$0xff]  ;;  %v9135_v29 = vld [vmem:[#allocation2 + $0x20] sm:$0xff]  ;;  %v9137_v30 = vld [vmem:[#allocation2 + $0x28] sm:$0xff]  ;;  %289 = vst.msk [vmem:[#allocation2 + $0xb0] sm:$0xff] %vm224_vm0, %v257_v25  ;;  %vm9317_vm4 = vcmp.ne.s32.totalorder %v381_v22, 0 }
  0x27   : > { %290 = vst.msk [vmem:[#allocation2 + $0xb8] sm:$0xff] %vm224_vm0, %v258_v26  ;;  %291 = vst.msk [vmem:[#allocation2 + $0xc0] sm:$0xff] %vm224_vm0, %v259_v27  ;;  %7906 = vmatprep.mubr.msk.f32.mxu0 %vm224_vm0, %v9133_v28  ;;  %v260_v31 = vld [vmem:[%s9082_s13 + $0xb0] sm:$0xff]  ;;  %v261_v32 = vld [vmem:[%s9082_s13 + $0xb8] sm:$0xff] }
  0x28   : > { %7907 = vmatmul.mubr.msk.f32.gmra.mrb[2].mxu0 %vm224_vm0, %v9135_v29  ;;  %v9150_v33 = vld [vmem:[#allocation2 + $0x30] sm:$0xff]  ;;  %292 = vst.msk [vmem:[#allocation2 + $0xc8] sm:$0xff] %vm224_vm0, %v260_v31  ;;  %293 = vst.msk [vmem:[#allocation2 + $0xd0] sm:$0xff] %vm224_vm0, %v261_v32  ;;  %v9154_v34 = vld [vmem:[#allocation2 + $0x38] sm:$0xff]  ;;  %v395_v32 = vand.u32 15, %v311_v23 }
  0x29   : > { %7909 = vmatprep.mubr.msk.f32.mxu0 %vm224_vm0, %v9137_v30  ;;  %11682 = vst [vmem:[#allocation7_spill] sm:$0xff] %v9154_v34  ;;  %v9160_v35 = vld [vmem:[#allocation2 + $0x40] sm:$0xff]  ;;  %v9162_v36 = vld [vmem:[#allocation2 + $0x48] sm:$0xff]  ;;  %v264_v39 = vld [vmem:[%s9082_s13 + $0xd0] sm:$0xff] }
  0x2a   : > { %11683 = vst [vmem:[#allocation8_spill] sm:$0xff] %v9160_v35  ;;  %11684 = vst [vmem:[#allocation9_spill] sm:$0xff] %v9162_v36  ;;  %v262_v37 = vld [vmem:[%s9082_s13 + $0xc0] sm:$0xff]  ;;  %v263_v38 = vld [vmem:[%s9082_s13 + $0xc8] sm:$0xff]  ;;  %vm9332_vm5 = vcmp.ne.s32.totalorder %v395_v32, 0 }
  0x2b   : > { %294 = vst.msk [vmem:[#allocation2 + $0xd8] sm:$0xff] %vm224_vm0, %v262_v37  ;;  %295 = vst.msk [vmem:[#allocation2 + $0xe0] sm:$0xff] %vm224_vm0, %v263_v38  ;;  %v265_v40 = vld [vmem:[%s9082_s13 + $0xd8] sm:$0xff]  ;;  %v266_v41 = vld [vmem:[%s9082_s13 + $0xe0] sm:$0xff]  ;;  %v313_v37 = vadd.s32 80, %v9248_v62 }
  0x2c   : > { %7910 = vmatmul.mubr.msk.f32.gmra.mrb[4].mxu0 %vm224_vm0, %v9150_v33  ;;  %296 = vst.msk [vmem:[#allocation2 + $0xe8] sm:$0xff] %vm224_vm0, %v264_v39  ;;  %v267_v42 = vld [vmem:[%s9082_s13 + $0xe8] sm:$0xff]  ;;  %297 = vst.msk [vmem:[#allocation2 + $0xf0] sm:$0xff] %vm224_vm0, %v265_v40  ;;  %v9180_v43 = vld [vmem:[#allocation2 + $0x50] sm:$0xff]  ;;  %v11717_v39 = vmov 0 }
  0x2d   : > { %7912 = vmatprep.mubr.msk.f32.mxu0 %vm224_vm0, %v9154_v34  ;;  %298 = vst.msk [vmem:[#allocation2 + $0xf8] sm:$0xff] %vm224_vm0, %v266_v41  ;;  %299 = vst.msk [vmem:[#allocation2 + $0x100] sm:$0xff] %vm224_vm0, %v267_v42  ;;  %v9182_v44 = vld [vmem:[#allocation2 + $0x58] sm:$0xff]  ;;  %v9188_v45 = vld [vmem:[#allocation2 + $0x60] sm:$0xff]  ;;  %v11718_v39 = vsel %vm9332_vm5, 4294967295, %v11717_v39  ;;  %v409_v41 = vand.u32 15, %v313_v37 }
  0x2e   : > { %11685 = vst [vmem:[#allocation10_spill] sm:$0xff] %v9180_v43  ;;  %11686 = vst [vmem:[#allocation11_spill] sm:$0xff] %v9182_v44  ;;  %v9190_v46 = vld [vmem:[#allocation2 + $0x68] sm:$0xff]  ;;  %v9196_v47 = vld [vmem:[#allocation2 + $0x70] sm:$0xff]  ;;  %v315_v42 = vadd.s32 96, %v9248_v62 }
  0x2f   : > { %11687 = vst [vmem:[#allocation12_spill] sm:$0xff] %v9188_v45  ;;  %11688 = vst [vmem:[#allocation13_spill] sm:$0xff] %v9190_v46  ;;  %v9198_v48 = vld [vmem:[#allocation2 + $0x78] sm:$0xff]  ;;  %v9204_v49 = vld [vmem:[#allocation2 + $0x80] sm:$0xff]  ;;  %vm9347_vm6 = vcmp.ne.s32.totalorder %v409_v41, 0 }
  0x30   : > { %7913 = vmatmul.mubr.msk.f32.gmra.mrb[6].mxu0 %vm224_vm0, %v9160_v35  ;;  %11689 = vst [vmem:[#allocation14_spill] sm:$0xff] %v9196_v47  ;;  %11690 = vst [vmem:[#allocation15_spill] sm:$0xff] %v9198_v48  ;;  %v9206_v50 = vld [vmem:[#allocation2 + $0x88] sm:$0xff]  ;;  %v9212_v51 = vld [vmem:[#allocation2 + $0x90] sm:$0xff]  ;;  %v423_v5 = vand.u32 15, %v315_v42 }
  0x31   : > { %7915 = vmatprep.mubr.msk.f32.mxu0 %vm224_vm0, %v9162_v36  ;;  %11691 = vst [vmem:[#allocation16_spill] sm:$0xff] %v9204_v49  ;;  %11692 = vst [vmem:[#allocation17_spill] sm:$0xff] %v9206_v50  ;;  %v9214_v52 = vld [vmem:[#allocation2 + $0x98] sm:$0xff]  ;;  %v9220_v53 = vld [vmem:[#allocation2 + $0xa0] sm:$0xff]  ;;  %v11750_v36 = vmov 0 }
  0x32   : > { %11693 = vst [vmem:[#allocation18_spill] sm:$0xff] %v9212_v51  ;;  %11694 = vst [vmem:[#allocation19_spill] sm:$0xff] %v9214_v52  ;;  %v9222_v54 = vld [vmem:[#allocation2 + $0xa8] sm:$0xff]  ;;  %v9228_v55 = vld [vmem:[#allocation2 + $0xb0] sm:$0xff]  ;;  %vm9362_vm7 = vcmp.ne.s32.totalorder %v423_v5, 0 }
  0x33   : > { %11695 = vst [vmem:[#allocation20_spill] sm:$0xff] %v9220_v53  ;;  %11696 = vst [vmem:[#allocation21_spill] sm:$0xff] %v9222_v54  ;;  %v9230_v56 = vld [vmem:[#allocation2 + $0xb8] sm:$0xff]  ;;  %v9236_v57 = vld [vmem:[#allocation2 + $0xc0] sm:$0xff]  ;;  %v11723_v16 = vsel %vm9362_vm7, 4294967295, %v11722_v16 }
  0x34   : > { %7916 = vmatmul.mubr.msk.f32.gmra.mrb[8].mxu0 %vm224_vm0, %v9180_v43  ;;  %11697 = vst [vmem:[#allocation22_spill] sm:$0xff] %v9228_v55  ;;  %11698 = vst [vmem:[#allocation23_spill] sm:$0xff] %v9230_v56  ;;  %v9238_v58 = vld [vmem:[#allocation2 + $0xc8] sm:$0xff]  ;;  %v9244_v60 = vld [vmem:[#allocation2 + $0xd0] sm:$0xff]  ;;  %v308_v43 = vadd.s32 40, %v9248_v62 }
  0x35   : > { %7918 = vmatprep.mubr.msk.f32.mxu0 %vm224_vm0, %v9182_v44  ;;  %11699 = vst [vmem:[#allocation24_spill] sm:$0xff] %v9236_v57  ;;  %11700 = vst [vmem:[#allocation25_spill] sm:$0xff] %v9238_v58  ;;  %v9246_v61 = vld [vmem:[#allocation2 + $0xd8] sm:$0xff]  ;;  %v9255_v0 = vld [vmem:[#allocation2 + $0xe0] sm:$0xff] }
  0x36   : > { %11701 = vst [vmem:[#allocation26_spill] sm:$0xff] %v9244_v60  ;;  %11702 = vst [vmem:[#allocation27_spill] sm:$0xff] %v9246_v61  ;;  %v9257_v1 = vld [vmem:[#allocation2 + $0xe8] sm:$0xff]  ;;  %v268_v3 = vld [vmem:[%s9082_s13 + $0xf0] sm:$0xff]  ;;  %v374_v35 = vand.u32 15, %v308_v43  ;;  %v11755_v43 = vmov 0 }
  0x37   : > { %11703 = vst [vmem:[#allocation28_spill] sm:$0xff] %v9255_v0  ;;  %11704 = vst [vmem:[#allocation29_spill] sm:$0xff] %v9257_v1  ;;  %v9266_v6 = vld [vmem:[#allocation2 + $0xf0] sm:$0xff]  ;;  %v9268_v7 = vld [vmem:[#allocation2 + $0xf8] sm:$0xff] }
  0x38   : > { %7919 = vmatmul.mubr.msk.f32.gmra.mrb[10].mxu0 %vm224_vm0, %v9188_v45  ;;  %300 = vst.msk [vmem:[#allocation2 + $0x108] sm:$0xff] %vm224_vm0, %v268_v3  ;;  %11705 = vst [vmem:[#allocation30_spill] sm:$0xff] %v9266_v6  ;;  %v783_v11 = vld [vmem:[#allocation2 + $0x7] sm:$0xff]  ;;  %v9287_v15 = vld [vmem:[#allocation2 + $0x17] sm:$0xff]  ;;  %v11719_v3 = vmov 0 }
  0x39   : > { %7921 = vmatprep.mubr.msk.f32.mxu0 %vm224_vm0, %v9190_v46  ;;  %11706 = vst [vmem:[#allocation31_spill] sm:$0xff] %v9268_v7  ;;  %11709 = vst [vmem:[#allocation32_spill] sm:$0xff] %v11708_v10  ;;  %v9277_v12 = vld [vmem:[#allocation2 + $0x100] sm:$0xff]  ;;  %v879_v14 = vsel %vm9271_vm1, %v783_v11, 0.0  ;;  %v784_v18 = vld [vmem:[#allocation2 + $0xf] sm:$0xff]  ;;  %v881_v19 = vsel %vm9279_vm2, %v9287_v15, 0.0 }
  0x3a   : > { %11710 = vst [vmem:[#allocation33_spill] sm:$0xff] %v9277_v12  ;;  %v9300_v21 = vld [vmem:[#allocation2 + $0x27] sm:$0xff]  ;;  %v9306_v24 = vld [vmem:[%s11442_s1 + $0x18] sm:$0xff]  ;;  %v11720_v3 = vsel %vm9347_vm6, 4294967295, %v11719_v3  ;;  %v9357_v11 = vld [vmem:[#allocation2 + $0x4f] sm:$0xff] }
  0x3b   : > { %v9311_v25 = vld [vmem:[#allocation2 + $0x1f] sm:$0xff]  ;;  %v883_v26 = vsel %vm9296_vm3, %v9300_v21, 0.0  ;;  %v9321_v31 = vld [vmem:[#allocation2 + $0x37] sm:$0xff]  ;;  %v9336_v40 = vld [vmem:[#allocation2 + $0x47] sm:$0xff]  ;;  %11721 = vst [vmem:[#allocation34_spill] sm:$0xff] %v11720_v3 }
  0x3c   : > { %7922 = vmatmul.mubr.msk.f32.gmra.mrb[12].mxu0 %vm224_vm0, %v9196_v47  ;;  %v885_v38 = vsel %vm9317_vm4, %v9321_v31, 0.0  ;;  %v9342_v59 = vld [vmem:[#allocation2 + $0x3f] sm:$0xff]  ;;  %v887_v63 = vsel %vm9332_vm5, %v9336_v40, 0.0  ;;  %v9351_v4 = vld [vmem:[#allocation2 + $0x57] sm:$0xff]  ;;  %11724 = vst [vmem:[#allocation35_spill] sm:$0xff] %v11723_v16  ;;  %v9366_v17 = vld [vmem:[#allocation2 + $0x67] sm:$0xff] }
  0x3d   : > { %7924 = vmatprep.mubr.msk.f32.mxu0 %vm224_vm0, %v9198_v48  ;;  %v9372_v22 = vld [vmem:[#allocation2 + $0x5f] sm:$0xff]  ;;  %v891_v23 = vsel %vm9362_vm7, %v9366_v17, 0.0  ;;  %v9381_v32 = vld [vmem:[#allocation2 + $0x77] sm:$0xff]  ;;  %v9387_v41 = vld [vmem:[#allocation2 + $0x6f] sm:$0xff]  ;;  %v306_v47 = vadd.s32 24, %v9248_v62 }
  0x3e   : > { %v9396_v5 = vld [vmem:[#allocation2 + $0x87] sm:$0xff]  ;;  %v9517_v46 = vld [vmem:[#allocation2 + $0xff] sm:$0xff] }
  0x3f   : > { %11745 = vst [vmem:[#allocation38_spill] sm:$0xff] %v9517_v46  ;;  %v1588_v45 = vld [vmem:[#allocation2 + $0x9] sm:$0xff]  ;;  %v360_v44 = vand.u32 15, %v306_v47  ;;  %v310_v47 = vadd.s32 56, %v9248_v62  ;;  %v9541_v34 = vld [vmem:[%s11442_s1 + $0x20] sm:$0xff] }
  0x40   : > { %7925 = vmatmul.mubr.msk.f32.gmra.mrb[14].mxu0 %vm224_vm0, %v9204_v49  ;;  %v9501_v49 = vld [vmem:[#allocation2 + $0xf7] sm:$0xff] }
  0x41   : > { %7927 = vmatprep.mubr.msk.f32.mxu0 %vm224_vm0, %v9206_v50  ;;  %v304_v50 = vadd.s32 8, %v9248_v62 }
  0x44   : > { %7928 = vmatmul.mubr.msk.f32.gmra.mrb[16].mxu0 %vm224_vm0, %v9212_v51  ;;  %v9491_v51 = vld [vmem:[#allocation2 + $0xdf] sm:$0xff] }
  0x45   : > { %7930 = vmatprep.mubr.msk.f32.mxu0 %vm224_vm0, %v9214_v52  ;;  %v9486_v52 = vld [vmem:[#allocation2 + $0xe7] sm:$0xff] }
  0x48   : > { %7931 = vmatmul.mubr.msk.f32.gmra.mrb[18].mxu0 %vm224_vm0, %v9220_v53  ;;  %v11740_v53 = vmov 0 }
  0x49   : > { %7933 = vmatprep.mubr.msk.f32.mxu0 %vm224_vm0, %v9222_v54  ;;  %v333_v54 = vadd.s32 240, %v9248_v62 }
  0x4c   : > { %7934 = vmatmul.mubr.msk.f32.gmra.mrb[20].mxu0 %vm224_vm0, %v9228_v55  ;;  %v9471_v55 = vld [vmem:[#allocation2 + $0xd7] sm:$0xff] }
  0x4d   : > { %7936 = vmatprep.mubr.msk.f32.mxu0 %vm224_vm0, %v9230_v56 }
  0x50   : > { %7937 = vmatmul.mubr.msk.f32.gmra.mrb[22].mxu0 %vm224_vm0, %v9236_v57  ;;  %v331_v57 = vadd.s32 224, %v9248_v62 }
  0x51   : > { %7939 = vmatprep.mubr.msk.f32.mxu0 %vm224_vm0, %v9238_v58  ;;  %v9456_v58 = vld [vmem:[#allocation2 + $0xc7] sm:$0xff] }
  0x54   : > { %7940 = vmatmul.mubr.msk.f32.gmra.mrb[24].mxu0 %vm224_vm0, %v9244_v60 }
  0x55   : > { %7942 = vmatprep.mubr.msk.f32.mxu0 %vm224_vm0, %v9246_v61  ;;  %v329_v61 = vadd.s32 208, %v9248_v62 }
  0x58   : > { %7943 = vmatmul.mubr.msk.f32.gmra.mrb[26].mxu0 %vm224_vm0, %v9255_v0  ;;  %v9441_v0 = vld [vmem:[#allocation2 + $0xb7] sm:$0xff] }
  0x59   : > { %7945 = vmatprep.mubr.msk.f32.mxu0 %vm224_vm0, %v9257_v1 }
  0x5c   : > { %7946 = vmatmul.mubr.msk.f32.gmra.mrb[28].mxu0 %vm224_vm0, %v9266_v6  ;;  %v327_v6 = vadd.s32 192, %v9248_v62 }
  0x5d   : > { %7948 = vmatprep.mubr.msk.f32.mxu0 %vm224_vm0, %v9268_v7  ;;  %v9426_v7 = vld [vmem:[#allocation2 + $0xa7] sm:$0xff] }
  0x60   : > { %7949 = vmatmul.mubr.msk.f32.gmra.mrb[30].mxu0 %vm224_vm0, %v9277_v12 }
  0x61   : > { %7953 = vmatprep.mubr.msk.f32.mxu0 %vm224_vm0, %v879_v14  ;;  %v889_v14 = vsel %vm9347_vm6, %v9351_v4, 0.0 }
  0x64   : > { %7954 = vmatmul.mubr.msk.f32.vlgmr.msra.gmra.mrb[0].mxu0 %vm224_vm0, %v784_v18  ;;  %v437_v18 = vand.u32 15, %v317_v8 }
  0x65   : > { %8002 = vmatpush3.msra.mxu0 %v9096_v9  ;;  %7956 = vmatprep.mubr.msk.f32.mxu0 %vm224_vm0, %v881_v19  ;;  %v9327_v9 = vld [vmem:[#allocation2 + $0x2f] sm:$0xff]  ;;  %v319_v19 = vadd.s32 128, %v9248_v62 }
  0x66   : > { %8051 = vmatprep.subr.mxu0 %v9306_v24  ;;  %vm9377_vm8 = vcmp.ne.s32.totalorder %v437_v18, 0  ;;  %v9402_v18 = vld [vmem:[#allocation2 + $0x7f] sm:$0xff] }
  0x67   : > { %v451_v37 = vand.u32 15, %v319_v19  ;;  %v893_v42 = vsel %vm9377_vm8, %v9381_v32, 0.0 }
  0x68   : > { %7957 = vmatmul.mubr.msk.f32.gmra.mrb[2].mxu0 %vm224_vm0, %v9311_v25 }
  0x69   : > { %7959 = vmatprep.mubr.msk.f32.mxu0 %vm224_vm0, %v883_v26  ;;  %v11725_v26 = vmov 0  ;;  %vm9392_vm9 = vcmp.ne.s32.totalorder %v451_v37, 0  ;;  %v9411_v37 = vld [vmem:[#allocation2 + $0x97] sm:$0xff] }
  0x6a   : > { %v11726_v26 = vsel %vm9377_vm8, 4294967295, %v11725_v26  ;;  %v895_v19 = vsel %vm9392_vm9, %v9396_v5, 0.0 }
  0x6b   : > { %11727 = vst [vmem:[#allocation36_spill] sm:$0xff] %v11726_v26 }
  0x6c   : > { %7960 = vmatmul.mubr.msk.f32.gmra.mrb[4].mxu0 %vm224_vm0, %v9327_v9 }
  0x6d   : > { %7962 = vmatprep.mubr.msk.f32.mxu0 %vm224_vm0, %v885_v38  ;;  %v321_v38 = vadd.s32 144, %v9248_v62 }
  0x6f   : > { %v465_v8 = vand.u32 15, %v321_v38 }
  0x70   : > { %7963 = vmatmul.mubr.msk.f32.gmra.mrb[6].mxu0 %vm224_vm0, %v9342_v59 }
  0x71   : > { %7965 = vmatprep.mubr.msk.f32.mxu0 %vm224_vm0, %v887_v63  ;;  %v11728_v63 = vmov 0  ;;  %vm9407_vm10 = vcmp.ne.s32.totalorder %v465_v8, 0  ;;  %v11732_v8 = vmov 0 }
  0x72   : > { %v11729_v63 = vsel %vm9392_vm9, 4294967295, %v11728_v63  ;;  %v897_v12 = vsel %vm9407_vm10, %v9411_v37, 0.0 }
  0x74   : > { %7966 = vmatmul.mubr.msk.f32.gmra.mrb[8].mxu0 %vm224_vm0, %v9357_v11 }
  0x75   : > { %7968 = vmatprep.mubr.msk.f32.mxu0 %vm224_vm0, %v889_v14  ;;  %v323_v14 = vadd.s32 160, %v9248_v62 }
  0x77   : > { %v479_v38 = vand.u32 15, %v323_v14  ;;  %v493_v14 = vand.u32 15, %v325_v2  ;;  %v507_v2 = vand.u32 15, %v327_v6  ;;  %v521_v6 = vand.u32 15, %v329_v61 }
  0x78   : > { %7969 = vmatmul.mubr.msk.f32.gmra.mrb[10].mxu0 %vm224_vm0, %v9372_v22  ;;  %v535_v61 = vand.u32 15, %v331_v57  ;;  %v549_v57 = vand.u32 15, %v333_v54  ;;  %v269_v54 = vld [vmem:[%s9082_s13 + $0xf8] sm:$0xff]  ;;  %s11391_s13 = scalar_lea.hbm %s11446_s5, %s7387_s9 }
  0x79   : > { %7971 = vmatprep.mubr.msk.f32.mxu0 %vm224_vm0, %v891_v23  ;;  %v11730_v23 = vmov 0  ;;  %vm9422_vm11 = vcmp.ne.s32.totalorder %v479_v38, 0  ;;  %vm9437_vm12 = vcmp.ne.s32.totalorder %v493_v14, 0  ;;  %v11734_v38 = vmov 0  ;;  %301 = vst.msk [vmem:[#allocation2 + $0x110] sm:$0xff] %vm224_vm0, %v269_v54 }
  0x7a   : > { %v11731_v23 = vsel %vm9407_vm10, 4294967295, %v11730_v23  ;;  %v11733_v8 = vsel %vm9422_vm11, 4294967295, %v11732_v8  ;;  %v899_v1 = vsel %vm9422_vm11, %v9426_v7, 0.0  ;;  %v11735_v38 = vsel %vm9437_vm12, 4294967295, %v11734_v38 }
  0x7b   : > { %v901_v60 = vsel %vm9437_vm12, %v9441_v0, 0.0  ;;  %vm9452_vm13 = vcmp.ne.s32.totalorder %v507_v2, 0  ;;  %v11736_v14 = vmov 0  ;;  %vm9467_vm14 = vcmp.ne.s32.totalorder %v521_v6, 0 }
  0x7c   : > { %7972 = vmatmul.mubr.msk.f32.gmra.mrb[12].mxu0 %vm224_vm0, %v9387_v41  ;;  %v11737_v14 = vsel %vm9452_vm13, 4294967295, %v11736_v14  ;;  %v903_v56 = vsel %vm9452_vm13, %v9456_v58, 0.0  ;;  %v11738_v2 = vmov 0  ;;  %v905_v6 = vsel %vm9467_vm14, %v9471_v55, 0.0 }
  0x7d   : > { %7974 = vmatprep.mubr.msk.f32.mxu0 %vm224_vm0, %v893_v42  ;;  %v9417_v42 = vld [vmem:[#allocation2 + $0x8f] sm:$0xff]  ;;  %v11739_v2 = vsel %vm9467_vm14, 4294967295, %v11738_v2  ;;  %vm9482_vm15 = vcmp.ne.s32.totalorder %v535_v61, 0  ;;  %vm9497_vm14 = vcmp.ne.s32.totalorder %v549_v57, 0  ;;  %v11742_v61 = vmov 0 }
  0x7e   : > { %v11741_v53 = vsel %vm9482_vm15, 4294967295, %v11740_v53  ;;  %v11743_v61 = vsel %vm9497_vm14, 4294967295, %v11742_v61  ;;  %v909_v48 = vsel %vm9497_vm14, %v9501_v49, 0.0  ;;  %v346_v57 = vand.u32 15, %v304_v50 }
  0x7f   : > { %11744 = vst [vmem:[#allocation37_spill] sm:$0xff] %v11743_v61  ;;  %v11746_v54 = vmov 0  ;;  %vm9531_vm14 = vcmp.ne.s32.totalorder %v360_v44, 15 }
  0x80   : > { %7975 = vmatmul.mubr.msk.f32.gmra.mrb[14].mxu0 %vm224_vm0, %v9402_v18  ;;  %v11751_v36 = vsel %vm9531_vm14, 4294967295, %v11750_v36 }
  0x81   : > { %7977 = vmatprep.mubr.msk.f32.mxu0 %vm224_vm0, %v895_v19  ;;  %v9432_v19 = vld [vmem:[#allocation2 + $0x9f] sm:$0xff]  ;;  %11752 = vst [vmem:[#allocation41_spill] sm:$0xff] %v11751_v36  ;;  %v11760_v36 = vmov 0 }
  0x84   : > { %7978 = vmatmul.mubr.msk.f32.gmra.mrb[16].mxu0 %vm224_vm0, %v9417_v42 }
  0x85   : > { %7980 = vmatprep.mubr.msk.f32.mxu0 %vm224_vm0, %v897_v12  ;;  %v9447_v12 = vld [vmem:[#allocation2 + $0xaf] sm:$0xff] }
  0x88   : > { %7981 = vmatmul.mubr.msk.f32.gmra.mrb[18].mxu0 %vm224_vm0, %v9432_v19 }
  0x89   : > { %7983 = vmatprep.mubr.msk.f32.mxu0 %vm224_vm0, %v899_v1  ;;  %v9462_v1 = vld [vmem:[#allocation2 + $0xbf] sm:$0xff] }
  0x8c   : > { %7984 = vmatmul.mubr.msk.f32.gmra.mrb[20].mxu0 %vm224_vm0, %v9447_v12 }
  0x8d   : > { %7986 = vmatprep.mubr.msk.f32.mxu0 %vm224_vm0, %v901_v60  ;;  %v9477_v60 = vld [vmem:[#allocation2 + $0xcf] sm:$0xff] }
  0x90   : > { %7987 = vmatmul.mubr.msk.f32.gmra.mrb[22].mxu0 %vm224_vm0, %v9462_v1 }
  0x91   : > { %7989 = vmatprep.mubr.msk.f32.mxu0 %vm224_vm0, %v903_v56  ;;  %v907_v56 = vsel %vm9482_vm15, %v9486_v52, 0.0  ;;  %vm9519_vm15 = vcmp.ne.s32.totalorder %v346_v57, 15  ;;  %v9535_v57 = vld [vmem:[#allocation2 + $0x21] sm:$0xff] }
  0x92   : > { %v11747_v54 = vsel %vm9519_vm15, 4294967295, %v11746_v54  ;;  %11753 = vst [vmem:[#allocation42_spill] sm:$0xff] %v9535_v57  ;;  %v1687_v44 = vsel %vm9531_vm14, %v9535_v57, 0.0 }
  0x93   : > { %11748 = vst [vmem:[#allocation39_spill] sm:$0xff] %v11747_v54  ;;  %v388_v54 = vand.u32 15, %v310_v47  ;;  %v9572_v47 = vld [vmem:[#allocation2 + $0x41] sm:$0xff] }
  0x94   : > { %7990 = vmatmul.mubr.msk.f32.gmra.mrb[24].mxu0 %vm224_vm0, %v9477_v60  ;;  %11763 = vst [vmem:[#allocation48_spill] sm:$0xff] %v9572_v47 }
  0x95   : > { %7992 = vmatprep.mubr.msk.f32.mxu0 %vm224_vm0, %v905_v6  ;;  %v9508_v6 = vld [vmem:[#allocation2 + $0xef] sm:$0xff]  ;;  %vm9568_vm14 = vcmp.ne.s32.totalorder %v388_v54, 15  ;;  %v11765_v54 = vmov 0 }
  0x96   : > { %v11761_v36 = vsel %vm9568_vm14, 4294967295, %v11760_v36 }
  0x97   : > { %11762 = vst [vmem:[#allocation47_spill] sm:$0xff] %v11761_v36  ;;  %v9596_v36 = vld [vmem:[#allocation2 + $0x59] sm:$0xff] }
  0x98   : > { %7993 = vmatmul.mubr.msk.f32.gmra.mrb[26].mxu0 %vm224_vm0, %v9491_v51  ;;  %11769 = vst [vmem:[#allocation52_spill] sm:$0xff] %v9596_v36 }
  0x99   : > { %7995 = vmatprep.mubr.msk.f32.mxu0 %vm224_vm0, %v907_v56  ;;  %v1589_v56 = vld [vmem:[#allocation2 + $0x11] sm:$0xff] }
  0x9a   : > { %v1685_v50 = vsel %vm9519_vm15, %v1589_v56, 0.0  ;;  %vm9552_vm15 = vcmp.ne.s32.totalorder %v374_v35, 15  ;;  %v9556_v56 = vld [vmem:[#allocation2 + $0x31] sm:$0xff]  ;;  %v9566_v35 = vld [vmem:[#allocation2 + $0x39] sm:$0xff] }
  0x9b   : > { %v11756_v43 = vsel %vm9552_vm15, 4294967295, %v11755_v43  ;;  %11758 = vst [vmem:[#allocation45_spill] sm:$0xff] %v9556_v56  ;;  %11759 = vst [vmem:[#allocation46_spill] sm:$0xff] %v9566_v35 }
  0x9c   : > { %7996 = vmatmul.mubr.msk.f32.gmra.mrb[28].mxu0 %vm224_vm0, %v9508_v6  ;;  %11757 = vst [vmem:[#allocation44_spill] sm:$0xff] %v11756_v43  ;;  %v9581_v43 = vld [vmem:[#allocation2 + $0x49] sm:$0xff] }
  0x9d   : > { %7998 = vmatprep.mubr.msk.f32.mxu0 %vm224_vm0, %v909_v48  ;;  %v9529_v48 = vld [vmem:[#allocation2 + $0x19] sm:$0xff]  ;;  %11764 = vst [vmem:[#allocation49_spill] sm:$0xff] %v9581_v43 }
  0x9e   : > { %11749 = vst [vmem:[#allocation40_spill] sm:$0xff] %v9529_v48 }
  0xa0   : > { %7999 = vmatmul.mubr.msk.f32.gmra.mrb[30].mxu0 %vm224_vm0, %v9517_v46 }
  0xa1   : > { %8003 = vmatprep.mubr.msk.f32.mxu0 %vm224_vm0, %v1588_v45  ;;  %v9550_v45 = vld [vmem:[#allocation2 + $0x29] sm:$0xff] }
  0xa2   : > { %11754 = vst [vmem:[#allocation43_spill] sm:$0xff] %v9550_v45 }
  0xa4   : > { %8004 = vmatmul.mubr.msk.f32.vlgmr.msra.gmra.mrb[0].mxu0 %vm224_vm0, %v1685_v50  ;;  %v312_v50 = vadd.s32 72, %v9248_v62 }
  0xa5   : > { %8052 = vmatpush3.msra.mxu0 %v9306_v24  ;;  %8006 = vmatprep.mubr.msk.f32.mxu0 %vm224_vm0, %v9529_v48  ;;  %v1689_v24 = vsel %vm9552_vm15, %v9556_v56, 0.0  ;;  %v314_v48 = vadd.s32 88, %v9248_v62  ;;  %v9587_v56 = vld [vmem:[#allocation2 + $0x51] sm:$0xff] }
  0xa6   : > { %8101 = vmatprep.subr.mxu0 %v9541_v34  ;;  %v402_v57 = vand.u32 15, %v312_v50  ;;  %11768 = vst [vmem:[#allocation51_spill] sm:$0xff] %v9587_v56 }
  0xa7   : > { %v416_v50 = vand.u32 15, %v314_v48 }
  0xa8   : > { %8007 = vmatmul.mubr.msk.f32.gmra.mrb[2].mxu0 %vm224_vm0, %v1687_v44  ;;  %v1691_v44 = vsel %vm9568_vm14, %v9572_v47, 0.0  ;;  %vm9583_vm15 = vcmp.ne.s32.totalorder %v402_v57, 15  ;;  %v11770_v57 = vmov 0  ;;  %v9602_v47 = vld [vmem:[#allocation2 + $0x61] sm:$0xff] }
  0xa9   : > { %8009 = vmatprep.mubr.msk.f32.mxu0 %vm224_vm0, %v9550_v45  ;;  %v11766_v54 = vsel %vm9583_vm15, 4294967295, %v11765_v54  ;;  %v316_v45 = vadd.s32 104, %v9248_v62  ;;  %vm9598_vm14 = vcmp.ne.s32.totalorder %v416_v50, 15  ;;  %11773 = vst [vmem:[#allocation54_spill] sm:$0xff] %v9602_v47  ;;  %v11775_v50 = vmov 0 }
  0xaa   : > { %11767 = vst [vmem:[#allocation50_spill] sm:$0xff] %v11766_v54  ;;  %v11771_v57 = vsel %vm9598_vm14, 4294967295, %v11770_v57  ;;  %v9611_v54 = vld [vmem:[#allocation2 + $0x69] sm:$0xff] }
  0xab   : > { %11772 = vst [vmem:[#allocation53_spill] sm:$0xff] %v11771_v57  ;;  %v430_v48 = vand.u32 15, %v316_v45  ;;  %11774 = vst [vmem:[#allocation55_spill] sm:$0xff] %v9611_v54  ;;  %v9626_v57 = vld [vmem:[#allocation2 + $0x79] sm:$0xff] }
  0xac   : > { %8010 = vmatmul.mubr.msk.f32.gmra.mrb[4].mxu0 %vm224_vm0, %v1689_v24  ;;  %v1693_v24 = vsel %vm9583_vm15, %v9587_v56, 0.0  ;;  %v9617_v56 = vld [vmem:[#allocation2 + $0x71] sm:$0xff]  ;;  %11779 = vst [vmem:[#allocation58_spill] sm:$0xff] %v9626_v57 }
  0xad   : > { %8012 = vmatprep.mubr.msk.f32.mxu0 %vm224_vm0, %v9566_v35  ;;  %v318_v35 = vadd.s32 120, %v9248_v62  ;;  %vm9613_vm15 = vcmp.ne.s32.totalorder %v430_v48, 15  ;;  %11778 = vst [vmem:[#allocation57_spill] sm:$0xff] %v9617_v56  ;;  %v11780_v48 = vmov 0 }
  0xae   : > { %v11776_v50 = vsel %vm9613_vm15, 4294967295, %v11775_v50 }
  0xaf   : > { %11777 = vst [vmem:[#allocation56_spill] sm:$0xff] %v11776_v50  ;;  %v444_v45 = vand.u32 15, %v318_v35  ;;  %v9641_v50 = vld [vmem:[#allocation2 + $0x89] sm:$0xff] }
  0xb0   : > { %8013 = vmatmul.mubr.msk.f32.gmra.mrb[6].mxu0 %vm224_vm0, %v1691_v44  ;;  %v1695_v44 = vsel %vm9598_vm14, %v9602_v47, 0.0  ;;  %v9632_v47 = vld [vmem:[#allocation2 + $0x81] sm:$0xff]  ;;  %11784 = vst [vmem:[#allocation61_spill] sm:$0xff] %v9641_v50 }
  0xb1   : > { %8015 = vmatprep.mubr.msk.f32.mxu0 %vm224_vm0, %v9581_v43  ;;  %v320_v43 = vadd.s32 136, %v9248_v62  ;;  %vm9628_vm14 = vcmp.ne.s32.totalorder %v444_v45, 15  ;;  %11783 = vst [vmem:[#allocation60_spill] sm:$0xff] %v9632_v47  ;;  %v11785_v45 = vmov 0 }
  0xb2   : > { %v11781_v48 = vsel %vm9628_vm14, 4294967295, %v11780_v48 }
  0xb3   : > { %11782 = vst [vmem:[#allocation59_spill] sm:$0xff] %v11781_v48  ;;  %v458_v35 = vand.u32 15, %v320_v43  ;;  %v9656_v48 = vld [vmem:[#allocation2 + $0x99] sm:$0xff] }
  0xb4   : > { %8016 = vmatmul.mubr.msk.f32.gmra.mrb[8].mxu0 %vm224_vm0, %v1693_v24  ;;  %v1697_v24 = vsel %vm9613_vm15, %v9617_v56, 0.0  ;;  %v9647_v56 = vld [vmem:[#allocation2 + $0x91] sm:$0xff]  ;;  %11789 = vst [vmem:[#allocation64_spill] sm:$0xff] %v9656_v48 }
  0xb5   : > { %8018 = vmatprep.mubr.msk.f32.mxu0 %vm224_vm0, %v9596_v36  ;;  %v322_v36 = vadd.s32 152, %v9248_v62  ;;  %vm9643_vm15 = vcmp.ne.s32.totalorder %v458_v35, 15  ;;  %11788 = vst [vmem:[#allocation63_spill] sm:$0xff] %v9647_v56  ;;  %v11790_v35 = vmov 0 }
  0xb6   : > { %v11786_v45 = vsel %vm9643_vm15, 4294967295, %v11785_v45 }
  0xb7   : > { %11787 = vst [vmem:[#allocation62_spill] sm:$0xff] %v11786_v45  ;;  %v472_v43 = vand.u32 15, %v322_v36  ;;  %v9671_v45 = vld [vmem:[#allocation2 + $0xa9] sm:$0xff] }
  0xb8   : > { %8019 = vmatmul.mubr.msk.f32.gmra.mrb[10].mxu0 %vm224_vm0, %v1695_v44  ;;  %v1699_v44 = vsel %vm9628_vm14, %v9632_v47, 0.0  ;;  %v9662_v47 = vld [vmem:[#allocation2 + $0xa1] sm:$0xff]  ;;  %11794 = vst [vmem:[#allocation67_spill] sm:$0xff] %v9671_v45 }
  0xb9   : > { %8021 = vmatprep.mubr.msk.f32.mxu0 %vm224_vm0, %v9611_v54  ;;  %v324_v54 = vadd.s32 168, %v9248_v62  ;;  %vm9658_vm14 = vcmp.ne.s32.totalorder %v472_v43, 15  ;;  %11793 = vst [vmem:[#allocation66_spill] sm:$0xff] %v9662_v47  ;;  %v11795_v43 = vmov 0 }
  0xba   : > { %v11791_v35 = vsel %vm9658_vm14, 4294967295, %v11790_v35 }
  0xbb   : > { %11792 = vst [vmem:[#allocation65_spill] sm:$0xff] %v11791_v35  ;;  %v486_v36 = vand.u32 15, %v324_v54  ;;  %v9686_v35 = vld [vmem:[#allocation2 + $0xb9] sm:$0xff] }
  0xbc   : > { %8022 = vmatmul.mubr.msk.f32.gmra.mrb[12].mxu0 %vm224_vm0, %v1697_v24  ;;  %v1701_v24 = vsel %vm9643_vm15, %v9647_v56, 0.0  ;;  %v9677_v56 = vld [vmem:[#allocation2 + $0xb1] sm:$0xff]  ;;  %11799 = vst [vmem:[#allocation70_spill] sm:$0xff] %v9686_v35 }
  0xbd   : > { %8024 = vmatprep.mubr.msk.f32.mxu0 %vm224_vm0, %v9626_v57  ;;  %v326_v57 = vadd.s32 184, %v9248_v62  ;;  %vm9673_vm15 = vcmp.ne.s32.totalorder %v486_v36, 15  ;;  %11798 = vst [vmem:[#allocation69_spill] sm:$0xff] %v9677_v56  ;;  %v11800_v36 = vmov 0 }
  0xbe   : > { %v11796_v43 = vsel %vm9673_vm15, 4294967295, %v11795_v43 }
  0xbf   : > { %11797 = vst [vmem:[#allocation68_spill] sm:$0xff] %v11796_v43  ;;  %v500_v54 = vand.u32 15, %v326_v57  ;;  %v9701_v43 = vld [vmem:[#allocation2 + $0xc9] sm:$0xff] }
  0xc0   : > { %8025 = vmatmul.mubr.msk.f32.gmra.mrb[14].mxu0 %vm224_vm0, %v1699_v44  ;;  %v1703_v44 = vsel %vm9658_vm14, %v9662_v47, 0.0  ;;  %v9692_v47 = vld [vmem:[#allocation2 + $0xc1] sm:$0xff] }
  0xc1   : > { %8027 = vmatprep.mubr.msk.f32.mxu0 %vm224_vm0, %v9641_v50  ;;  %v328_v50 = vadd.s32 200, %v9248_v62  ;;  %vm9688_vm14 = vcmp.ne.s32.totalorder %v500_v54, 15  ;;  %11803 = vst [vmem:[#allocation72_spill] sm:$0xff] %v9692_v47  ;;  %v11804_v54 = vmov 0 }
  0xc2   : > { %v11801_v36 = vsel %vm9688_vm14, 4294967295, %v11800_v36 }
  0xc3   : > { %11802 = vst [vmem:[#allocation71_spill] sm:$0xff] %v11801_v36  ;;  %v514_v57 = vand.u32 15, %v328_v50  ;;  %v9716_v36 = vld [vmem:[#allocation2 + $0xd9] sm:$0xff] }
  0xc4   : > { %8028 = vmatmul.mubr.msk.f32.gmra.mrb[16].mxu0 %vm224_vm0, %v1701_v24  ;;  %v1705_v24 = vsel %vm9673_vm15, %v9677_v56, 0.0  ;;  %v9707_v56 = vld [vmem:[#allocation2 + $0xd1] sm:$0xff] }
  0xc5   : > { %8030 = vmatprep.mubr.msk.f32.mxu0 %vm224_vm0, %v9656_v48  ;;  %v330_v48 = vadd.s32 216, %v9248_v62  ;;  %vm9703_vm15 = vcmp.ne.s32.totalorder %v514_v57, 15  ;;  %11807 = vst [vmem:[#allocation74_spill] sm:$0xff] %v9707_v56  ;;  %v11808_v57 = vmov 0 }
  0xc6   : > { %v11805_v54 = vsel %vm9703_vm15, 4294967295, %v11804_v54 }
  0xc7   : > { %11806 = vst [vmem:[#allocation73_spill] sm:$0xff] %v11805_v54  ;;  %v528_v50 = vand.u32 15, %v330_v48  ;;  %v9731_v54 = vld [vmem:[#allocation2 + $0xe9] sm:$0xff] }
  0xc8   : > { %8031 = vmatmul.mubr.msk.f32.gmra.mrb[18].mxu0 %vm224_vm0, %v1703_v44  ;;  %v1707_v44 = vsel %vm9688_vm14, %v9692_v47, 0.0  ;;  %v9722_v47 = vld [vmem:[#allocation2 + $0xe1] sm:$0xff] }
  0xc9   : > { %8033 = vmatprep.mubr.msk.f32.mxu0 %vm224_vm0, %v9671_v45  ;;  %v332_v45 = vadd.s32 232, %v9248_v62  ;;  %vm9718_vm14 = vcmp.ne.s32.totalorder %v528_v50, 15  ;;  %v11811_v50 = vmov 0 }
  0xca   : > { %v11809_v57 = vsel %vm9718_vm14, 4294967295, %v11808_v57 }
  0xcb   : > { %11810 = vst [vmem:[#allocation75_spill] sm:$0xff] %v11809_v57  ;;  %v542_v48 = vand.u32 15, %v332_v45  ;;  %v11814_v57 = vmov 0 }
  0xcc   : > { %8034 = vmatmul.mubr.msk.f32.gmra.mrb[20].mxu0 %vm224_vm0, %v1705_v24  ;;  %v1709_v24 = vsel %vm9703_vm15, %v9707_v56, 0.0  ;;  %v9737_v56 = vld [vmem:[#allocation2 + $0xf1] sm:$0xff] }
  0xcd   : > { %8036 = vmatprep.mubr.msk.f32.mxu0 %vm224_vm0, %v9686_v35  ;;  %v334_v35 = vadd.s32 248, %v9248_v62  ;;  %vm9733_vm15 = vcmp.ne.s32.totalorder %v542_v48, 15  ;;  %v9751_v48 = vld [vmem:[#allocation2 + $0x101] sm:$0xff] }
  0xce   : > { %v11812_v50 = vsel %vm9733_vm15, 4294967295, %v11811_v50  ;;  %v1713_v62 = vsel %vm9733_vm15, %v9737_v56, 0.0 }
  0xcf   : > { %11813 = vst [vmem:[#allocation76_spill] sm:$0xff] %v11812_v50  ;;  %v556_v45 = vand.u32 15, %v334_v35  ;;  %v3330_v50 = vsel %vm9279_vm2, %v9321_v31, 0.0 }
  0xd0   : > { %8037 = vmatmul.mubr.msk.f32.gmra.mrb[22].mxu0 %vm224_vm0, %v1707_v44  ;;  %v1711_v44 = vsel %vm9718_vm14, %v9722_v47, 0.0 }
  0xd1   : > { %8039 = vmatprep.mubr.msk.f32.mxu0 %vm224_vm0, %v9701_v43  ;;  %vm9747_vm14 = vcmp.ne.s32.totalorder %v556_v45, 15  ;;  %v2105_v45 = vsel %vm9279_vm2, %v9300_v21, 0.0 }
  0xd2   : > { %v11815_v57 = vsel %vm9747_vm14, 4294967295, %v11814_v57  ;;  %v1715_v35 = vsel %vm9747_vm14, %v9751_v48, 0.0 }
  0xd4   : > { %8040 = vmatmul.mubr.msk.f32.gmra.mrb[24].mxu0 %vm224_vm0, %v1709_v24  ;;  %v9745_v24 = vld [vmem:[#allocation2 + $0xf9] sm:$0xff] }
  0xd5   : > { %8042 = vmatprep.mubr.msk.f32.mxu0 %vm224_vm0, %v9716_v36 }
  0xd8   : > { %8043 = vmatmul.mubr.msk.f32.gmra.mrb[26].mxu0 %vm224_vm0, %v1711_v44  ;;  %v2103_v44 = vsel %vm9271_vm1, %v9287_v15, 0.0  ;;  %v2107_v15 = vsel %vm9296_vm3, %v9321_v31, 0.0  ;;  %v3334_v31 = vsel %vm9317_vm4, %v9351_v4, 0.0 }
  0xd9   : > { %8045 = vmatprep.mubr.msk.f32.mxu0 %vm224_vm0, %v9731_v54 }
  0xdc   : > { %8046 = vmatmul.mubr.msk.f32.gmra.mrb[28].mxu0 %vm224_vm0, %v1713_v62  ;;  %v7112_v62 = vld [vmem:[%s11442_s1 + $0x28] sm:$0xff] }
  0xdd   : > { %8048 = vmatprep.mubr.msk.f32.mxu0 %vm224_vm0, %v9745_v24 }
  0xe0   : > { %8049 = vmatmul.mubr.msk.f32.gmra.mrb[30].mxu0 %vm224_vm0, %v1715_v35  ;;  %v2109_v35 = vsel %vm9317_vm4, %v9336_v40, 0.0 }
  0xe1   : > { %8053 = vmatprep.mubr.msk.f32.mxu0 %vm224_vm0, %v2103_v44  ;;  %v2115_v44 = vsel %vm9362_vm7, %v9381_v32, 0.0 }
  0xe4   : > { %8054 = vmatmul.mubr.msk.f32.vlgmr.msra.gmra.mrb[0].mxu0 %vm224_vm0, %v9311_v25  ;;  %v2113_v25 = vsel %vm9347_vm6, %v9366_v17, 0.0 }
  0xe5   : > { %8102 = vmatpush3.msra.mxu0 %v9541_v34  ;;  %8056 = vmatprep.mubr.msk.f32.mxu0 %vm224_vm0, %v2105_v45  ;;  %v2111_v34 = vsel %vm9332_vm5, %v9351_v4, 0.0  ;;  %v2117_v45 = vsel %vm9377_vm8, %v9396_v5, 0.0  ;;  %v3342_v4 = vsel %vm9377_vm8, %v9411_v37, 0.0  ;;  %vm11899_vm8 = vnez %v11733_v8 }
  0xe6   : > { %8151 = vmatprep.subr.mxu0 %v7112_v62 }
  0xe8   : > { %8057 = vmatmul.mubr.msk.f32.gmra.mrb[2].mxu0 %vm224_vm0, %v9327_v9 }
  0xe9   : > { %8059 = vmatprep.mubr.msk.f32.mxu0 %vm224_vm0, %v2107_v15  ;;  %v2119_v15 = vsel %vm9392_vm9, %v9411_v37, 0.0  ;;  %v3716_v37 = vld [vmem:[#allocation2 + $0x30] sm:$0xff] }
  0xec   : > { %8060 = vmatmul.mubr.msk.f32.gmra.mrb[4].mxu0 %vm224_vm0, %v9342_v59 }
  0xed   : > { %8062 = vmatprep.mubr.msk.f32.mxu0 %vm224_vm0, %v2109_v35  ;;  %v2121_v35 = vsel %vm9407_vm10, %v9426_v7, 0.0 }
  0xf0   : > { %8063 = vmatmul.mubr.msk.f32.gmra.mrb[6].mxu0 %vm224_vm0, %v9357_v11 }
  0xf1   : > { %8065 = vmatprep.mubr.msk.f32.mxu0 %vm224_vm0, %v2111_v34  ;;  %v2123_v34 = vsel %vm9422_vm11, %v9441_v0, 0.0  ;;  %vm11816_vm11 = vnez %v11739_v2 }
  0xf4   : > { %8066 = vmatmul.mubr.msk.f32.gmra.mrb[8].mxu0 %vm224_vm0, %v9372_v22 }
  0xf5   : > { %8068 = vmatprep.mubr.msk.f32.mxu0 %vm224_vm0, %v2113_v25  ;;  %v2125_v25 = vsel %vm9437_vm12, %v9456_v58, 0.0  ;;  %vm11817_vm12 = vnez %v11741_v53 }
  0xf8   : > { %8069 = vmatmul.mubr.msk.f32.gmra.mrb[10].mxu0 %vm224_vm0, %v9387_v41 }
  0xf9   : > { %8071 = vmatprep.mubr.msk.f32.mxu0 %vm224_vm0, %v2115_v44  ;;  %v2127_v44 = vsel %vm9452_vm13, %v9471_v55, 0.0  ;;  %vm11818_vm13 = vnez %v11743_v61 }
  0xfc   : > { %8072 = vmatmul.mubr.msk.f32.gmra.mrb[12].mxu0 %vm224_vm0, %v9402_v18 }
  0xfd   : > { %8074 = vmatprep.mubr.msk.f32.mxu0 %vm224_vm0, %v2117_v45  ;;  %v2129_v45 = vsel %vm11816_vm11, %v9486_v52, 0.0 }
 0x100   : > { %8075 = vmatmul.mubr.msk.f32.gmra.mrb[14].mxu0 %vm224_vm0, %v9417_v42 }
 0x101   : > { %8077 = vmatprep.mubr.msk.f32.mxu0 %vm224_vm0, %v2119_v15  ;;  %v2131_v15 = vsel %vm11817_vm12, %v9501_v49, 0.0 }
 0x104   : > { %8078 = vmatmul.mubr.msk.f32.gmra.mrb[16].mxu0 %vm224_vm0, %v9432_v19 }
 0x105   : > { %8080 = vmatprep.mubr.msk.f32.mxu0 %vm224_vm0, %v2121_v35  ;;  %v9849_v35 = vld [vmem:[#allocation2 + $0x107] sm:$0xff] }
 0x108   : > { %8081 = vmatmul.mubr.msk.f32.gmra.mrb[18].mxu0 %vm224_vm0, %v9447_v12 }
 0x109   : > { %8083 = vmatprep.mubr.msk.f32.mxu0 %vm224_vm0, %v2123_v34  ;;  %v2133_v34 = vsel %vm11818_vm13, %v9849_v35, 0.0 }
 0x10c   : > { %8084 = vmatmul.mubr.msk.f32.gmra.mrb[20].mxu0 %vm224_vm0, %v9462_v1 }
 0x10d   : > { %8086 = vmatprep.mubr.msk.f32.mxu0 %vm224_vm0, %v2125_v25  ;;  %v9860_v25 = vld [vmem:[#allocation2 + $0x10f] sm:$0xff] }
 0x10e   : > { %11819 = vst [vmem:[#allocation77_spill] sm:$0xff] %v9860_v25 }
 0x110   : > { %8087 = vmatmul.mubr.msk.f32.gmra.mrb[22].mxu0 %vm224_vm0, %v9477_v60 }
 0x111   : > { %8089 = vmatprep.mubr.msk.f32.mxu0 %vm224_vm0, %v2127_v44  ;;  %v7145_v44 = vld [vmem:[%s11442_s1 + $0x30] sm:$0xff] }
 0x114   : > { %8090 = vmatmul.mubr.msk.f32.gmra.mrb[24].mxu0 %vm224_vm0, %v9491_v51 }
 0x115   : > { %8092 = vmatprep.mubr.msk.f32.mxu0 %vm224_vm0, %v2129_v45  ;;  %v11820_v45 = vld [vmem:[#allocation7_spill] sm:$0xff] }
 0x118   : > { %8093 = vmatmul.mubr.msk.f32.gmra.mrb[26].mxu0 %vm224_vm0, %v9508_v6 }
 0x119   : > { %8095 = vmatprep.mubr.msk.f32.mxu0 %vm224_vm0, %v2131_v15  ;;  %v11821_v15 = vld [vmem:[#allocation8_spill] sm:$0xff] }
 0x11c   : > { %8096 = vmatmul.mubr.msk.f32.gmra.mrb[28].mxu0 %vm224_vm0, %v9517_v46 }
 0x11d   : > { %8098 = vmatprep.mubr.msk.f32.mxu0 %vm224_vm0, %v2133_v34  ;;  %v11823_v34 = vld [vmem:[#allocation10_spill] sm:$0xff] }
 0x120   : > { %8099 = vmatmul.mubr.msk.f32.gmra.mrb[30].mxu0 %vm224_vm0, %v9860_v25  ;;  %v11854_v25 = vld [vmem:[#allocation41_spill] sm:$0xff] }
 0x121   : > { %8103 = vmatprep.mubr.msk.f32.mxu0 %vm224_vm0, %v9133_v28  ;;  %v11822_v28 = vld [vmem:[#allocation9_spill] sm:$0xff]  ;;  %vm11855_vm12 = vnez %v11854_v25 }
 0x124   : > { %8104 = vmatmul.mubr.msk.f32.vlgmr.msra.gmra.mrb[0].mxu0 %vm224_vm0, %v9135_v29  ;;  %v11824_v29 = vld [vmem:[#allocation11_spill] sm:$0xff] }
 0x125   : > { %8152 = vmatpush3.msra.mxu0 %v7112_v62  ;;  %8106 = vmatprep.mubr.msk.f32.mxu0 %vm224_vm0, %v9137_v30  ;;  %v11825_v30 = vld [vmem:[#allocation12_spill] sm:$0xff]  ;;  %v11826_v62 = vld [vmem:[#allocation13_spill] sm:$0xff] }
 0x126   : > { %8201 = vmatprep.subr.mxu0 %v7145_v44 }
 0x128   : > { %8107 = vmatmul.mubr.msk.f32.gmra.mrb[2].mxu0 %vm224_vm0, %v9150_v33  ;;  %v11827_v33 = vld [vmem:[#allocation14_spill] sm:$0xff] }
 0x129   : > { %8109 = vmatprep.mubr.msk.f32.mxu0 %vm224_vm0, %v11820_v45  ;;  %v11828_v45 = vld [vmem:[#allocation15_spill] sm:$0xff] }
 0x12c   : > { %8110 = vmatmul.mubr.msk.f32.gmra.mrb[4].mxu0 %vm224_vm0, %v11821_v15  ;;  %v11829_v15 = vld [vmem:[#allocation16_spill] sm:$0xff] }
 0x12d   : > { %8112 = vmatprep.mubr.msk.f32.mxu0 %vm224_vm0, %v11822_v28  ;;  %v11830_v28 = vld [vmem:[#allocation17_spill] sm:$0xff] }
 0x130   : > { %8113 = vmatmul.mubr.msk.f32.gmra.mrb[6].mxu0 %vm224_vm0, %v11823_v34  ;;  %v11831_v34 = vld [vmem:[#allocation18_spill] sm:$0xff] }
 0x131   : > { %8115 = vmatprep.mubr.msk.f32.mxu0 %vm224_vm0, %v11824_v29  ;;  %v11832_v29 = vld [vmem:[#allocation19_spill] sm:$0xff] }
 0x134   : > { %8116 = vmatmul.mubr.msk.f32.gmra.mrb[8].mxu0 %vm224_vm0, %v11825_v30  ;;  %v11833_v30 = vld [vmem:[#allocation20_spill] sm:$0xff] }
 0x135   : > { %8118 = vmatprep.mubr.msk.f32.mxu0 %vm224_vm0, %v11826_v62  ;;  %v11834_v62 = vld [vmem:[#allocation21_spill] sm:$0xff] }
 0x138   : > { %8119 = vmatmul.mubr.msk.f32.gmra.mrb[10].mxu0 %vm224_vm0, %v11827_v33  ;;  %v11835_v33 = vld [vmem:[#allocation22_spill] sm:$0xff] }
 0x139   : > { %8121 = vmatprep.mubr.msk.f32.mxu0 %vm224_vm0, %v11828_v45  ;;  %v11836_v45 = vld [vmem:[#allocation23_spill] sm:$0xff] }
 0x13c   : > { %8122 = vmatmul.mubr.msk.f32.gmra.mrb[12].mxu0 %vm224_vm0, %v11829_v15  ;;  %v11837_v15 = vld [vmem:[#allocation24_spill] sm:$0xff] }
 0x13d   : > { %8124 = vmatprep.mubr.msk.f32.mxu0 %vm224_vm0, %v11830_v28  ;;  %v11838_v28 = vld [vmem:[#allocation25_spill] sm:$0xff] }
 0x140   : > { %8125 = vmatmul.mubr.msk.f32.gmra.mrb[14].mxu0 %vm224_vm0, %v11831_v34  ;;  %v11839_v34 = vld [vmem:[#allocation26_spill] sm:$0xff] }
 0x141   : > { %8127 = vmatprep.mubr.msk.f32.mxu0 %vm224_vm0, %v11832_v29  ;;  %v11840_v29 = vld [vmem:[#allocation27_spill] sm:$0xff] }
 0x144   : > { %8128 = vmatmul.mubr.msk.f32.gmra.mrb[16].mxu0 %vm224_vm0, %v11833_v30  ;;  %v11841_v30 = vld [vmem:[#allocation28_spill] sm:$0xff] }
 0x145   : > { %8130 = vmatprep.mubr.msk.f32.mxu0 %vm224_vm0, %v11834_v62  ;;  %v11842_v62 = vld [vmem:[#allocation29_spill] sm:$0xff] }
 0x148   : > { %8131 = vmatmul.mubr.msk.f32.gmra.mrb[18].mxu0 %vm224_vm0, %v11835_v33  ;;  %v11843_v33 = vld [vmem:[#allocation30_spill] sm:$0xff] }
 0x149   : > { %8133 = vmatprep.mubr.msk.f32.mxu0 %vm224_vm0, %v11836_v45  ;;  %v11844_v45 = vld [vmem:[#allocation31_spill] sm:$0xff] }
 0x14c   : > { %8134 = vmatmul.mubr.msk.f32.gmra.mrb[20].mxu0 %vm224_vm0, %v11837_v15  ;;  %v9925_v15 = vld [vmem:[#allocation2 + $0x108] sm:$0xff] }
 0x14d   : > { %8136 = vmatprep.mubr.msk.f32.mxu0 %vm224_vm0, %v11838_v28  ;;  %11845 = vst [vmem:[#allocation7_spill] sm:$0xff] %v9925_v15  ;;  %v11846_v28 = vld [vmem:[#allocation33_spill] sm:$0xff] }
 0x150   : > { %8137 = vmatmul.mubr.msk.f32.gmra.mrb[22].mxu0 %vm224_vm0, %v11839_v34  ;;  %v9931_v34 = vld [vmem:[#allocation2 + $0x110] sm:$0xff] }
 0x151   : > { %8139 = vmatprep.mubr.msk.f32.mxu0 %vm224_vm0, %v11840_v29  ;;  %11847 = vst [vmem:[#allocation8_spill] sm:$0xff] %v9931_v34  ;;  %v11848_v29 = vld [vmem:[#allocation40_spill] sm:$0xff] }
 0x154   : > { %8140 = vmatmul.mubr.msk.f32.gmra.mrb[24].mxu0 %vm224_vm0, %v11841_v30  ;;  %v11849_v30 = vld [vmem:[#allocation42_spill] sm:$0xff] }
 0x155   : > { %8142 = vmatprep.mubr.msk.f32.mxu0 %vm224_vm0, %v11842_v62  ;;  %v11850_v62 = vld [vmem:[#allocation39_spill] sm:$0xff] }
 0x156   : > { %vm11851_vm13 = vnez %v11850_v62  ;;  %v11858_v62 = vld [vmem:[#allocation44_spill] sm:$0xff] }
 0x158   : > { %8143 = vmatmul.mubr.msk.f32.gmra.mrb[26].mxu0 %vm224_vm0, %v11843_v33  ;;  %v2910_v33 = vsel %vm11851_vm13, %v11849_v30, 0.0  ;;  %v11857_v30 = vld [vmem:[#allocation48_spill] sm:$0xff]  ;;  %vm11859_vm13 = vnez %v11858_v62  ;;  %v11868_v62 = vld [vmem:[#allocation55_spill] sm:$0xff] }
 0x159   : > { %8145 = vmatprep.mubr.msk.f32.mxu0 %vm224_vm0, %v11844_v45  ;;  %v7178_v45 = vld [vmem:[%s11442_s1 + $0x38] sm:$0xff]  ;;  %v2914_v61 = vsel %vm11859_vm13, %v11857_v30, 0.0 }
 0x15c   : > { %8146 = vmatmul.mubr.msk.f32.gmra.mrb[28].mxu0 %vm224_vm0, %v11846_v28  ;;  %v11852_v28 = vld [vmem:[#allocation43_spill] sm:$0xff] }
 0x15d   : > { %8148 = vmatprep.mubr.msk.f32.mxu0 %vm224_vm0, %v9925_v15  ;;  %v11853_v15 = vld [vmem:[#allocation45_spill] sm:$0xff] }
 0x160   : > { %8149 = vmatmul.mubr.msk.f32.gmra.mrb[30].mxu0 %vm224_vm0, %v9931_v34  ;;  %v2912_v34 = vsel %vm11855_vm12, %v11853_v15, 0.0  ;;  %v11864_v15 = vld [vmem:[#allocation52_spill] sm:$0xff] }
 0x161   : > { %8153 = vmatprep.mubr.msk.f32.mxu0 %vm224_vm0, %v11848_v29  ;;  %v11856_v29 = vld [vmem:[#allocation46_spill] sm:$0xff] }
 0x164   : > { %8154 = vmatmul.mubr.msk.f32.vlgmr.msra.gmra.mrb[0].mxu0 %vm224_vm0, %v2910_v33  ;;  %v11861_v33 = vld [vmem:[#allocation51_spill] sm:$0xff] }
 0x165   : > { %8202 = vmatpush3.msra.mxu0 %v7145_v44  ;;  %8156 = vmatprep.mubr.msk.f32.mxu0 %vm224_vm0, %v11852_v28  ;;  %v11860_v44 = vld [vmem:[#allocation49_spill] sm:$0xff]  ;;  %v11862_v28 = vld [vmem:[#allocation47_spill] sm:$0xff] }
 0x166   : > { %8251 = vmatprep.subr.mxu0 %v7178_v45  ;;  %vm11863_vm11 = vnez %v11862_v28  ;;  %v11872_v28 = vld [vmem:[#allocation58_spill] sm:$0xff] }
 0x167   : > { %v2916_v25 = vsel %vm11863_vm11, %v11861_v33, 0.0 }
 0x168   : > { %8157 = vmatmul.mubr.msk.f32.gmra.mrb[2].mxu0 %vm224_vm0, %v2912_v34  ;;  %v11865_v34 = vld [vmem:[#allocation54_spill] sm:$0xff] }
 0x169   : > { %8159 = vmatprep.mubr.msk.f32.mxu0 %vm224_vm0, %v11856_v29  ;;  %v11866_v29 = vld [vmem:[#allocation50_spill] sm:$0xff] }
 0x16a   : > { %vm11867_vm12 = vnez %v11866_v29  ;;  %v11876_v29 = vld [vmem:[#allocation61_spill] sm:$0xff] }
 0x16b   : > { %v2918_v46 = vsel %vm11867_vm12, %v11865_v34, 0.0 }
 0x16c   : > { %8160 = vmatmul.mubr.msk.f32.gmra.mrb[4].mxu0 %vm224_vm0, %v2914_v61  ;;  %v11869_v61 = vld [vmem:[#allocation57_spill] sm:$0xff] }
 0x16d   : > { %8162 = vmatprep.mubr.msk.f32.mxu0 %vm224_vm0, %v11860_v44  ;;  %v11870_v44 = vld [vmem:[#allocation53_spill] sm:$0xff] }
 0x16e   : > { %vm11871_vm13 = vnez %v11870_v44  ;;  %v11880_v44 = vld [vmem:[#allocation64_spill] sm:$0xff] }
 0x16f   : > { %v2920_v30 = vsel %vm11871_vm13, %v11869_v61, 0.0 }
 0x170   : > { %8163 = vmatmul.mubr.msk.f32.gmra.mrb[6].mxu0 %vm224_vm0, %v2916_v25  ;;  %v11873_v25 = vld [vmem:[#allocation60_spill] sm:$0xff] }
 0x171   : > { %8165 = vmatprep.mubr.msk.f32.mxu0 %vm224_vm0, %v11864_v15  ;;  %v11874_v15 = vld [vmem:[#allocation56_spill] sm:$0xff] }
 0x172   : > { %vm11875_vm11 = vnez %v11874_v15  ;;  %v11884_v15 = vld [vmem:[#allocation67_spill] sm:$0xff] }
 0x173   : > { %v2922_v33 = vsel %vm11875_vm11, %v11873_v25, 0.0 }
 0x174   : > { %8166 = vmatmul.mubr.msk.f32.gmra.mrb[8].mxu0 %vm224_vm0, %v2918_v46  ;;  %v11877_v46 = vld [vmem:[#allocation63_spill] sm:$0xff] }
 0x175   : > { %8168 = vmatprep.mubr.msk.f32.mxu0 %vm224_vm0, %v11868_v62  ;;  %v11878_v62 = vld [vmem:[#allocation59_spill] sm:$0xff] }
 0x176   : > { %vm11879_vm12 = vnez %v11878_v62  ;;  %v11888_v62 = vld [vmem:[#allocation70_spill] sm:$0xff] }
 0x177   : > { %v2924_v34 = vsel %vm11879_vm12, %v11877_v46, 0.0 }
 0x178   : > { %8169 = vmatmul.mubr.msk.f32.gmra.mrb[10].mxu0 %vm224_vm0, %v2920_v30  ;;  %v11881_v30 = vld [vmem:[#allocation66_spill] sm:$0xff] }
 0x179   : > { %8171 = vmatprep.mubr.msk.f32.mxu0 %vm224_vm0, %v11872_v28  ;;  %v11882_v28 = vld [vmem:[#allocation62_spill] sm:$0xff] }
 0x17a   : > { %vm11883_vm13 = vnez %v11882_v28  ;;  %v11893_v28 = vld [vmem:[#allocation71_spill] sm:$0xff] }
 0x17b   : > { %v2926_v61 = vsel %vm11883_vm13, %v11881_v30, 0.0  ;;  %vm11894_vm13 = vnez %v11893_v28  ;;  %v10029_v28 = vld [vmem:[#allocation2 + $0x111] sm:$0xff] }
 0x17c   : > { %8172 = vmatmul.mubr.msk.f32.gmra.mrb[12].mxu0 %vm224_vm0, %v2922_v33  ;;  %v11885_v33 = vld [vmem:[#allocation69_spill] sm:$0xff] }
 0x17d   : > { %8174 = vmatprep.mubr.msk.f32.mxu0 %vm224_vm0, %v11876_v29  ;;  %v11886_v29 = vld [vmem:[#allocation65_spill] sm:$0xff] }
 0x17e   : > { %vm11887_vm11 = vnez %v11886_v29 }
 0x17f   : > { %v2928_v25 = vsel %vm11887_vm11, %v11885_v33, 0.0 }
 0x180   : > { %8175 = vmatmul.mubr.msk.f32.gmra.mrb[14].mxu0 %vm224_vm0, %v2924_v34  ;;  %v11889_v34 = vld [vmem:[#allocation72_spill] sm:$0xff] }
 0x181   : > { %8177 = vmatprep.mubr.msk.f32.mxu0 %vm224_vm0, %v11880_v44  ;;  %v11890_v44 = vld [vmem:[#allocation68_spill] sm:$0xff] }
 0x182   : > { %vm11891_vm12 = vnez %v11890_v44 }
 0x183   : > { %v2930_v46 = vsel %vm11891_vm12, %v11889_v34, 0.0 }
 0x184   : > { %8178 = vmatmul.mubr.msk.f32.gmra.mrb[16].mxu0 %vm224_vm0, %v2926_v61  ;;  %v11892_v61 = vld [vmem:[#allocation74_spill] sm:$0xff] }
 0x185   : > { %8180 = vmatprep.mubr.msk.f32.mxu0 %vm224_vm0, %v11884_v15  ;;  %v2932_v15 = vsel %vm11894_vm13, %v11892_v61, 0.0 }
 0x188   : > { %8181 = vmatmul.mubr.msk.f32.gmra.mrb[18].mxu0 %vm224_vm0, %v2928_v25  ;;  %v11895_v25 = vld [vmem:[#allocation73_spill] sm:$0xff] }
 0x189   : > { %8183 = vmatprep.mubr.msk.f32.mxu0 %vm224_vm0, %v11888_v62  ;;  %vm11896_vm11 = vnez %v11895_v25  ;;  %v10027_v25 = vld [vmem:[#allocation2 + $0x109] sm:$0xff] }
 0x18a   : > { %v2934_v29 = vsel %vm11896_vm11, %v9722_v47, 0.0 }
 0x18c   : > { %8184 = vmatmul.mubr.msk.f32.gmra.mrb[20].mxu0 %vm224_vm0, %v2930_v46  ;;  %v11897_v46 = vld [vmem:[#allocation75_spill] sm:$0xff] }
 0x18d   : > { %8186 = vmatprep.mubr.msk.f32.mxu0 %vm224_vm0, %v9701_v43  ;;  %vm11898_vm12 = vnez %v11897_v46 }
 0x18e   : > { %v2936_v44 = vsel %vm11898_vm12, %v9737_v56, 0.0 }
 0x190   : > { %8187 = vmatmul.mubr.msk.f32.gmra.mrb[22].mxu0 %vm224_vm0, %v2932_v15  ;;  %v2938_v15 = vsel %vm9733_vm15, %v9751_v48, 0.0 }
 0x191   : > { %8189 = vmatprep.mubr.msk.f32.mxu0 %vm224_vm0, %v9716_v36 }
 0x194   : > { %8190 = vmatmul.mubr.msk.f32.gmra.mrb[24].mxu0 %vm224_vm0, %v2934_v29  ;;  %v2940_v29 = vsel %vm9747_vm14, %v10029_v28, 0.0 }
 0x195   : > { %8192 = vmatprep.mubr.msk.f32.mxu0 %vm224_vm0, %v9731_v54 }
 0x198   : > { %8193 = vmatmul.mubr.msk.f32.gmra.mrb[26].mxu0 %vm224_vm0, %v2936_v44  ;;  %v3328_v44 = vsel %vm9271_vm1, %v9300_v21, 0.0  ;;  %v3332_v21 = vsel %vm9296_vm3, %v9336_v40, 0.0  ;;  %v3338_v40 = vsel %vm9347_vm6, %v9381_v32, 0.0  ;;  %v3326_v32 = vld [vmem:[#allocation2 + $0x117] sm:$0xff] }
 0x199   : > { %8195 = vmatprep.mubr.msk.f32.mxu0 %vm224_vm0, %v9745_v24 }
 0x19c   : > { %8196 = vmatmul.mubr.msk.f32.gmra.mrb[28].mxu0 %vm224_vm0, %v2938_v15  ;;  %v7211_v15 = vld [vmem:[%s11442_s1 + $0x40] sm:$0xff] }
 0x19d   : > { %8198 = vmatprep.mubr.msk.f32.mxu0 %vm224_vm0, %v10027_v25 }
 0x1a0   : > { %8199 = vmatmul.mubr.msk.f32.gmra.mrb[30].mxu0 %vm224_vm0, %v2940_v29  ;;  %v3725_v29 = vld [vmem:[#allocation2 + $0x78] sm:$0xff] }
 0x1a1   : > { %8203 = vmatprep.mubr.msk.f32.mxu0 %vm224_vm0, %v3328_v44  ;;  %v3726_v44 = vld [vmem:[#allocation2 + $0x80] sm:$0xff] }
 0x1a4   : > { %8204 = vmatmul.mubr.msk.f32.vlgmr.msra.gmra.mrb[0].mxu0 %vm224_vm0, %v9327_v9  ;;  %v3336_v9 = vsel %vm9332_vm5, %v9366_v17, 0.0  ;;  %v3346_v17 = vsel %vm9407_vm10, %v9441_v0, 0.0  ;;  %vm11901_vm10 = vnez %v11737_v14 }
 0x1a5   : > { %8252 = vmatpush3.msra.mxu0 %v7178_v45  ;;  %8206 = vmatprep.mubr.msk.f32.mxu0 %vm224_vm0, %v3330_v50  ;;  %v3352_v0 = vsel %vm11901_vm10, %v9486_v52, 0.0  ;;  %v11904_v52 = vld [vmem:[#allocation38_spill] sm:$0xff]  ;;  %v3722_v50 = vld [vmem:[#allocation2 + $0x60] sm:$0xff]  ;;  %v3724_v45 = vld [vmem:[#allocation2 + $0x70] sm:$0xff] }
 0x1a6   : > { %8301 = vmatprep.subr.mxu0 %v7211_v15 }
 0x1a8   : > { %8207 = vmatmul.mubr.msk.f32.gmra.mrb[2].mxu0 %vm224_vm0, %v9342_v59  ;;  %v3340_v59 = vsel %vm9362_vm7, %v9396_v5, 0.0  ;;  %v11907_v5 = vld [vmem:[#allocation77_spill] sm:$0xff] }
 0x1a9   : > { %8209 = vmatprep.mubr.msk.f32.mxu0 %vm224_vm0, %v3332_v21  ;;  %v3728_v21 = vld [vmem:[#allocation2 + $0x90] sm:$0xff] }
 0x1ac   : > { %8210 = vmatmul.mubr.msk.f32.gmra.mrb[4].mxu0 %vm224_vm0, %v9357_v11  ;;  %v3344_v11 = vsel %vm9392_vm9, %v9426_v7, 0.0  ;;  %vm11900_vm9 = vnez %v11735_v38 }
 0x1ad   : > { %8212 = vmatprep.mubr.msk.f32.mxu0 %vm224_vm0, %v3334_v31  ;;  %v3350_v7 = vsel %vm11900_vm9, %v9471_v55, 0.0  ;;  %vm11903_vm9 = vnez %v11741_v53  ;;  %v3729_v31 = vld [vmem:[#allocation2 + $0x98] sm:$0xff] }
 0x1ae   : > { %v3356_v55 = vsel %vm11903_vm9, %v9849_v35, 0.0  ;;  %v3723_v35 = vld [vmem:[#allocation2 + $0x68] sm:$0xff] }
 0x1b0   : > { %8213 = vmatmul.mubr.msk.f32.gmra.mrb[6].mxu0 %vm224_vm0, %v9372_v22  ;;  %v3348_v22 = vsel %vm11899_vm8, %v9456_v58, 0.0  ;;  %vm11902_vm8 = vnez %v11739_v2 }
 0x1b1   : > { %8215 = vmatprep.mubr.msk.f32.mxu0 %vm224_vm0, %v3336_v9  ;;  %v3354_v58 = vsel %vm11902_vm8, %v9501_v49, 0.0  ;;  %v3327_v49 = vld [vmem:[#allocation2 + $0x11f] sm:$0xff]  ;;  %vm11601_vm8 = vcmask 523264  }
 0x1b2   : > { %v3730_v9 = vld [vmem:[#allocation2 + $0xa0] sm:$0xff] }
 0x1b4   : > { %8216 = vmatmul.mubr.msk.f32.gmra.mrb[8].mxu0 %vm224_vm0, %v9387_v41 }
 0x1b5   : > { %8218 = vmatprep.mubr.msk.f32.mxu0 %vm224_vm0, %v3338_v40  ;;  %v3731_v40 = vld [vmem:[#allocation2 + $0xa8] sm:$0xff] }
 0x1b8   : > { %8219 = vmatmul.mubr.msk.f32.gmra.mrb[10].mxu0 %vm224_vm0, %v9402_v18  ;;  %v3715_v18 = vld [vmem:[#allocation2 + $0x28] sm:$0xff] }
 0x1b9   : > { %8221 = vmatprep.mubr.msk.f32.mxu0 %vm224_vm0, %v3340_v59  ;;  %v3732_v59 = vld [vmem:[#allocation2 + $0xb0] sm:$0xff] }
 0x1bc   : > { %8222 = vmatmul.mubr.msk.f32.gmra.mrb[12].mxu0 %vm224_vm0, %v9417_v42  ;;  %v11908_v42 = vmov 0.0  }
 0x1bd   : > { %8224 = vmatprep.mubr.msk.f32.mxu0 %vm224_vm0, %v3342_v4  ;;  %232 = vst.msk [vmem:[#allocation3] sm:$0xff] %vm11601_vm8, %v11908_v42  ;;  %233 = vst.msk [vmem:[#allocation3 + $0x8] sm:$0xff] %vm11601_vm8, %v11908_v42  ;;  %v3733_v4 = vld [vmem:[#allocation2 + $0xb8] sm:$0xff] }
 0x1be   : > { %234 = vst.msk [vmem:[#allocation3 + $0x10] sm:$0xff] %vm11601_vm8, %v11908_v42  ;;  %235 = vst.msk [vmem:[#allocation3 + $0x118] sm:$0xff] %vm11601_vm8, %v11908_v42 }
 0x1bf   : > { %236 = vst.msk [vmem:[#allocation3 + $0x120] sm:$0xff] %vm11601_vm8, %v11908_v42  ;;  %237 = vst.msk [vmem:[#allocation3 + $0x128] sm:$0xff] %vm11601_vm8, %v11908_v42  ;;  %v11912_v42 = vld [vmem:[#allocation45_spill] sm:$0xff] }
 0x1c0   : > { %8225 = vmatmul.mubr.msk.f32.gmra.mrb[14].mxu0 %vm224_vm0, %v9432_v19  ;;  %v3717_v19 = vld [vmem:[#allocation2 + $0x38] sm:$0xff] }
 0x1c1   : > { %8227 = vmatprep.mubr.msk.f32.mxu0 %vm224_vm0, %v3344_v11  ;;  %v3734_v11 = vld [vmem:[#allocation2 + $0xc0] sm:$0xff] }
 0x1c4   : > { %8228 = vmatmul.mubr.msk.f32.gmra.mrb[16].mxu0 %vm224_vm0, %v9447_v12  ;;  %v3718_v12 = vld [vmem:[#allocation2 + $0x40] sm:$0xff] }
 0x1c5   : > { %8230 = vmatprep.mubr.msk.f32.mxu0 %vm224_vm0, %v3346_v17  ;;  %v3735_v17 = vld [vmem:[#allocation2 + $0xc8] sm:$0xff] }
 0x1c8   : > { %8231 = vmatmul.mubr.msk.f32.gmra.mrb[18].mxu0 %vm224_vm0, %v9462_v1  ;;  %v3719_v1 = vld [vmem:[#allocation2 + $0x48] sm:$0xff] }
 0x1c9   : > { %8233 = vmatprep.mubr.msk.f32.mxu0 %vm224_vm0, %v3348_v22  ;;  %v3736_v22 = vld [vmem:[#allocation2 + $0xd0] sm:$0xff] }
 0x1cc   : > { %8234 = vmatmul.mubr.msk.f32.gmra.mrb[20].mxu0 %vm224_vm0, %v9477_v60  ;;  %v3720_v60 = vld [vmem:[#allocation2 + $0x50] sm:$0xff] }
 0x1cd   : > { %8236 = vmatprep.mubr.msk.f32.mxu0 %vm224_vm0, %v3350_v7  ;;  %v3737_v7 = vld [vmem:[#allocation2 + $0xd8] sm:$0xff] }
 0x1d0   : > { %8237 = vmatmul.mubr.msk.f32.gmra.mrb[22].mxu0 %vm224_vm0, %v9491_v51  ;;  %v11905_v51 = vld [vmem:[#allocation37_spill] sm:$0xff] }
 0x1d1   : > { %8239 = vmatprep.mubr.msk.f32.mxu0 %vm224_vm0, %v3352_v0  ;;  %vm11906_vm10 = vnez %v11905_v51  ;;  %v3738_v0 = vld [vmem:[#allocation2 + $0xe0] sm:$0xff] }
 0x1d2   : > { %v3358_v41 = vsel %vm11906_vm10, %v3326_v32, 0.0  ;;  %v3741_v32 = vld [vmem:[#allocation2 + $0xf8] sm:$0xff] }
 0x1d4   : > { %8240 = vmatmul.mubr.msk.f32.gmra.mrb[24].mxu0 %vm224_vm0, %v9508_v6  ;;  %v3721_v6 = vld [vmem:[#allocation2 + $0x58] sm:$0xff] }
 0x1d5   : > { %8242 = vmatprep.mubr.msk.f32.mxu0 %vm224_vm0, %v3354_v58  ;;  %v3739_v58 = vld [vmem:[#allocation2 + $0xe8] sm:$0xff] }
 0x1d8   : > { %8243 = vmatmul.mubr.msk.f32.gmra.mrb[26].mxu0 %vm224_vm0, %v11904_v52  ;;  %v3742_v52 = vld [vmem:[#allocation2 + $0x100] sm:$0xff] }
 0x1d9   : > { %8245 = vmatprep.mubr.msk.f32.mxu0 %vm224_vm0, %v3356_v55  ;;  %v3740_v55 = vld [vmem:[#allocation2 + $0xf0] sm:$0xff] }
 0x1dc   : > { %8246 = vmatmul.mubr.msk.f32.gmra.mrb[28].mxu0 %vm224_vm0, %v11907_v5  ;;  %v3745_v5 = vld [vmem:[#allocation2 + $0x118] sm:$0xff] }
 0x1dd   : > { %8248 = vmatprep.mubr.msk.f32.mxu0 %vm224_vm0, %v3358_v41  ;;  %v11909_v41 = vld [vmem:[#allocation7_spill] sm:$0xff] }
 0x1e0   : > { %8249 = vmatmul.mubr.msk.f32.gmra.mrb[30].mxu0 %vm224_vm0, %v3327_v49  ;;  %v11910_v49 = vld [vmem:[#allocation8_spill] sm:$0xff] }
 0x1e1   : > { %8253 = vmatprep.mubr.msk.f32.mxu0 %vm224_vm0, %v3715_v18  ;;  %v3746_v18 = vld [vmem:[#allocation2 + $0x120] sm:$0xff] }
 0x1e4   : > { %8254 = vmatmul.mubr.msk.f32.vlgmr.msra.gmra.mrb[0].mxu0 %vm224_vm0, %v3716_v37  ;;  %v11911_v37 = vld [vmem:[#allocation43_spill] sm:$0xff] }
 0x1e5   : > { %8302 = vmatpush3.msra.mxu0 %v7211_v15  ;;  %8256 = vmatprep.mubr.msk.f32.mxu0 %vm224_vm0, %v3717_v19  ;;  %v3727_v15 = vld [vmem:[#allocation2 + $0x88] sm:$0xff]  ;;  %v11913_v19 = vld [vmem:[#allocation39_spill] sm:$0xff] }
 0x1e6   : > { %vm11914_vm8 = vnez %v11913_v19 }
 0x1e8   : > { %8257 = vmatmul.mubr.msk.f32.gmra.mrb[2].mxu0 %vm224_vm0, %v3718_v12  ;;  %v4135_v12 = vsel %vm11914_vm8, %v11912_v42, 0.0 }
 0x1e9   : > { %8259 = vmatprep.mubr.msk.f32.mxu0 %vm224_vm0, %v3719_v1  ;;  %v11915_v1 = vld [vmem:[#allocation46_spill] sm:$0xff] }
 0x1ec   : > { %8260 = vmatmul.mubr.msk.f32.gmra.mrb[4].mxu0 %vm224_vm0, %v3720_v60  ;;  %v11916_v60 = vld [vmem:[#allocation48_spill] sm:$0xff] }
 0x1ed   : > { %8262 = vmatprep.mubr.msk.f32.mxu0 %vm224_vm0, %v3721_v6  ;;  %v11917_v6 = vld [vmem:[#allocation41_spill] sm:$0xff] }
 0x1ee   : > { %vm11918_vm10 = vnez %v11917_v6 }
 0x1f0   : > { %8263 = vmatmul.mubr.msk.f32.gmra.mrb[6].mxu0 %vm224_vm0, %v3722_v50  ;;  %v4137_v50 = vsel %vm11918_vm10, %v11916_v60, 0.0 }
 0x1f1   : > { %8265 = vmatprep.mubr.msk.f32.mxu0 %vm224_vm0, %v3723_v35  ;;  %v11919_v35 = vld [vmem:[#allocation49_spill] sm:$0xff] }
 0x1f4   : > { %8266 = vmatmul.mubr.msk.f32.gmra.mrb[8].mxu0 %vm224_vm0, %v3724_v45  ;;  %v11920_v45 = vld [vmem:[#allocation51_spill] sm:$0xff] }
 0x1f5   : > { %8268 = vmatprep.mubr.msk.f32.mxu0 %vm224_vm0, %v3725_v29  ;;  %v11921_v29 = vld [vmem:[#allocation44_spill] sm:$0xff] }
 0x1f6   : > { %vm11922_vm9 = vnez %v11921_v29 }
 0x1f8   : > { %8269 = vmatmul.mubr.msk.f32.gmra.mrb[10].mxu0 %vm224_vm0, %v3726_v44  ;;  %v4139_v44 = vsel %vm11922_vm9, %v11920_v45, 0.0 }
 0x1f9   : > { %8271 = vmatprep.mubr.msk.f32.mxu0 %vm224_vm0, %v3727_v15  ;;  %v11923_v15 = vld [vmem:[#allocation52_spill] sm:$0xff] }
 0x1fc   : > { %8272 = vmatmul.mubr.msk.f32.gmra.mrb[12].mxu0 %vm224_vm0, %v3728_v21  ;;  %v11924_v21 = vld [vmem:[#allocation54_spill] sm:$0xff] }
 0x1fd   : > { %8274 = vmatprep.mubr.msk.f32.mxu0 %vm224_vm0, %v3729_v31  ;;  %v11925_v31 = vld [vmem:[#allocation47_spill] sm:$0xff] }
 0x1fe   : > { %vm11926_vm7 = vnez %v11925_v31 }
 0x200   : > { %8275 = vmatmul.mubr.msk.f32.gmra.mrb[14].mxu0 %vm224_vm0, %v3730_v9  ;;  %v4141_v9 = vsel %vm11926_vm7, %v11924_v21, 0.0 }
 0x201   : > { %8277 = vmatprep.mubr.msk.f32.mxu0 %vm224_vm0, %v3731_v40  ;;  %v11927_v40 = vld [vmem:[#allocation55_spill] sm:$0xff] }
 0x204   : > { %8278 = vmatmul.mubr.msk.f32.gmra.mrb[16].mxu0 %vm224_vm0, %v3732_v59  ;;  %v11928_v59 = vld [vmem:[#allocation57_spill] sm:$0xff] }
 0x205   : > { %8280 = vmatprep.mubr.msk.f32.mxu0 %vm224_vm0, %v3733_v4  ;;  %v11929_v4 = vld [vmem:[#allocation50_spill] sm:$0xff] }
 0x206   : > { %vm11930_vm10 = vnez %v11929_v4 }
 0x208   : > { %8281 = vmatmul.mubr.msk.f32.gmra.mrb[18].mxu0 %vm224_vm0, %v3734_v11  ;;  %v4143_v11 = vsel %vm11930_vm10, %v11928_v59, 0.0 }
 0x209   : > { %8283 = vmatprep.mubr.msk.f32.mxu0 %vm224_vm0, %v3735_v17  ;;  %v11931_v17 = vld [vmem:[#allocation58_spill] sm:$0xff] }
 0x20c   : > { %8284 = vmatmul.mubr.msk.f32.gmra.mrb[20].mxu0 %vm224_vm0, %v3736_v22  ;;  %v11932_v22 = vld [vmem:[#allocation60_spill] sm:$0xff] }
 0x20d   : > { %8286 = vmatprep.mubr.msk.f32.mxu0 %vm224_vm0, %v3737_v7  ;;  %v11933_v7 = vld [vmem:[#allocation53_spill] sm:$0xff] }
 0x20e   : > { %vm11934_vm6 = vnez %v11933_v7 }
 0x210   : > { %8287 = vmatmul.mubr.msk.f32.gmra.mrb[22].mxu0 %vm224_vm0, %v3738_v0  ;;  %v4145_v0 = vsel %vm11934_vm6, %v11932_v22, 0.0 }
 0x211   : > { %8289 = vmatprep.mubr.msk.f32.mxu0 %vm224_vm0, %v3739_v58  ;;  %v11935_v58 = vld [vmem:[#allocation61_spill] sm:$0xff] }
 0x214   : > { %8290 = vmatmul.mubr.msk.f32.gmra.mrb[24].mxu0 %vm224_vm0, %v3740_v55  ;;  %v11936_v55 = vld [vmem:[#allocation63_spill] sm:$0xff] }
 0x215   : > { %8292 = vmatprep.mubr.msk.f32.mxu0 %vm224_vm0, %v3741_v32  ;;  %v11937_v32 = vld [vmem:[#allocation56_spill] sm:$0xff] }
 0x216   : > { %vm11938_vm5 = vnez %v11937_v32 }
 0x218   : > { %8293 = vmatmul.mubr.msk.f32.gmra.mrb[26].mxu0 %vm224_vm0, %v3742_v52  ;;  %v4147_v52 = vsel %vm11938_vm5, %v11936_v55, 0.0 }
 0x219   : > { %8295 = vmatprep.mubr.msk.f32.mxu0 %vm224_vm0, %v11909_v41  ;;  %v11939_v41 = vld [vmem:[#allocation64_spill] sm:$0xff] }
 0x21c   : > { %8296 = vmatmul.mubr.msk.f32.gmra.mrb[28].mxu0 %vm224_vm0, %v11910_v49 }
 0x21d   : > { %8298 = vmatprep.mubr.msk.f32.mxu0 %vm224_vm0, %v3745_v5  ;;  %v11940_v5 = vld [vmem:[#allocation59_spill] sm:$0xff] }
 0x21e   : > { %vm11941_vm10 = vnez %v11940_v5 }
 0x21f   : > { %v4149_v49 = vsel %vm11941_vm10, %v11881_v30, 0.0  ;;  %v11947_v30 = vld [vmem:[#allocation68_spill] sm:$0xff] }
 0x220   : > { %8299 = vmatmul.mubr.msk.f32.gmra.mrb[30].mxu0 %vm224_vm0, %v3746_v18  ;;  %v11942_v18 = vld [vmem:[#allocation67_spill] sm:$0xff]  ;;  %vm11948_vm10 = vnez %v11947_v30 }
 0x221   : > { %8303 = vmatprep.mubr.msk.f32.mxu0 %vm224_vm0, %v11911_v37  ;;  %v11943_v37 = vld [vmem:[#allocation62_spill] sm:$0xff]  ;;  %v4155_v60 = vsel %vm11948_vm10, %v11892_v61, 0.0 }
 0x222   : > { %vm11944_vm6 = vnez %v11943_v37  ;;  %v4132_v61 = vld [vmem:[#allocation2 + $0x119] sm:$0xff] }
 0x223   : > { %v4151_v42 = vsel %vm11944_vm6, %v11885_v33, 0.0  ;;  %v4157_v33 = vsel %vm11894_vm13, %v9722_v47, 0.0  ;;  %v11951_v47 = vld [vmem:[#allocation76_spill] sm:$0xff] }
 0x224   : > { %8304 = vmatmul.mubr.msk.f32.vlgmr.msra.gmra.mrb[0].mxu0 %vm224_vm0, %v4135_v12  ;;  %v11945_v12 = vld [vmem:[#allocation65_spill] sm:$0xff] }
 0x225   : > { %8306 = vmatprep.mubr.msk.f32.mxu0 %vm224_vm0, %v11915_v1  ;;  %vm11946_vm5 = vnez %v11945_v12 }
 0x226   : > { %v4153_v1 = vsel %vm11946_vm5, %v11889_v34, 0.0  ;;  %v4159_v34 = vsel %vm11896_vm11, %v9737_v56, 0.0  ;;  %v4133_v56 = vld [vmem:[#allocation2 + $0x121] sm:$0xff] }
 0x228   : > { %8307 = vmatmul.mubr.msk.f32.gmra.mrb[2].mxu0 %vm224_vm0, %v4137_v50 }
 0x229   : > { %8309 = vmatprep.mubr.msk.f32.mxu0 %vm224_vm0, %v11919_v35 }
 0x22c   : > { %8310 = vmatmul.mubr.msk.f32.gmra.mrb[4].mxu0 %vm224_vm0, %v4139_v44 }
 0x22d   : > { %8312 = vmatprep.mubr.msk.f32.mxu0 %vm224_vm0, %v11923_v15 }
 0x230   : > { %8313 = vmatmul.mubr.msk.f32.gmra.mrb[6].mxu0 %vm224_vm0, %v4141_v9 }
 0x231   : > { %8315 = vmatprep.mubr.msk.f32.mxu0 %vm224_vm0, %v11927_v40 }
 0x234   : > { %8316 = vmatmul.mubr.msk.f32.gmra.mrb[8].mxu0 %vm224_vm0, %v4143_v11 }
 0x235   : > { %8318 = vmatprep.mubr.msk.f32.mxu0 %vm224_vm0, %v11931_v17 }
 0x238   : > { %8319 = vmatmul.mubr.msk.f32.gmra.mrb[10].mxu0 %vm224_vm0, %v4145_v0 }
 0x239   : > { %8321 = vmatprep.mubr.msk.f32.mxu0 %vm224_vm0, %v11935_v58 }
 0x23c   : > { %8322 = vmatmul.mubr.msk.f32.gmra.mrb[12].mxu0 %vm224_vm0, %v4147_v52 }
 0x23d   : > { %8324 = vmatprep.mubr.msk.f32.mxu0 %vm224_vm0, %v11939_v41 }
 0x240   : > { %8325 = vmatmul.mubr.msk.f32.gmra.mrb[14].mxu0 %vm224_vm0, %v4149_v49 }
 0x241   : > { %8327 = vmatprep.mubr.msk.f32.mxu0 %vm224_vm0, %v11942_v18 }
 0x244   : > { %8328 = vmatmul.mubr.msk.f32.gmra.mrb[16].mxu0 %vm224_vm0, %v4151_v42 }
 0x245   : > { %8330 = vmatprep.mubr.msk.f32.mxu0 %vm224_vm0, %v11888_v62 }
 0x248   : > { %8331 = vmatmul.mubr.msk.f32.gmra.mrb[18].mxu0 %vm224_vm0, %v4153_v1 }
 0x249   : > { %8333 = vmatprep.mubr.msk.f32.mxu0 %vm224_vm0, %v9701_v43  ;;  %v11950_v43 = vld [vmem:[#allocation73_spill] sm:$0xff] }
 0x24c   : > { %8334 = vmatmul.mubr.msk.f32.gmra.mrb[20].mxu0 %vm224_vm0, %v4155_v60 }
 0x24d   : > { %8336 = vmatprep.mubr.msk.f32.mxu0 %vm224_vm0, %v9716_v36  ;;  %v4161_v36 = vsel %vm11898_vm12, %v9751_v48, 0.0  ;;  %v10278_v48 = vld [vmem:[%s11444_s3 + $0x20] sm:$0xff]   ;;  %vm11953_vm12 = vcmask 523264  }
 0x24e   : > { %11952 = vst [vmem:[#allocation9_spill] sm:$0xff] %v10278_v48  ;;  %7701 = vmatprep.mubr.msk.bf16.mxu1 %vm11953_vm12, %v10278_v48 }
 0x250   : > { %8337 = vmatmul.mubr.msk.f32.gmra.mrb[22].mxu0 %vm224_vm0, %v4157_v33 }
 0x251   : > { %8339 = vmatprep.mubr.msk.f32.mxu0 %vm224_vm0, %v9731_v54  ;;  %v4163_v54 = vsel %vm9733_vm15, %v10029_v28, 0.0  ;;  %v10285_v28 = vld [vmem:[%s11443_s2] ss:$0 sm:$0xff] }
 0x254   : > { %8340 = vmatmul.mubr.msk.f32.gmra.mrb[24].mxu0 %vm224_vm0, %v4159_v34 }
 0x255   : > { %8342 = vmatprep.mubr.msk.f32.mxu0 %vm224_vm0, %v9745_v24  ;;  %v4165_v24 = vsel %vm9747_vm14, %v4133_v56, 0.0 }
 0x258   : > { %8343 = vmatmul.mubr.msk.f32.gmra.mrb[26].mxu0 %vm224_vm0, %v4161_v36 }
 0x259   : > { %8345 = vmatprep.mubr.msk.f32.mxu0 %vm224_vm0, %v10027_v25 }
 0x25c   : > { %8346 = vmatmul.mubr.msk.f32.gmra.mrb[28].mxu0 %vm224_vm0, %v4163_v54 }
 0x25d   : > { %8348 = vmatprep.mubr.msk.f32.mxu0 %vm224_vm0, %v4132_v61 }
 0x260   : > { %8349 = vmatmul.mubr.msk.f32.gmra.mrb[30].mxu0 %vm224_vm0, %v4165_v24  ;;  %vm11954_vm0 = vmmov %vm11953_vm12 }
 0x261   : > { %vm11955_vm14 = vmmov %vm11954_vm0 }
 0x262   : > { %vm11956_vm12 = vmmov %vm11954_vm0 }
 0x263   : > { %vm11957_vm15 = vmmov %vm11954_vm0 }
 0x264   : > { %vm11958_vm11 = vmmov %vm11954_vm0 }
 0x2f7   : > { %v8305_v25 = vpop.f32.mrb[0].mxu0 }
 0x2f8   : > { %v4529_v50 = vadd.f32 %v8305_v25, %v10285_v28  ;;  %v4330_v35 = vpop.f32.mrb[1].mxu0 }
 0x2f9   : > { %v4528_v45 = vadd.f32 %v10285_v28, %v4330_v35 }
 0x2fa   : > { %4561 = vst.msk [vmem:[#allocation3 + $0x20] sm:$0xff] %vm11954_vm0, %v4529_v50 }
 0x2fb   : > { %4560 = vst.msk [vmem:[#allocation3 + $0x18] sm:$0xff] %vm11955_vm14, %v4528_v45  ;;  %v8308_v44 = vpop.f32.mrb[2].mxu0  ;;  %vm11961_vm14 = vmmov %vm11954_vm0 }
 0x2fc   : > { %v4531_v15 = vadd.f32 %v8308_v44, %v10285_v28  ;;  %v4340_v21 = vpop.f32.mrb[3].mxu0 }
 0x2fd   : > { %v4530_v9 = vadd.f32 %v10285_v28, %v4340_v21 }
 0x2fe   : > { %4563 = vst.msk [vmem:[#allocation3 + $0x30] sm:$0xff] %vm11956_vm12, %v4531_v15  ;;  %vm11971_vm12 = vmmov %vm11954_vm0 }
 0x2ff   : > { %4562 = vst.msk [vmem:[#allocation3 + $0x28] sm:$0xff] %vm11957_vm15, %v4530_v9  ;;  %v8311_v40 = vpop.f32.mrb[4].mxu0  ;;  %vm11965_vm15 = vmmov %vm11954_vm0 }
 0x300   : > { %v4533_v59 = vadd.f32 %v8311_v40, %v10285_v28  ;;  %v4350_v11 = vpop.f32.mrb[5].mxu0 }
 0x301   : > { %v4532_v17 = vadd.f32 %v10285_v28, %v4350_v11 }
 0x302   : > { %4565 = vst.msk [vmem:[#allocation3 + $0x40] sm:$0xff] %vm11958_vm11, %v4533_v59  ;;  %v10298_v22 = vld [vmem:[#allocation3 + $0x17] sm:$0xff]  ;;  %v10300_v0 = vld [vmem:[#allocation3 + $0x1f] sm:$0xff]  ;;  %vm11963_vm11 = vmmov %vm11954_vm0 }
 0x303   : > { %11959 = vst [vmem:[#allocation10_spill] sm:$0xff] %v10298_v22  ;;  %11960 = vst [vmem:[#allocation11_spill] sm:$0xff] %v10300_v0  ;;  %v8314_v58 = vpop.f32.mrb[6].mxu0  ;;  %v5333_v55 = vsel %vm9271_vm1, %v10298_v22, 0.0  ;;  %v10327_v24 = vld [vmem:[#allocation3 + $0x19] sm:$0xff] }
 0x304   : > { %4564 = vst.msk [vmem:[#allocation3 + $0x38] sm:$0xff] %vm11961_vm14, %v4532_v17  ;;  %v4535_v52 = vadd.f32 %v8314_v58, %v10285_v28  ;;  %v4360_v41 = vpop.f32.mrb[7].mxu0  ;;  %v10308_v49 = vpack.c.bf16 %v10300_v0, %v5333_v55  ;;  %11969 = vst [vmem:[#allocation17_spill] sm:$0xff] %v10327_v24 }
 0x305   : > { %v4534_v18 = vadd.f32 %v10285_v28, %v4360_v41  ;;  %vm11974_vm14 = vmmov %vm11954_vm0 }
 0x306   : > { %11962 = vst [vmem:[#allocation12_spill] sm:$0xff] %v10308_v49  ;;  %4567 = vst.msk [vmem:[#allocation3 + $0x50] sm:$0xff] %vm11963_vm11, %v4535_v52  ;;  %v10312_v42 = vld [vmem:[#allocation3 + $0x27] sm:$0xff]  ;;  %v10315_v60 = vld [vmem:[#allocation3 + $0x2f] sm:$0xff] }
 0x307   : > { %11964 = vst [vmem:[#allocation13_spill] sm:$0xff] %v10312_v42  ;;  %4566 = vst.msk [vmem:[#allocation3 + $0x48] sm:$0xff] %vm11965_vm15, %v4534_v18  ;;  %v8317_v1 = vpop.f32.mrb[8].mxu0  ;;  %v10317_v33 = vld [vmem:[#allocation3 + $0x21] sm:$0xff]  ;;  %v5335_v34 = vsel %vm9279_vm2, %v10312_v42, 0.0  ;;  %v6075_v45 = vsel %vm9271_vm1, %v10312_v42, 0.0  ;;  %vm11989_vm1 = vnez %v11720_v3 }
 0x308   : > { %11966 = vst [vmem:[#allocation14_spill] sm:$0xff] %v10315_v60  ;;  %11967 = vst [vmem:[#allocation15_spill] sm:$0xff] %v10317_v33  ;;  %v4537_v36 = vadd.f32 %v8317_v1, %v10285_v28  ;;  %v4370_v54 = vpop.f32.mrb[9].mxu0  ;;  %v10324_v61 = vpack.c.bf16 %v10315_v60, %v5335_v34  ;;  %v5818_v25 = vsel %vm11914_vm8, %v10317_v33, 0.0  ;;  %v10343_v15 = vpack.c.bf16 %v10315_v60, %v6075_v45  ;;  %v10346_v40 = vld [vmem:[#allocation3 + $0x29] sm:$0xff] }
 0x309   : > { %v4536_v56 = vadd.f32 %v10285_v28, %v4370_v54  ;;  %v10336_v35 = vpack.c.bf16 %v5818_v25, %v10327_v24  ;;  %vm11975_vm11 = vmmov %vm11954_vm0 }
 0x30a   : > { %11968 = vst [vmem:[#allocation16_spill] sm:$0xff] %v10324_v61  ;;  %4569 = vst.msk [vmem:[#allocation3 + $0x60] sm:$0xff] %vm11954_vm0, %v4537_v36 }
 0x30b   : > { %v10333_v50 = vld [vmem:[#allocation3 + $0x31] sm:$0xff]  ;;  %11970 = vst [vmem:[#allocation18_spill] sm:$0xff] %v10336_v35  ;;  %4568 = vst.msk [vmem:[#allocation3 + $0x58] sm:$0xff] %vm11971_vm12, %v4536_v56  ;;  %v8320_v44 = vpop.f32.mrb[10].mxu0  ;;  %v10361_v41 = vld [vmem:[#allocation3 + $0x3f] sm:$0xff]  ;;  %vm11980_vm12 = vnez %v11929_v4 }
 0x30c   : > { %11972 = vst [vmem:[#allocation19_spill] sm:$0xff] %v10343_v15  ;;  %v4539_v21 = vadd.f32 %v8320_v44, %v10285_v28  ;;  %v4380_v9 = vpop.f32.mrb[11].mxu0  ;;  %v10348_v59 = vld [vmem:[#allocation3 + $0x37] sm:$0xff]  ;;  %v5080_v11 = vsel %vm11922_vm9, %v10333_v50, 0.0  ;;  %vm11977_vm15 = vmmov %vm11954_vm0 }
 0x30d   : > { %v4538_v17 = vadd.f32 %v10285_v28, %v4380_v9  ;;  %v10355_v58 = vpack.c.bf16 %v5080_v11, %v10346_v40  ;;  %v5337_v1 = vsel %vm9296_vm3, %v10348_v59, 0.0  ;;  %v10369_v54 = vld [vmem:[#allocation3 + $0x39] sm:$0xff]  ;;  %v4630_v20 = vsel %vm9317_vm4, %v10348_v59, 0.0 }
 0x30e   : > { %4571 = vst.msk [vmem:[#allocation3 + $0x70] sm:$0xff] %vm11974_vm14, %v4539_v21  ;;  %v10358_v55 = vld [vmem:[#allocation3 + $0x41] sm:$0xff]  ;;  %v10371_v56 = vld [vmem:[#allocation3 + $0x4f] sm:$0xff]  ;;  %v10384_v9 = vpack.c.bf16 %v10361_v41, %v5337_v1  ;;  %vm11981_vm14 = vmmov %vm11954_vm0 }
 0x30f   : > { %11973 = vst [vmem:[#allocation20_spill] sm:$0xff] %v10355_v58  ;;  %4570 = vst.msk [vmem:[#allocation3 + $0x68] sm:$0xff] %vm11975_vm11, %v4538_v17  ;;  %v8323_v52 = vpop.f32.mrb[12].mxu0  ;;  %v10363_v18 = vld [vmem:[#allocation3 + $0x47] sm:$0xff]  ;;  %v5082_v25 = vsel %vm11926_vm7, %v10358_v55, 0.0 }
 0x310   : > { %v4541_v34 = vadd.f32 %v8323_v52, %v10285_v28  ;;  %v4390_v36 = vpop.f32.mrb[13].mxu0  ;;  %v10378_v44 = vpack.c.bf16 %v5082_v25, %v10369_v54  ;;  %11978 = vst [vmem:[#allocation22_spill] sm:$0xff] %v10384_v9  ;;  %v5339_v11 = vsel %vm9317_vm4, %v10363_v18, 0.0  ;;  %v10395_v15 = vld [vmem:[#allocation3 + $0x49] sm:$0xff]  ;;  %vm11983_vm11 = vmmov %vm11954_vm0 }
 0x311   : > { %v4540_v45 = vadd.f32 %v10285_v28, %v4390_v36  ;;  %v10391_v52 = vpack.c.bf16 %v10371_v56, %v5339_v11 }
 0x312   : > { %11976 = vst [vmem:[#allocation21_spill] sm:$0xff] %v10378_v44  ;;  %4573 = vst.msk [vmem:[#allocation3 + $0x80] sm:$0xff] %vm11977_vm15, %v4541_v34  ;;  %v10381_v21 = vld [vmem:[#allocation3 + $0x51] sm:$0xff]  ;;  %vm11984_vm15 = vnez %v11933_v7  ;;  %v10415_v44 = vld [vmem:[#allocation3 + $0x5f] sm:$0xff] }
 0x313   : > { %4572 = vst.msk [vmem:[#allocation3 + $0x78] sm:$0xff] %vm11954_vm0, %v4540_v45  ;;  %v8326_v17 = vpop.f32.mrb[14].mxu0  ;;  %11979 = vst [vmem:[#allocation23_spill] sm:$0xff] %v10391_v52  ;;  %v5084_v1 = vsel %vm11980_vm12, %v10381_v21, 0.0  ;;  %v4681_v52 = vld [vmem:[#allocation3 + $0x10] sm:$0xff]  ;;  %vm12029_vm12 = vnez %v11917_v6 }
 0x314   : > { %v4543_v36 = vadd.f32 %v8326_v17, %v10285_v28  ;;  %v4400_v25 = vpop.f32.mrb[15].mxu0  ;;  %v10404_v45 = vpack.c.bf16 %v5084_v1, %v10395_v15  ;;  %v4680_v17 = vld [vmem:[#allocation3 + $0x8] sm:$0xff]  ;;  %v10407_v9 = vld [vmem:[#allocation3 + $0x57] sm:$0xff] }
 0x315   : > { %v4542_v34 = vadd.f32 %v10285_v28, %v4400_v25  ;;  %v4712_v33 = vpack.c.bf16 %v4681_v52, %v4680_v17 }
 0x316   : > { %4575 = vst.msk [vmem:[#allocation3 + $0x90] sm:$0xff] %vm11981_vm14, %v4543_v36  ;;  %v10401_v35 = vld [vmem:[#allocation3 + $0x61] sm:$0xff]  ;;  %11982 = vst [vmem:[#allocation24_spill] sm:$0xff] %v10404_v45  ;;  %v10413_v36 = vld [vmem:[#allocation3 + $0x59] sm:$0xff]  ;;  %vm11986_vm14 = vnez %v11718_v39 }
 0x317   : > { %4574 = vst.msk [vmem:[#allocation3 + $0x88] sm:$0xff] %vm11983_vm11, %v4542_v34  ;;  %v8329_v11 = vpop.f32.mrb[16].mxu0  ;;  %v5086_v25 = vsel %vm11984_vm15, %v10401_v35, 0.0  ;;  %v10417_v1 = vld [vmem:[#allocation3 + $0x67] sm:$0xff]  ;;  %vm11987_vm11 = vmmov %vm11954_vm0  ;;  %v10430_v51 = vld [vmem:[#allocation3 + $0x6f] sm:$0xff] }
 0x318   : > { %v4545_v61 = vadd.f32 %v8329_v11, %v10285_v28  ;;  %v4410_v49 = vpop.f32.mrb[17].mxu0  ;;  %v10421_v45 = vpack.c.bf16 %v5086_v25, %v10413_v36  ;;  %v5341_v11 = vsel %vm11986_vm14, %v10407_v9, 0.0  ;;  %v10440_v0 = vld [vmem:[#allocation3 + $0x69] sm:$0xff]  ;;  %vm11994_vm15 = vmmov %vm11987_vm11 }
 0x319   : > { %v4544_v34 = vadd.f32 %v10285_v28, %v4410_v49  ;;  %v10433_v60 = vpack.c.bf16 %v10415_v44, %v5341_v11  ;;  %v5343_v49 = vsel %vm11989_vm1, %v10417_v1, 0.0  ;;  %vm11995_vm1 = vmmov %vm11987_vm11 }
 0x31a   : > { %11985 = vst [vmem:[#allocation25_spill] sm:$0xff] %v10421_v45  ;;  %4577 = vst.msk [vmem:[#allocation3 + $0xa0] sm:$0xff] %vm11954_vm0, %v4545_v61  ;;  %v10424_v58 = vld [vmem:[#allocation3 + $0x71] sm:$0xff]  ;;  %vm11990_vm0 = vnez %v11937_v32  ;;  %v4770_v48 = vsel %vm11995_vm1, %v4712_v33, 0  ;;  %v10458_v10 = vld [vmem:[#allocation3 + $0x7f] sm:$0xff] }
 0x31b   : > { %4576 = vst.msk [vmem:[#allocation3 + $0x98] sm:$0xff] %vm11987_vm11, %v4544_v34  ;;  %v8332_v24 = vpop.f32.mrb[18].mxu0  ;;  %11988 = vst [vmem:[#allocation26_spill] sm:$0xff] %v10433_v60  ;;  %v5088_v52 = vsel %vm11990_vm0, %v10424_v58, 0.0  ;;  %v10448_v11 = vld [vmem:[#allocation3 + $0x77] sm:$0xff] }
 0x31c   : > { %v4547_v61 = vadd.f32 %v8332_v24, %v10285_v28  ;;  %v4420_v25 = vpop.f32.mrb[19].mxu0  ;;  %v10451_v60 = vpack.c.bf16 %v5088_v52, %v10440_v0  ;;  %v10454_v24 = vpack.c.bf16 %v10430_v51, %v5343_v49  ;;  %v4683_v49 = vld [vmem:[#allocation3 + $0x20] sm:$0xff] }
 0x31d   : > { %v4546_v45 = vadd.f32 %v10285_v28, %v4420_v25  ;;  %v4697_v42 = vld [vmem:[#allocation3 + $0x90] sm:$0xff] }
 0x31e   : > { %4579 = vst.msk [vmem:[#allocation3 + $0xb0] sm:$0xff] %vm11987_vm11, %v4547_v61  ;;  %v4696_v17 = vld [vmem:[#allocation3 + $0x88] sm:$0xff]  ;;  %11992 = vst [vmem:[#allocation28_spill] sm:$0xff] %v10451_v60 }
 0x31f   : > { %v10446_v34 = vld [vmem:[#allocation3 + $0x81] sm:$0xff]  ;;  %11993 = vst [vmem:[#allocation29_spill] sm:$0xff] %v10454_v24  ;;  %4578 = vst.msk [vmem:[#allocation3 + $0xa8] sm:$0xff] %vm11994_vm15, %v4546_v45  ;;  %v8335_v25 = vpop.f32.mrb[20].mxu0  ;;  %v4720_v22 = vpack.c.bf16 %v4697_v42, %v4696_v17  ;;  %v10465_v24 = vld [vmem:[#allocation3 + $0x79] sm:$0xff]  ;;  %vm11997_vm15 = vnez %v11940_v5 }
 0x320   : > { %11991 = vst [vmem:[#allocation27_spill] sm:$0xff] %v10446_v34  ;;  %v4549_v61 = vadd.f32 %v8335_v25, %v10285_v28  ;;  %v4430_v32 = vpop.f32.mrb[21].mxu0  ;;  %v10461_v7 = vld [vmem:[#allocation3 + $0x87] sm:$0xff]  ;;  %vm11996_vm11 = vmmov %vm11995_vm1  ;;  %v5090_v42 = vsel %vm11997_vm15, %v10446_v34, 0.0  ;;  %vm11998_vm1 = vnez %v11723_v16  ;;  %v4682_v17 = vld [vmem:[#allocation3 + $0x18] sm:$0xff] }
 0x321   : > { %v4548_v3 = vadd.f32 %v10285_v28, %v4430_v32  ;;  %8751 = vmatprep.subr.msk.bf16.mxu1 %vm11996_vm11, %v4720_v22  ;;  %v4699_v52 = vld [vmem:[#allocation3 + $0xa0] sm:$0xff]  ;;  %v5345_v33 = vsel %vm11998_vm1, %v10448_v11, 0.0  ;;  %vm11999_vm0 = vmmov %vm11996_vm11  ;;  %v10477_v22 = vpack.c.bf16 %v5090_v42, %v10465_v24  ;;  %v10485_v16 = vld [vmem:[#allocation3 + $0x8f] sm:$0xff] }
 0x322   : > { %4581 = vst.msk [vmem:[#allocation3 + $0xc0] sm:$0xff] %vm11999_vm0, %v4549_v61  ;;  %7686 = vmatpush3.bf16.xpose.msra.mxu1 %v4770_v48  ;;  %v4698_v45 = vld [vmem:[#allocation3 + $0x98] sm:$0xff]  ;;  %v10480_v25 = vpack.c.bf16 %v10458_v10, %v5345_v33  ;;  %vm12003_vm11 = vmmov %vm11999_vm0  ;;  %vm12006_vm0 = vnez %v11726_v26 }
 0x323   : > { %v10474_v32 = vld [vmem:[#allocation3 + $0x97] sm:$0xff]  ;;  %12001 = vst [vmem:[#allocation31_spill] sm:$0xff] %v10477_v22  ;;  %4580 = vst.msk [vmem:[#allocation3 + $0xb8] sm:$0xff] %vm12003_vm11, %v4548_v3  ;;  %v8338_v60 = vpop.f32.mrb[22].mxu0  ;;  %v10483_v5 = vpack.c.bf16 %v4699_v52, %v4698_v45  ;;  %v10487_v34 = vld [vmem:[#allocation3 + $0x9f] sm:$0xff]  ;;  %v5347_v48 = vsel %vm12006_vm0, %v10461_v7, 0.0  ;;  %v4713_v3 = vpack.c.bf16 %v4683_v49, %v4682_v17 }
 0x324   : > { %12000 = vst [vmem:[#allocation30_spill] sm:$0xff] %v10474_v32  ;;  %12002 = vst [vmem:[#allocation33_spill] sm:$0xff] %v10480_v25  ;;  %v4551_v61 = vadd.f32 %v8338_v60, %v10285_v28  ;;  %v4440_v42 = vpop.f32.mrb[23].mxu0  ;;  %v10506_v60 = vpack.c.bf16 %v10485_v16, %v5347_v48  ;;  %v6560_v49 = vsel %vm11914_vm8, %v10333_v50, 0.0  ;;  %v10526_v19 = vld [vmem:[#allocation3 + $0x99] sm:$0xff] }
 0x325   : > { %12004 = vst [vmem:[#allocation40_spill] sm:$0xff] %v10483_v5  ;;  %12005 = vst [vmem:[#allocation42_spill] sm:$0xff] %v10487_v34  ;;  %v4550_v22 = vadd.f32 %v10285_v28, %v4440_v42  ;;  %v4701_v45 = vld [vmem:[#allocation3 + $0xb0] sm:$0xff] }
 0x326   : > { %vm12007_vm1 = vmmov %vm12003_vm11  ;;  %vm12008_vm11 = vnez %v11729_v63  ;;  %v4700_v33 = vld [vmem:[#allocation3 + $0xa8] sm:$0xff]  ;;  %12012 = vst [vmem:[#allocation70_spill] sm:$0xff] %v10506_v60 }
 0x327   : > { %8752 = vmatprep.subr.msk.bf16.mxu1 %vm12007_vm1, %v10483_v5  ;;  %v5349_v52 = vsel %vm12008_vm11, %v10474_v32, 0.0  ;;  %vm12009_vm15 = vmmov %vm12007_vm1  ;;  %v10500_v25 = vld [vmem:[#allocation3 + $0xa1] sm:$0xff]  ;;  %v8341_v42 = vpop.f32.mrb[24].mxu0  ;;  %v10524_v60 = vpack.c.bf16 %v4701_v45, %v4700_v33  ;;  %12017 = vst [vmem:[#allocation75_spill] sm:$0xff] %v10526_v19 }
 0x328   : > { %4583 = vst.msk [vmem:[#allocation3 + $0xd0] sm:$0xff] %vm12009_vm15, %v4551_v61  ;;  %12010 = vst [vmem:[#allocation66_spill] sm:$0xff] %v10500_v25  ;;  %v10503_v26 = vpack.c.bf16 %v10487_v34, %v5349_v52  ;;  %v10512_v17 = vld [vmem:[#allocation3 + $0xa7] sm:$0xff]  ;;  %v10514_v61 = vld [vmem:[#allocation3 + $0xaf] sm:$0xff]  ;;  %v5834_v5 = vsel %vm11944_vm6, %v10500_v25, 0.0  ;;  %v4553_v52 = vadd.f32 %v8341_v42, %v10285_v28  ;;  %v6591_v42 = vpack.c.bf16 %v6560_v49, %v10346_v40 }
 0x329   : > { %vm12013_vm0 = vmmov %vm12007_vm1  ;;  %12016 = vst [vmem:[#allocation74_spill] sm:$0xff] %v10524_v60  ;;  %vm12018_vm1 = vnez %v11731_v23  ;;  %v4684_v25 = vld [vmem:[#allocation3 + $0x28] sm:$0xff]  ;;  %v10538_v33 = vpack.c.bf16 %v5834_v5, %v10526_v19  ;;  %v4703_v19 = vld [vmem:[#allocation3 + $0xc0] sm:$0xff] }
 0x32a   : > { %12011 = vst [vmem:[#allocation69_spill] sm:$0xff] %v10503_v26  ;;  %4582 = vst.msk [vmem:[#allocation3 + $0xc8] sm:$0xff] %vm12013_vm0, %v4550_v22  ;;  %v4450_v26 = vpop.f32.mrb[25].mxu0  ;;  %v5351_v50 = vsel %vm12018_vm1, %v10512_v17, 0.0  ;;  %v6544_v34 = vld [vmem:[#allocation3 + $0xb1] sm:$0xff]  ;;  %v10547_v40 = vld [vmem:[#allocation3 + $0xbf] sm:$0xff] }
 0x32b   : > { %v4552_v48 = vadd.f32 %v10285_v28, %v4450_v26  ;;  %vm12014_vm15 = vmmov %vm12013_vm0  ;;  %4585 = vst.msk [vmem:[#allocation3 + $0xe0] sm:$0xff] %vm12013_vm0, %v4553_v52  ;;  %v4685_v26 = vld [vmem:[#allocation3 + $0x30] sm:$0xff]  ;;  %v8344_v45 = vpop.f32.mrb[26].mxu0  ;;  %v5096_v49 = vsel %vm11948_vm10, %v6544_v34, 0.0 }
 0x32c   : > { %v10522_v22 = vsel %vm12014_vm15, %v4713_v3, 0  ;;  %v10535_v3 = vpack.c.bf16 %v10514_v61, %v5351_v50  ;;  %12020 = vst [vmem:[#allocation77_spill] sm:$0xff] %v10538_v33  ;;  %vm12021_vm15 = vmmov %vm12013_vm0  ;;  %v6543_v52 = vld [vmem:[#allocation3 + $0xa9] sm:$0xff]  ;;  %v10545_v32 = vld [vmem:[#allocation3 + $0xb7] sm:$0xff]  ;;  %v4555_v5 = vadd.f32 %v8344_v45, %v10285_v28  ;;  %v4460_v50 = vpop.f32.mrb[27].mxu0 }
 0x32d   : > { %12015 = vst [vmem:[#allocation72_spill] sm:$0xff] %v10522_v22  ;;  %7688 = vmatpush3.bf16.xpose.msra.mxu1 %v10522_v22  ;;  %4584 = vst.msk [vmem:[#allocation3 + $0xd8] sm:$0xff] %vm12021_vm15, %v4552_v48  ;;  %v6576_v22 = vsel %vm11944_vm6, %v6544_v34, 0.0  ;;  %v10554_v48 = vpack.c.bf16 %v5096_v49, %v6543_v52  ;;  %v6545_v49 = vld [vmem:[#allocation3 + $0xb9] sm:$0xff]  ;;  %v12118_v23 = vld [vmem:[#allocation42_spill] sm:$0xff] }
 0x32e   : > { %12019 = vst [vmem:[#allocation38_spill] sm:$0xff] %v10535_v3  ;;  %vm12022_vm8 = vmmov %vm12013_vm0  ;;  %v10552_v33 = vpack.c.bf16 %v6576_v22, %v6543_v52  ;;  %v4714_v3 = vpack.c.bf16 %v4685_v26, %v4684_v25  ;;  %v4702_v22 = vld [vmem:[#allocation3 + $0xb8] sm:$0xff]  ;;  %v6562_v52 = vsel %vm12029_vm12, %v10358_v55, 0.0 }
 0x32f   : > { %8753 = vmatprep.subr.msk.bf16.mxu1 %vm12022_vm8, %v10524_v60  ;;  %12024 = vst [vmem:[#allocation8_spill] sm:$0xff] %v10554_v48  ;;  %v4554_v60 = vadd.f32 %v10285_v28, %v4460_v50  ;;  %vm12025_vm8 = vnez %v11733_v8  ;;  %4587 = vst.msk [vmem:[#allocation3 + $0xf0] sm:$0xff] %vm12013_vm0, %v4555_v5  ;;  %v8347_v26 = vpop.f32.mrb[28].mxu0  ;;  %v10591_v6 = vpack.c.bf16 %v4703_v19, %v4702_v22  ;;  %v12129_v8 = vld [vmem:[#allocation14_spill] sm:$0xff] }
 0x330   : > { %12023 = vst [vmem:[#allocation7_spill] sm:$0xff] %v10552_v33  ;;  %v5353_v37 = vsel %vm12025_vm8, %v10545_v32, 0.0  ;;  %vm12026_vm15 = vmmov %vm12013_vm0  ;;  %v4557_v55 = vadd.f32 %v8347_v26, %v10285_v28  ;;  %v4686_v26 = vld [vmem:[#allocation3 + $0x38] sm:$0xff] }
 0x331   : > { %8815 = vmatprep.subr.msk.bf16.mxu0 %vm12026_vm15, %v10552_v33  ;;  %vm12027_vm6 = vmmov %vm12013_vm0  ;;  %v6546_v45 = vld [vmem:[#allocation3 + $0xc1] sm:$0xff]  ;;  %v10570_v25 = vpack.c.bf16 %v10547_v40, %v5353_v37  ;;  %v10578_v50 = vld [vmem:[#allocation3 + $0xcf] sm:$0xff]  ;;  %v4470_v37 = vpop.f32.mrb[29].mxu0  ;;  %12036 = vst [vmem:[#allocation51_spill] sm:$0xff] %v10591_v6 }
 0x332   : > { %v10564_v34 = vsel %vm12027_vm6, %v6591_v42, 0  ;;  %vm12031_vm14 = vmmov %vm12013_vm0  ;;  %v6578_v42 = vsel %vm11946_vm5, %v6546_v45, 0.0  ;;  %v10576_v5 = vld [vmem:[#allocation3 + $0xc7] sm:$0xff]  ;;  %v5098_v33 = vsel %vm11894_vm13, %v6546_v45, 0.0  ;;  %4589 = vst.msk [vmem:[#allocation3 + $0x100] sm:$0xff] %vm12013_vm0, %v4557_v55 }
 0x333   : > { %12028 = vst [vmem:[#allocation43_spill] sm:$0xff] %v10564_v34  ;;  %12030 = vst [vmem:[#allocation45_spill] sm:$0xff] %v10570_v25  ;;  %7878 = vmatpush3.bf16.xpose.msra.mxu0 %v10564_v34  ;;  %v10583_v25 = vpack.c.bf16 %v6578_v42, %v6545_v49  ;;  %v4556_v34 = vadd.f32 %v10285_v28, %v4470_v37  ;;  %v8350_v19 = vpop.f32.mrb[30].mxu0  ;;  %v6547_v22 = vld [vmem:[#allocation3 + $0xc9] sm:$0xff] }
 0x334   : > { %4586 = vst.msk [vmem:[#allocation3 + $0xe8] sm:$0xff] %vm12031_vm14, %v4554_v60  ;;  %v10585_v60 = vpack.c.bf16 %v5098_v33, %v6545_v49  ;;  %vm12034_vm6 = vmmov %vm12013_vm0  ;;  %vm12037_vm14 = vnez %v11735_v38  ;;  %v6592_v33 = vpack.c.bf16 %v6562_v52, %v10369_v54  ;;  %v6548_v45 = vld [vmem:[#allocation3 + $0xd1] sm:$0xff]  ;;  %v4687_v49 = vld [vmem:[#allocation3 + $0x40] sm:$0xff]  ;;  %v4480_v52 = vpop.f32.mrb[31].mxu0  ;;  %v4659_v38 = vpack.c.bf16 %v10361_v41, %v4630_v20 }
 0x335   : > { %12032 = vst [vmem:[#allocation46_spill] sm:$0xff] %v10583_v25  ;;  %v10589_v48 = vsel %vm12034_vm6, %v4714_v3, 0  ;;  %v5355_v12 = vsel %vm12037_vm14, %v10576_v5, 0.0  ;;  %vm12038_vm15 = vmmov %vm12013_vm0  ;;  %v6580_v42 = vsel %vm11948_vm10, %v6548_v45, 0.0  ;;  %v10609_v55 = vld [vmem:[#allocation3 + $0xd7] sm:$0xff]  ;;  %v10611_v37 = vld [vmem:[#allocation3 + $0xdf] sm:$0xff] }
 0x336   : > { %12033 = vst [vmem:[#allocation48_spill] sm:$0xff] %v10585_v60  ;;  %12035 = vst [vmem:[#allocation49_spill] sm:$0xff] %v10589_v48  ;;  %7690 = vmatpush3.bf16.xpose.msra.mxu1 %v10589_v48  ;;  %8817 = vmatprep.subr.msk.bf16.mxu0 %vm12038_vm15, %v10583_v25  ;;  %v10602_v3 = vpack.c.bf16 %v10578_v50, %v5355_v12  ;;  %v4559_v12 = vadd.f32 %v8350_v19, %v10285_v28  ;;  %v4705_v60 = vld [vmem:[#allocation3 + $0xd0] sm:$0xff]  ;;  %v8883_v20 = vld [vmem:[%s11444_s3 + $0x18] sm:$0xff]  }
 0x337   : > { %vm12040_vm6 = vmmov %vm12013_vm0  ;;  %v4715_v48 = vpack.c.bf16 %v4687_v49, %v4686_v26  ;;  %v6549_v26 = vld [vmem:[#allocation3 + $0xd9] sm:$0xff] }
 0x338   : > { %12039 = vst [vmem:[#allocation52_spill] sm:$0xff] %v10602_v3  ;;  %4588 = vst.msk [vmem:[#allocation3 + $0xf8] sm:$0xff] %vm12040_vm6, %v4556_v34  ;;  %v4558_v34 = vadd.f32 %v10285_v28, %v4480_v52  ;;  %v10626_v3 = vpack.c.bf16 %v6580_v42, %v6547_v22  ;;  %v6564_v28 = vsel %vm11922_vm9, %v10381_v21, 0.0 }
 0x339   : > { %vm12041_vm12 = vmmov %vm12013_vm0  ;;  %vm12042_vm0 = vnez %v11950_v43 }
 0x33a   : > { %8754 = vmatprep.subr.msk.bf16.mxu1 %vm12041_vm12, %v10591_v6  ;;  %v5100_v54 = vsel %vm12042_vm0, %v6548_v45, 0.0  ;;  %vm12044_vm12 = vnez %v11737_v14  ;;  %vm12045_vm15 = vmmov %vm12040_vm6  ;;  %v10624_v6 = vsel %vm12040_vm6, %v6592_v33, 0  ;;  %12047 = vst [vmem:[#allocation57_spill] sm:$0xff] %v10626_v3  ;;  %v4704_v45 = vld [vmem:[#allocation3 + $0xc8] sm:$0xff] }
 0x33b   : > { %v10616_v25 = vpack.c.bf16 %v5100_v54, %v6547_v22  ;;  %v5357_v30 = vsel %vm12044_vm12, %v10609_v55, 0.0  ;;  %4591 = vst.msk [vmem:[#allocation3 + $0x110] sm:$0xff] %vm12045_vm15, %v4559_v12  ;;  %12046 = vst [vmem:[#allocation55_spill] sm:$0xff] %v10624_v6  ;;  %v6550_v19 = vld [vmem:[#allocation3 + $0xe1] sm:$0xff]  ;;  %7880 = vmatpush3.bf16.xpose.msra.mxu0 %v10624_v6  ;;  %v10638_v33 = vld [vmem:[#allocation3 + $0xef] sm:$0xff]  ;;  %vm12050_vm15 = vnez %v11897_v46  ;;  %v10652_v21 = vpack.c.bf16 %v4705_v60, %v4704_v45 }
 0x33c   : > { %v10629_v54 = vpack.c.bf16 %v10611_v37, %v5357_v30  ;;  %vm12049_vm10 = vmmov %vm12040_vm6  ;;  %v10636_v49 = vld [vmem:[#allocation3 + $0xe7] sm:$0xff]  ;;  %v5102_v22 = vsel %vm12050_vm15, %v6550_v19, 0.0  ;;  %8819 = vmatprep.subr.msk.bf16.mxu0 %vm12040_vm6, %v10626_v3  ;;  %v4689_v3 = vld [vmem:[#allocation3 + $0x50] sm:$0xff]  ;;  %v6582_v29 = vsel %vm11894_vm13, %v6550_v19, 0.0  ;;  %vm12061_vm13 = vcmask 523264  }
 0x33d   : > { %12043 = vst [vmem:[#allocation54_spill] sm:$0xff] %v10616_v25  ;;  %4590 = vst.msk [vmem:[#allocation3 + $0x108] sm:$0xff] %vm12049_vm10, %v4558_v34  ;;  %v10644_v30 = vpack.c.bf16 %v5102_v22, %v6549_v26  ;;  %vm12052_vm10 = vnez %v11739_v2  ;;  %v6593_v34 = vpack.c.bf16 %v6564_v28, %v10395_v15  ;;  %v4688_v6 = vld [vmem:[#allocation3 + $0x48] sm:$0xff]  ;;  %v10683_v31 = vpack.c.bf16 %v6582_v29, %v6549_v26 }
 0x33e   : > { %12048 = vst [vmem:[#allocation50_spill] sm:$0xff] %v10629_v54  ;;  %v5359_v42 = vsel %vm12052_vm10, %v10636_v49, 0.0  ;;  %vm12053_vm5 = vmmov %vm12040_vm6  ;;  %v6551_v60 = vld [vmem:[#allocation3 + $0xe9] sm:$0xff]  ;;  %v4716_v62 = vpack.c.bf16 %v4689_v3, %v4688_v6 }
 0x33f   : > { %12051 = vst [vmem:[#allocation58_spill] sm:$0xff] %v10644_v30  ;;  %v10650_v12 = vsel %vm12053_vm5, %v4715_v48, 0  ;;  %12055 = vst [vmem:[#allocation61_spill] sm:$0xff] %v10652_v21  ;;  %v10655_v52 = vpack.c.bf16 %v10638_v33, %v5359_v42  ;;  %v6552_v22 = vld [vmem:[#allocation3 + $0xf1] sm:$0xff]  ;;  %v6566_v48 = vsel %vm11926_vm7, %v10401_v35, 0.0  ;;  %v10668_v42 = vld [vmem:[#allocation3 + $0xff] sm:$0xff]  ;;  %vm12064_vm7 = vnez %v11815_v57 }
 0x340   : > { %12054 = vst [vmem:[#allocation60_spill] sm:$0xff] %v10650_v12  ;;  %7692 = vmatpush3.bf16.xpose.msra.mxu1 %v10650_v12  ;;  %vm12057_vm6 = vmmov %vm12053_vm5  ;;  %v10666_v45 = vld [vmem:[#allocation3 + $0xf7] sm:$0xff]  ;;  %vm12058_vm5 = vnez %v11951_v47  ;;  %v10681_v35 = vsel %vm12061_vm13, %v6593_v34, 0  ;;  %v6594_v54 = vpack.c.bf16 %v6566_v48, %v10413_v36  ;;  %v6091_v34 = vsel %vm12008_vm11, %v10512_v17, 0.0 }
 0x341   : > { %12056 = vst [vmem:[#allocation63_spill] sm:$0xff] %v10655_v52  ;;  %8755 = vmatprep.subr.msk.bf16.mxu1 %vm12057_vm6, %v10652_v21  ;;  %v5104_v15 = vsel %vm12058_vm5, %v6552_v22, 0.0  ;;  %vm12060_vm6 = vnez %v11741_v53  ;;  %12062 = vst [vmem:[#allocation67_spill] sm:$0xff] %v10681_v35  ;;  %v4706_v12 = vld [vmem:[#allocation3 + $0xd8] sm:$0xff]  ;;  %v4707_v52 = vld [vmem:[#allocation3 + $0xe0] sm:$0xff]  ;;  %v6093_v48 = vsel %vm12018_vm1, %v10545_v32, 0.0 }
 0x342   : > { %v10672_v28 = vpack.c.bf16 %v5104_v15, %v6551_v60  ;;  %v5361_v21 = vsel %vm12060_vm6, %v10666_v45, 0.0  ;;  %12063 = vst [vmem:[#allocation76_spill] sm:$0xff] %v10683_v31  ;;  %v4690_v15 = vld [vmem:[#allocation3 + $0x58] sm:$0xff]  ;;  %vm12065_vm9 = vmmov %vm12061_vm13  ;;  %v10696_v26 = vpack.c.bf16 %v4707_v52, %v4706_v12  ;;  %v10713_v12 = vpack.c.bf16 %v10514_v61, %v6091_v34  ;;  %v8905_v57 = vld [vmem:[%s11444_s3 + $0x100] sm:$0xff]  }
 0x343   : > { %v10678_v19 = vpack.c.bf16 %v10668_v42, %v5361_v21  ;;  %7882 = vmatpush3.bf16.xpose.msra.mxu0 %v10681_v35  ;;  %v6553_v25 = vld [vmem:[#allocation3 + $0xf9] sm:$0xff]  ;;  %vm12066_vm13 = vmmov %vm12065_vm9  ;;  %v6077_v52 = vsel %vm9279_vm2, %v10348_v59, 0.0  ;;  %v6081_v35 = vsel %vm9317_vm4, %v10407_v9, 0.0  ;;  %v4650_v59 = vsel %vm12052_vm10, %v10609_v55, 0.0 }
 0x344   : > { %12059 = vst [vmem:[#allocation64_spill] sm:$0xff] %v10672_v28  ;;  %v6554_v30 = vld [vmem:[#allocation3 + $0x101] sm:$0xff]  ;;  %8821 = vmatprep.subr.msk.bf16.mxu0 %vm12065_vm9, %v10683_v31  ;;  %v10694_v29 = vsel %vm12066_vm13, %v4716_v62, 0  ;;  %12067 = vst [vmem:[#allocation78_spill] sm:$0xff] %v10696_v26  ;;  %v6584_v62 = vsel %vm12042_vm0, %v6552_v22, 0.0  ;;  %v6079_v22 = vsel %vm9296_vm3, %v10363_v18, 0.0  ;;  %vm12080_vm13 = vnez %v11929_v4 }
 0x345   : > { %v4691_v28 = vld [vmem:[#allocation3 + $0x60] sm:$0xff]  ;;  %v5106_v6 = vsel %vm12064_vm7, %v6554_v30, 0.0  ;;  %vm12068_vm5 = vmmov %vm12065_vm9  ;;  %12071 = vst [vmem:[#allocation80_spill] sm:$0xff] %v10713_v12  ;;  %v4709_v12 = vld [vmem:[#allocation3 + $0xf0] sm:$0xff] }
 0x346   : > { %v10691_v3 = vpack.c.bf16 %v5106_v6, %v6553_v25  ;;  %v10700_v36 = vsel %vm12068_vm5, %v6594_v54, 0  ;;  %v4717_v21 = vpack.c.bf16 %v4691_v28, %v4690_v15  ;;  %vm12070_vm9 = vmmov %vm12068_vm5  ;;  %v10716_v54 = vpack.c.bf16 %v10547_v40, %v6093_v48  ;;  %v10733_v34 = vld [vmem:[#allocation3 + $0x107] sm:$0xff]  ;;  %v10749_v43 = vld [vmem:[#allocation3 + $0x10f] sm:$0xff] }
 0x347   : > { %12069 = vst [vmem:[#allocation79_spill] sm:$0xff] %v10700_v36  ;;  %v10722_v28 = vpack.c.bf16 %v10361_v41, %v6077_v52  ;;  %v6095_v15 = vsel %vm12025_vm8, %v10576_v5, 0.0  ;;  %v6097_v6 = vsel %vm12037_vm14, %v10609_v55, 0.0  ;;  %v10739_v52 = vpack.c.bf16 %v10371_v56, %v6079_v22  ;;  %v12143_v55 = vld [vmem:[#allocation35_spill] sm:$0xff]  ;;  %v5813_v46 = vld [vmem:[#allocation3 + $0xf9] sm:$0xff] }
 0x348   : > { %7694 = vmatpush3.bf16.xpose.msra.mxu1 %v10694_v29  ;;  %12072 = vst [vmem:[#allocation81_spill] sm:$0xff] %v10716_v54  ;;  %v10736_v48 = vpack.c.bf16 %v10578_v50, %v6095_v15  ;;  %v10742_v31 = vpack.c.bf16 %v10611_v37, %v6097_v6  ;;  %v4708_v54 = vld [vmem:[#allocation3 + $0xe8] sm:$0xff]  ;;  %v6099_v15 = vsel %vm12044_vm12, %v10636_v49, 0.0  ;;  %vm12079_vm5 = vnez %v11718_v39 }
 0x349   : > { %8756 = vmatprep.subr.msk.bf16.mxu1 %vm12070_vm9, %v10696_v26  ;;  %12073 = vst [vmem:[#allocation82_spill] sm:$0xff] %v10722_v28  ;;  %12075 = vst [vmem:[#allocation84_spill] sm:$0xff] %v10739_v52  ;;  %v10747_v28 = vpack.c.bf16 %v6584_v62, %v6551_v60  ;;  %v10752_v26 = vpack.c.bf16 %v10415_v44, %v6081_v35  ;;  %v6083_v22 = vsel %vm12079_vm5, %v10417_v1, 0.0  ;;  %v6568_v60 = vsel %vm12080_vm13, %v10424_v58, 0.0  ;;  %v6556_v52 = vld [vmem:[#allocation3 + $0x111] sm:$0xff] }
 0x34a   : > { %12074 = vst [vmem:[#allocation83_spill] sm:$0xff] %v10736_v48  ;;  %12076 = vst [vmem:[#allocation85_spill] sm:$0xff] %v10742_v31  ;;  %v10765_v62 = vpack.c.bf16 %v10638_v33, %v6099_v15  ;;  %v10768_v35 = vpack.c.bf16 %v10430_v51, %v6083_v22  ;;  %v6101_v6 = vsel %vm12052_vm10, %v10666_v45, 0.0  ;;  %v6103_v15 = vsel %vm12060_vm6, %v10733_v34, 0.0  ;;  %v4693_v31 = vld [vmem:[#allocation3 + $0x70] sm:$0xff]  ;;  %v12101_v48 = vld [vmem:[#allocation56_spill] sm:$0xff] }
 0x34b   : > { %12077 = vst [vmem:[#allocation86_spill] sm:$0xff] %v10747_v28  ;;  %12078 = vst [vmem:[#allocation87_spill] sm:$0xff] %v10752_v26  ;;  %7884 = vmatpush3.bf16.xpose.msra.mxu0 %v10700_v36  ;;  %v10776_v26 = vpack.c.bf16 %v10668_v42, %v6101_v6  ;;  %v12084_v36 = vld [vmem:[#allocation34_spill] sm:$0xff]  ;;  %v6595_v6 = vpack.c.bf16 %v6568_v60, %v10440_v0  ;;  %v12093_v0 = vld [vmem:[#allocation53_spill] sm:$0xff]  ;;  %v4632_v27 = vsel %vm12079_vm5, %v10363_v18, 0.0  ;;  %vm12144_vm10 = vnez %v12143_v55 }
 0x34c   : > { %12081 = vst [vmem:[#allocation88_spill] sm:$0xff] %v10765_v62  ;;  %12082 = vst [vmem:[#allocation89_spill] sm:$0xff] %v10768_v35  ;;  %8823 = vmatprep.subr.msk.bf16.mxu0 %vm12070_vm9, %v10747_v28  ;;  %vm12085_vm0 = vnez %v12084_v36  ;;  %v10787_v35 = vpack.c.bf16 %v4709_v12, %v4708_v54  ;;  %v10793_v28 = vpack.c.bf16 %v10749_v43, %v6103_v15  ;;  %v4710_v15 = vld [vmem:[#allocation3 + $0xf8] sm:$0xff]  ;;  %vm12094_vm6 = vnez %v12093_v0 }
 0x34d   : > { %12083 = vst [vmem:[#allocation90_spill] sm:$0xff] %v10776_v26  ;;  %v6085_v58 = vsel %vm12085_vm0, %v10448_v11, 0.0  ;;  %vm12086_vm13 = vmmov %vm12070_vm9  ;;  %v4692_v26 = vld [vmem:[#allocation3 + $0x68] sm:$0xff]  ;;  %v4660_v14 = vpack.c.bf16 %v10371_v56, %v4632_v27 }
 0x34e   : > { %v10785_v22 = vsel %vm12086_vm13, %v4717_v21, 0  ;;  %v10790_v62 = vpack.c.bf16 %v10458_v10, %v6085_v58  ;;  %12088 = vst [vmem:[#allocation91_spill] sm:$0xff] %v10793_v28  ;;  %v6586_v21 = vsel %vm12050_vm15, %v6554_v30, 0.0  ;;  %v4718_v12 = vpack.c.bf16 %v4693_v31, %v4692_v26  ;;  %vm12089_vm13 = vmmov %vm12070_vm9  ;;  %v4711_v28 = vld [vmem:[#allocation3 + $0x100] sm:$0xff]  ;;  %v4694_v26 = vld [vmem:[#allocation3 + $0x78] sm:$0xff] }
 0x34f   : > { %v10802_v54 = vsel %vm12089_vm13, %v6595_v6, 0  ;;  %v10804_v58 = vpack.c.bf16 %v6586_v21, %v6553_v25  ;;  %vm12095_vm0 = vmmov %vm12070_vm9  ;;  %v10815_v31 = vpack.c.bf16 %v4711_v28, %v4710_v15  ;;  %v4695_v6 = vld [vmem:[#allocation3 + $0x80] sm:$0xff]  ;;  %v6555_v21 = vld [vmem:[#allocation3 + $0x109] sm:$0xff] }
 0x350   : > { %12087 = vst [vmem:[#allocation34_spill] sm:$0xff] %v10790_v62  ;;  %7696 = vmatpush3.bf16.xpose.msra.mxu1 %v10785_v22  ;;  %12090 = vst [vmem:[#allocation92_spill] sm:$0xff] %v10802_v54  ;;  %v12092_v62 = vld [vmem:[#allocation27_spill] sm:$0xff] }
 0x351   : > { %8757 = vmatprep.subr.msk.bf16.mxu1 %vm12070_vm9, %v10787_v35  ;;  %12091 = vst [vmem:[#allocation93_spill] sm:$0xff] %v10804_v58  ;;  %v6570_v60 = vsel %vm12094_vm6, %v12092_v62, 0.0  ;;  %vm12096_vm9 = vmmov %vm12095_vm0  ;;  %vm12098_vm6 = vnez %v11951_v47 }
 0x352   : > { %v10813_v30 = vsel %vm12096_vm9, %v4718_v12, 0  ;;  %v6596_v25 = vpack.c.bf16 %v6570_v60, %v10465_v24  ;;  %vm12097_vm13 = vmmov %vm12095_vm0  ;;  %v6588_v62 = vsel %vm12098_vm6, %v6556_v52, 0.0  ;;  %v4592_v12 = vld [vmem:[#allocation3 + $0x7] sm:$0xff]  ;;  %v4640_v24 = vsel %vm12008_vm11, %v10461_v7, 0.0 }
 0x353   : > { %7886 = vmatpush3.bf16.xpose.msra.mxu0 %v10802_v54  ;;  %v4719_v54 = vpack.c.bf16 %v4695_v6, %v4694_v26  ;;  %v10828_v15 = vpack.c.bf16 %v6588_v62, %v6555_v21  ;;  %v6558_v60 = vld [vmem:[#allocation3 + $0x121] sm:$0xff]  ;;  %vm12102_vm9 = vnez %v12101_v48  ;;  %v4593_v26 = vld [vmem:[#allocation3 + $0xf] sm:$0xff]  ;;  %v12104_v6 = vld [vmem:[#allocation32_spill] sm:$0xff]  ;;  %v4664_v63 = vpack.c.bf16 %v10485_v16, %v4640_v24 }
 0x354   : > { %8825 = vmatprep.subr.msk.bf16.mxu0 %vm12095_vm0, %v10804_v58  ;;  %v10823_v58 = vld [vmem:[#allocation3 + $0x91] sm:$0xff]  ;;  %v10826_v28 = vsel %vm12095_vm0, %v6596_v25, 0  ;;  %v10845_v7 = vld [vmem:[#allocation3 + $0x89] sm:$0xff]  ;;  %v6557_v62 = vld [vmem:[#allocation3 + $0x119] sm:$0xff] }
 0x355   : > { %12099 = vst [vmem:[#allocation27_spill] sm:$0xff] %v10826_v28  ;;  %12100 = vst [vmem:[#allocation53_spill] sm:$0xff] %v10828_v15  ;;  %v6572_v52 = vsel %vm12102_vm9, %v10823_v58, 0.0  ;;  %v8877_v24 = vld [vmem:[%s11444_s3 + $0x28] sm:$0xff]  }
 0x356   : > { %v6597_v48 = vpack.c.bf16 %v6572_v52, %v10845_v7  ;;  %v12112_v52 = vld [vmem:[#allocation66_spill] sm:$0xff] }
 0x358   : > { %7698 = vmatpush3.bf16.xpose.msra.mxu1 %v10813_v30 }
 0x359   : > { %8758 = vmatprep.subr.msk.bf16.mxu1 %vm12097_vm13, %v10815_v31  ;;  %vm12103_vm13 = vmmov %vm12095_vm0  ;;  %vm12105_vm0 = vnez %v12104_v6 }
 0x35a   : > { %v4624_v25 = vsel %vm12105_vm0, %v4592_v12, 0.0  ;;  %vm12106_vm6 = vmmov %vm12103_vm13  ;;  %v12111_v12 = vld [vmem:[#allocation30_spill] sm:$0xff] }
 0x35b   : > { %7888 = vmatpush3.bf16.xpose.msra.mxu0 %v10826_v28  ;;  %v10842_v21 = vsel %vm12106_vm6, %v4719_v54, 0  ;;  %v6590_v28 = vsel %vm12064_vm7, %v6558_v60, 0.0  ;;  %vm12107_vm11 = vmmov %vm12106_vm6  ;;  %v4642_v16 = vsel %vm12018_vm1, %v12111_v12, 0.0  ;;  %v12120_v12 = vld [vmem:[#allocation10_spill] sm:$0xff] }
 0x35c   : > { %8827 = vmatprep.subr.msk.bf16.mxu0 %vm12103_vm13, %v10828_v15  ;;  %v4656_v15 = vpack.c.bf16 %v4593_v26, %v4624_v25  ;;  %v10852_v6 = vpack.c.bf16 %v6590_v28, %v6557_v62  ;;  %vm12109_vm13 = vmmov %vm12106_vm6  ;;  %v4665_v26 = vpack.c.bf16 %v12118_v23, %v4642_v16  ;;  %v12119_v25 = vld [vmem:[#allocation75_spill] sm:$0xff]  ;;  %v4644_v16 = vsel %vm12025_vm8, %v10512_v17, 0.0 }
 0x35d   : > { %v10855_v54 = vsel %vm12109_vm13, %v6597_v48, 0  ;;  %v12116_v48 = vld [vmem:[#allocation9_spill] sm:$0xff]  ;;  %vm12117_vm13 = vmmov %vm12106_vm6  ;;  %v4646_v23 = vsel %vm12037_vm14, %v10545_v32, 0.0  ;;  %v4648_v32 = vsel %vm12044_vm12, %v10576_v5, 0.0  ;;  %v4669_v5 = vpack.c.bf16 %v10611_v37, %v4650_v59  ;;  %v12182_v59 = vld [vmem:[#allocation24_spill] sm:$0xff] }
 0x35e   : > { %12108 = vst [vmem:[#allocation32_spill] sm:$0xff] %v10852_v6  ;;  %12110 = vst [vmem:[#allocation94_spill] sm:$0xff] %v10855_v54  ;;  %v4923_v60 = vsel %vm12106_vm6, %v4656_v15, 0  ;;  %v12123_v15 = vld [vmem:[#allocation11_spill] sm:$0xff]  ;;  %v4636_v37 = vsel %vm12144_vm10, %v10417_v1, 0.0 }
 0x35f   : > { %vm12121_vm1 = vmmov %vm12106_vm6 }
 0x360   : > { %7700 = vmatpush3.bf16.xpose.msra.mxu1 %v10842_v21 }
 0x361   : > { %8759 = vmatprep.subr.msk.bf16.mxu1 %vm12107_vm11, %v4664_v63  ;;  %v12113_v63 = vld [vmem:[#allocation59_spill] sm:$0xff]  ;;  %vm12115_vm11 = vmmov %vm12106_vm6 }
 0x362   : > { %vm12114_vm0 = vnez %v12113_v63  ;;  %vm12122_vm6 = vmmov %vm12121_vm1 }
 0x363   : > { %7890 = vmatpush3.bf16.xpose.msra.mxu0 %v10855_v54  ;;  %v6574_v28 = vsel %vm12114_vm0, %v12112_v52, 0.0  ;;  %v4626_v54 = vsel %vm9279_vm2, %v12120_v12, 0.0  ;;  %vm12124_vm0 = vmmov %vm12121_vm1 }
 0x364   : > { %8829 = vmatprep.subr.msk.bf16.mxu0 %vm12115_vm11, %v10852_v6  ;;  %v6598_v62 = vpack.c.bf16 %v6574_v28, %v12119_v25  ;;  %v4657_v63 = vpack.c.bf16 %v12123_v15, %v4626_v54  ;;  %vm12125_vm2 = vmmov %vm12124_vm0  ;;  %v4666_v28 = vpack.c.bf16 %v10514_v61, %v4644_v16  ;;  %v12127_v54 = vld [vmem:[#allocation13_spill] sm:$0xff]  ;;  %v8879_v61 = vld [vmem:[%s11444_s3 + $0x38] sm:$0xff]  }
 0x365   : > { %vm12126_vm11 = vmmov %vm12124_vm0  ;;  %v12151_v15 = vld [vmem:[#allocation62_spill] sm:$0xff]  ;;  %v5044_v16 = vld [vmem:[#allocation3 + $0x11] sm:$0xff] }
 0x366   : > { %v10881_v6 = vsel %vm12124_vm0, %v6598_v62, 0  ;;  %v4926_v13 = vsel %vm12125_vm2, %v4657_v63, 0  ;;  %vm12128_vm8 = vmmov %vm12124_vm0  ;;  %v4667_v63 = vpack.c.bf16 %v10547_v40, %v4646_v23  ;;  %v8880_v40 = vld [vmem:[%s11444_s3] sm:$0xff]   ;;  %v4668_v62 = vpack.c.bf16 %v10578_v50, %v4648_v32 }
 0x367   : > { %7702 = vmatmul.mubr.msk.bf16.vlgmr.msra.gmra.mrb[0].mxu1 %vm12117_vm13, %v12116_v48  ;;  %v4628_v48 = vsel %vm9296_vm3, %v12127_v54, 0.0  ;;  %vm12130_vm13 = vmmov %vm12124_vm0  ;;  %v12157_v54 = vld [vmem:[#allocation65_spill] sm:$0xff] }
 0x368   : > { %7710 = vmatpush3.bf16.xpose.msra.mxu1 %v4923_v60  ;;  %7703 = vmatprep.mubr.msk.bf16.mxu1 %vm12121_vm1, %v8877_v24  ;;  %v8878_v60 = vld [vmem:[%s11444_s3 + $0x30] sm:$0xff]   ;;  %v4658_v17 = vpack.c.bf16 %v12129_v8, %v4628_v48  ;;  %vm12131_vm1 = vmmov %vm12124_vm0  ;;  %v12161_v8 = vld [vmem:[#allocation15_spill] sm:$0xff] }
 0x369   : > { %8760 = vmatprep.subr.msk.bf16.mxu1 %vm12122_vm6, %v4665_v26  ;;  %vm12132_vm3 = vmmov %vm12124_vm0 }
 0x36a   : > { %vm12133_vm6 = vmmov %vm12124_vm0 }
 0x36b   : > { %7892 = vmatpush3.bf16.xpose.msra.mxu0 %v10881_v6  ;;  %vm12134_vm14 = vmmov %vm12124_vm0 }
 0x36c   : > { %v4932_v26 = vsel %vm12134_vm14, %v4659_v38, 0  ;;  %vm12135_vm2 = vmmov %vm12124_vm0  ;;  %v12171_v38 = vld [vmem:[#allocation20_spill] sm:$0xff] }
 0x36d   : > { %vm12136_vm4 = vmmov %vm12124_vm0 }
 0x36e   : > { %vm12138_vm12 = vmmov %vm12124_vm0 }
 0x36f   : > { %7704 = vmatmul.mubr.msk.bf16.gmra.mrb[4].mxu1 %vm12126_vm11, %v8877_v24  ;;  %v4929_v24 = vsel %vm12130_vm13, %v4658_v17, 0  ;;  %vm12137_vm11 = vmmov %vm12124_vm0  ;;  %v4935_v41 = vsel %vm12138_vm12, %v4660_v14, 0  ;;  %v12162_v17 = vld [vmem:[#allocation41_spill] sm:$0xff]  ;;  %v12181_v14 = vld [vmem:[#allocation54_spill] sm:$0xff] }
 0x370   : > { %7712 = vmatpush3.bf16.xpose.msra.mxu1 %v4926_v13  ;;  %7705 = vmatprep.mubr.msk.bf16.mxu1 %vm12124_vm0, %v8878_v60  ;;  %vm12139_vm0 = vnez %v12084_v36  ;;  %vm12140_vm5 = vmmov %vm12131_vm1  ;;  %v12145_v36 = vld [vmem:[#allocation37_spill] sm:$0xff]  ;;  %v12154_v13 = vld [vmem:[#allocation39_spill] sm:$0xff] }
 0x371   : > { %8761 = vmatprep.subr.msk.bf16.mxu1 %vm12128_vm8, %v4666_v28  ;;  %v4634_v39 = vsel %vm12139_vm0, %v10407_v9, 0.0  ;;  %vm12141_vm8 = vnez %v11741_v53  ;;  %vm12142_vm13 = vmmov %vm12131_vm1  ;;  %v4662_v9 = vpack.c.bf16 %v10430_v51, %v4636_v37  ;;  %vm12155_vm12 = vnez %v12154_v13  ;;  %v12193_v37 = vld [vmem:[#allocation31_spill] sm:$0xff]  ;;  %v12211_v13 = vld [vmem:[#allocation52_spill] sm:$0xff] }
 0x372   : > { %v4661_v18 = vpack.c.bf16 %v10415_v44, %v4634_v39  ;;  %v4652_v56 = vsel %vm12141_vm8, %v10636_v49, 0.0  ;;  %v5076_v28 = vsel %vm12155_vm12, %v5044_v16, 0.0  ;;  %vm12156_vm0 = vmmov %vm12131_vm1  ;;  %v12186_v39 = vld [vmem:[#allocation25_spill] sm:$0xff] }
 0x373   : > { %v4670_v50 = vpack.c.bf16 %v10638_v33, %v4652_v56  ;;  %v12148_v33 = vld [vmem:[#allocation36_spill] sm:$0xff]  ;;  %vm12159_vm8 = vmmov %vm12156_vm0  ;;  %v12206_v16 = vld [vmem:[#allocation45_spill] sm:$0xff] }
 0x374   : > { %v4938_v2 = vsel %vm12142_vm13, %v4661_v18, 0  ;;  %vm12149_vm14 = vnez %v12148_v33  ;;  %vm12160_vm13 = vmmov %vm12156_vm0  ;;  %v12188_v56 = vld [vmem:[#allocation64_spill] sm:$0xff] }
 0x375   : > { %v4638_v12 = vsel %vm12149_vm14, %v10448_v11, 0.0  ;;  %vm12169_vm12 = vmmov %vm12156_vm0  ;;  %v8901_v33 = vld [vmem:[%s11444_s3 + $0xc8] sm:$0xff]  }
 0x376   : > { %v4663_v1 = vpack.c.bf16 %v10458_v10, %v4638_v12 }
 0x377   : > { %7706 = vmatmul.mubr.msk.bf16.gmra.mrb[8].mxu1 %vm12131_vm1, %v8878_v60 }
 0x378   : > { %7714 = vmatpush3.bf16.xpose.msra.mxu1 %v4929_v24  ;;  %7707 = vmatprep.mubr.msk.bf16.mxu1 %vm12132_vm3, %v8879_v61  ;;  %vm12146_vm3 = vnez %v12145_v36  ;;  %v8882_v24 = vld [vmem:[%s11444_s3 + $0x10] sm:$0xff]   ;;  %v6301_v36 = vld [vmem:[#allocation3 + $0x28] sm:$0xff] }
 0x379   : > { %8762 = vmatprep.subr.msk.bf16.mxu1 %vm12133_vm6, %v4667_v63  ;;  %v4654_v44 = vsel %vm12146_vm3, %v10666_v45, 0.0  ;;  %vm12147_vm6 = vmmov %vm12131_vm1 }
 0x37a   : > { %v4941_v53 = vsel %vm12147_vm6, %v4662_v9, 0  ;;  %v4671_v49 = vpack.c.bf16 %v10668_v42, %v4654_v44  ;;  %v5043_v42 = vld [vmem:[#allocation3 + $0x9] sm:$0xff]  ;;  %vm12164_vm6 = vmmov %vm12156_vm0  ;;  %v12195_v44 = vld [vmem:[#allocation69_spill] sm:$0xff] }
 0x37b   : > { %v5107_v11 = vpack.c.bf16 %v5076_v28, %v5043_v42  ;;  %v8888_v28 = vld [vmem:[%s11444_s3 + $0x60] sm:$0xff]  }
 0x37f   : > { %7708 = vmatmul.mubr.msk.bf16.gmra.mrb[12].mxu1 %vm12135_vm2, %v8879_v61  ;;  %vm12150_vm2 = vmmov %vm12131_vm1 }
 0x380   : > { %7716 = vmatpush3.bf16.xpose.msra.mxu1 %v4932_v26  ;;  %7725 = vmatprep.mubr.msk.bf16.mxu1 %vm12136_vm4, %v8880_v40  ;;  %vm12152_vm4 = vnez %v12151_v15  ;;  %v8884_v26 = vld [vmem:[%s11444_s3 + $0x40] sm:$0xff]   ;;  %v12202_v15 = vld [vmem:[#allocation16_spill] sm:$0xff] }
 0x381   : > { %8763 = vmatprep.subr.msk.bf16.mxu1 %vm12137_vm11, %v4668_v62  ;;  %v5092_v51 = vsel %vm12152_vm4, %v10823_v58, 0.0  ;;  %vm12153_vm11 = vmmov %vm12131_vm1  ;;  %v8881_v58 = vld [vmem:[%s11444_s3 + $0x8] sm:$0xff]   ;;  %v12177_v62 = vld [vmem:[#allocation21_spill] sm:$0xff] }
 0x382   : > { %v4944_v45 = vsel %vm12153_vm11, %v4663_v1, 0  ;;  %v5115_v60 = vpack.c.bf16 %v5092_v51, %v10845_v7  ;;  %v5165_v7 = vsel %vm12160_vm13, %v5107_v11, 0  ;;  %vm12167_vm4 = vmmov %vm12156_vm0  ;;  %v8886_v1 = vld [vmem:[%s11444_s3 + $0x50] sm:$0xff]   ;;  %v12213_v11 = vld [vmem:[#allocation23_spill] sm:$0xff] }
 0x383   : > { %vm12168_vm11 = vmmov %vm12156_vm0 }
 0x384   : > { %vm12173_vm13 = vmmov %vm12156_vm0 }
 0x388   : > { %7718 = vmatpush3.bf16.xpose.msra.mxu1 %v4935_v41 }
 0x389   : > { %8764 = vmatprep.subr.msk.bf16.mxu1 %vm12140_vm5, %v4669_v5  ;;  %vm12158_vm5 = vnez %v12157_v54  ;;  %v12184_v5 = vld [vmem:[#allocation58_spill] sm:$0xff] }
 0x38a   : > { %v5094_v10 = vsel %vm12158_vm5, %v12112_v52, 0.0  ;;  %v12166_v52 = vld [vmem:[#allocation17_spill] sm:$0xff] }
 0x38b   : > { %v5116_v48 = vpack.c.bf16 %v5094_v10, %v12119_v25  ;;  %v12170_v25 = vld [vmem:[#allocation8_spill] sm:$0xff]  ;;  %v5806_v54 = vld [vmem:[#allocation3 + $0xc1] sm:$0xff] }
 0x390   : > { %7720 = vmatpush3.bf16.xpose.msra.mxu1 %v4938_v2  ;;  %v12190_v2 = vld [vmem:[#allocation28_spill] sm:$0xff] }
 0x391   : > { %8765 = vmatprep.subr.msk.bf16.mxu1 %vm12131_vm1, %v4670_v50  ;;  %vm12163_vm1 = vnez %v12162_v17 }
 0x392   : > { %v5078_v23 = vsel %vm12163_vm1, %v12161_v8, 0.0  ;;  %v12220_v8 = vld [vmem:[#allocation63_spill] sm:$0xff] }
 0x393   : > { %v5108_v61 = vpack.c.bf16 %v5078_v23, %v12166_v52  ;;  %v12222_v23 = vld [vmem:[#allocation29_spill] sm:$0xff] }
 0x395   : > { %v5168_v63 = vsel %vm12167_vm4, %v5108_v61, 0  ;;  %vm12178_vm4 = vmmov %vm12156_vm0  ;;  %v5363_v61 = vsel %vm12146_vm3, %v10733_v34, 0.0  ;;  %v12232_v34 = vld [vmem:[#allocation72_spill] sm:$0xff] }
 0x396   : > { %v5174_v27 = vsel %vm12178_vm4, %v12177_v62, 0  ;;  %vm12191_vm4 = vmmov %vm12156_vm0  ;;  %v12239_v62 = vld [vmem:[#allocation51_spill] sm:$0xff] }
 0x397   : > { %v5183_v50 = vsel %vm12191_vm4, %v12190_v2, 0  ;;  %vm12203_vm4 = vmmov %vm12156_vm0  ;;  %v5574_v2 = vld [vmem:[#allocation3 + $0x90] sm:$0xff] }
 0x398   : > { %7722 = vmatpush3.bf16.xpose.msra.mxu1 %v4941_v53  ;;  %v8885_v53 = vld [vmem:[%s11444_s3 + $0x48] sm:$0xff]   ;;  %v5426_v51 = vsel %vm12203_vm4, %v12202_v15, 0  ;;  %vm12214_vm4 = vmmov %vm12156_vm0 }
 0x399   : > { %8766 = vmatprep.subr.msk.bf16.mxu1 %vm12150_vm2, %v4671_v49  ;;  %vm12165_vm2 = vmmov %vm12156_vm0  ;;  %v12197_v49 = vld [vmem:[#allocation12_spill] sm:$0xff]  ;;  %v5432_v10 = vsel %vm12214_vm4, %v12213_v11, 0 }
 0x39a   : > { %vm12226_vm4 = vmmov %vm12156_vm0  ;;  %v12259_v15 = vld [vmem:[#allocation68_spill] sm:$0xff] }
 0x39b   : > { %v5808_v11 = vld [vmem:[#allocation3 + $0xd1] sm:$0xff] }
 0x3a0   : > { %7724 = vmatpush3.bf16.xpose.msra.mxu1 %v4944_v45  ;;  %v8887_v45 = vld [vmem:[%s11444_s3 + $0x58] sm:$0xff]  }
 0x3a1   : > { %8767 = vmatprep.subr.msk.bf16.mxu1 %vm12156_vm0, %v5115_v60  ;;  %v12207_v60 = vld [vmem:[#allocation22_spill] sm:$0xff] }
 0x3a7   : > { %7726 = vmatmul.mubr.msk.bf16.vlgmr.msra.gmra.mrb[0].mxu1 %vm12159_vm8, %v8880_v40  ;;  %vm12172_vm8 = vmmov %vm12156_vm0  ;;  %v12175_v40 = vld [vmem:[#allocation48_spill] sm:$0xff] }
 0x3a8   : > { %7734 = vmatpush3.bf16.xpose.msra.mxu1 %v5165_v7  ;;  %7727 = vmatprep.mubr.msk.bf16.mxu1 %vm12164_vm6, %v8881_v58  ;;  %v5171_v32 = vsel %vm12172_vm8, %v12171_v38, 0  ;;  %vm12174_vm6 = vmmov %vm12156_vm0  ;;  %v12218_v7 = vld [vmem:[#allocation26_spill] sm:$0xff] }
 0x3a9   : > { %8768 = vmatprep.subr.msk.bf16.mxu1 %vm12165_vm2, %v5116_v48  ;;  %vm12176_vm2 = vmmov %vm12156_vm0 }
 0x3aa   : > { %vm12183_vm8 = vmmov %vm12156_vm0 }
 0x3ab   : > { %v5177_v41 = vsel %vm12183_vm8, %v12182_v59, 0  ;;  %vm12196_vm8 = vmmov %vm12156_vm0  ;;  %v12243_v59 = vld [vmem:[#allocation61_spill] sm:$0xff] }
 0x3af   : > { %7728 = vmatmul.mubr.msk.bf16.gmra.mrb[4].mxu1 %vm12168_vm11, %v8881_v58  ;;  %vm12179_vm11 = vmmov %vm12156_vm0  ;;  %v12217_v58 = vld [vmem:[#allocation50_spill] sm:$0xff] }
 0x3b0   : > { %7736 = vmatpush3.bf16.xpose.msra.mxu1 %v5168_v63  ;;  %7729 = vmatprep.mubr.msk.bf16.mxu1 %vm12169_vm12, %v8882_v24  ;;  %vm12180_vm12 = vmmov %vm12156_vm0 }
 0x3b1   : > { %8769 = vmatprep.subr.msk.bf16.mxu1 %vm12156_vm0, %v12170_v25  ;;  %v5380_v25 = vpack.c.bf16 %v10749_v43, %v5363_v61  ;;  %v12234_v43 = vld [vmem:[#allocation74_spill] sm:$0xff] }
 0x3b7   : > { %7730 = vmatmul.mubr.msk.bf16.gmra.mrb[8].mxu1 %vm12173_vm13, %v8882_v24  ;;  %vm12185_vm13 = vmmov %vm12156_vm0  ;;  %v12225_v24 = vld [vmem:[#allocation33_spill] sm:$0xff] }
 0x3b8   : > { %7738 = vmatpush3.bf16.xpose.msra.mxu1 %v5171_v32  ;;  %7731 = vmatprep.mubr.msk.bf16.mxu1 %vm12174_vm6, %v8883_v20  ;;  %vm12187_vm6 = vmmov %vm12156_vm0  ;;  %v5441_v63 = vsel %vm12226_vm4, %v12225_v24, 0  ;;  %v12230_v32 = vld [vmem:[#allocation40_spill] sm:$0xff] }
 0x3b9   : > { %8770 = vmatprep.subr.msk.bf16.mxu1 %vm12176_vm2, %v12175_v40  ;;  %v5180_v18 = vsel %vm12187_vm6, %v12186_v39, 0  ;;  %vm12189_vm2 = vmmov %vm12156_vm0  ;;  %v8890_v40 = vld [vmem:[%s11444_s3 + $0x70] sm:$0xff]   ;;  %v5589_v39 = vld [vmem:[#allocation3 + $0x108] sm:$0xff] }
 0x3ba   : > { %vm12199_vm6 = vmmov %vm12156_vm0 }
 0x3bb   : > { %vm12238_vm4 = vmmov %vm12156_vm0 }
 0x3bf   : > { %7732 = vmatmul.mubr.msk.bf16.gmra.mrb[12].mxu1 %vm12179_vm11, %v8883_v20  ;;  %vm12192_vm11 = vmmov %vm12156_vm0  ;;  %v12228_v20 = vld [vmem:[#allocation70_spill] sm:$0xff] }
 0x3c0   : > { %7740 = vmatpush3.bf16.xpose.msra.mxu1 %v5174_v27  ;;  %7749 = vmatprep.mubr.msk.bf16.mxu1 %vm12180_vm12, %v8884_v26  ;;  %vm12194_vm12 = vmmov %vm12156_vm0  ;;  %v8891_v27 = vld [vmem:[%s11444_s3 + $0x78] sm:$0xff]  }
 0x3c1   : > { %8771 = vmatprep.subr.msk.bf16.mxu1 %vm12156_vm0, %v12181_v14  ;;  %v5186_v9 = vsel %vm12194_vm12, %v12193_v37, 0  ;;  %vm12205_vm12 = vmmov %vm12156_vm0  ;;  %v12242_v14 = vld [vmem:[#allocation60_spill] sm:$0xff] }
 0x3c2   : > { %v5788_v37 = vld [vmem:[#allocation3 + $0x31] sm:$0xff] }
 0x3c8   : > { %7742 = vmatpush3.bf16.xpose.msra.mxu1 %v5177_v41  ;;  %v8892_v41 = vld [vmem:[%s11444_s3 + $0x80] sm:$0xff]  }
 0x3c9   : > { %8772 = vmatprep.subr.msk.bf16.mxu1 %vm12185_vm13, %v12184_v5  ;;  %vm12198_vm13 = vmmov %vm12156_vm0  ;;  %v12247_v5 = vld [vmem:[#allocation78_spill] sm:$0xff] }
 0x3ca   : > { %v5423_v12 = vsel %vm12198_vm13, %v12197_v49, 0  ;;  %vm12209_vm13 = vmmov %vm12156_vm0 }
 0x3d0   : > { %7744 = vmatpush3.bf16.xpose.msra.mxu1 %v5180_v18  ;;  %v5590_v18 = vld [vmem:[#allocation3 + $0x110] sm:$0xff] }
 0x3d1   : > { %8773 = vmatprep.subr.msk.bf16.mxu1 %vm12189_vm2, %v12188_v56  ;;  %vm12201_vm2 = vmmov %vm12156_vm0  ;;  %v11117_v56 = vpack.c.bf16 %v5590_v18, %v5589_v39  ;;  %v5796_v18 = vld [vmem:[#allocation3 + $0x71] sm:$0xff] }
 0x3d8   : > { %7746 = vmatpush3.bf16.xpose.msra.mxu1 %v5183_v50 }
 0x3d9   : > { %8774 = vmatprep.subr.msk.bf16.mxu1 %vm12192_vm11, %v10691_v3  ;;  %v12200_v3 = vld [vmem:[#allocation38_spill] sm:$0xff]  ;;  %vm12204_vm11 = vmmov %vm12156_vm0 }
 0x3e0   : > { %7748 = vmatpush3.bf16.xpose.msra.mxu1 %v5186_v9  ;;  %v5803_v9 = vld [vmem:[#allocation3 + $0xa9] sm:$0xff] }
 0x3e1   : > { %8775 = vmatprep.subr.msk.bf16.mxu1 %vm12156_vm0, %v12195_v44  ;;  %v12255_v44 = vld [vmem:[#allocation18_spill] sm:$0xff] }
 0x3e7   : > { %7750 = vmatmul.mubr.msk.bf16.vlgmr.msra.gmra.mrb[0].mxu1 %vm12196_vm8, %v8884_v26  ;;  %vm12208_vm8 = vmmov %vm12156_vm0  ;;  %v12237_v26 = vld [vmem:[#allocation49_spill] sm:$0xff] }
 0x3e8   : > { %7758 = vmatpush3.bf16.xpose.msra.mxu1 %v5423_v12  ;;  %7751 = vmatprep.mubr.msk.bf16.mxu1 %vm12199_vm6, %v8885_v53  ;;  %v5429_v42 = vsel %vm12208_vm8, %v12207_v60, 0  ;;  %vm12210_vm6 = vmmov %vm12156_vm0  ;;  %v5820_v12 = vsel %vm12163_vm1, %v5788_v37, 0.0  ;;  %v5805_v60 = vld [vmem:[#allocation3 + $0xb9] sm:$0xff]  ;;  %v5798_v37 = vld [vmem:[#allocation3 + $0x81] sm:$0xff] }
 0x3e9   : > { %8776 = vmatprep.subr.msk.bf16.mxu1 %vm12201_vm2, %v12200_v3  ;;  %vm12212_vm2 = vmmov %vm12156_vm0  ;;  %v5787_v3 = vld [vmem:[#allocation3 + $0x29] sm:$0xff] }
 0x3ea   : > { %vm12219_vm8 = vmmov %vm12156_vm0 }
 0x3eb   : > { %v5435_v48 = vsel %vm12219_vm8, %v12218_v7, 0  ;;  %vm12231_vm8 = vmmov %vm12156_vm0  ;;  %v12266_v7 = vld [vmem:[#allocation71_spill] sm:$0xff] }
 0x3ec   : > { %vm12262_vm1 = vmmov %vm12156_vm0 }
 0x3ef   : > { %7752 = vmatmul.mubr.msk.bf16.gmra.mrb[4].mxu1 %vm12204_vm11, %v8885_v53  ;;  %vm12215_vm11 = vmmov %vm12156_vm0 }
 0x3f0   : > { %7760 = vmatpush3.bf16.xpose.msra.mxu1 %v5426_v51  ;;  %7753 = vmatprep.mubr.msk.bf16.mxu1 %vm12205_vm12, %v8886_v1  ;;  %vm12216_vm12 = vmmov %vm12156_vm0 }
 0x3f1   : > { %8777 = vmatprep.subr.msk.bf16.mxu1 %vm12156_vm0, %v12206_v16  ;;  %v8894_v16 = vld [vmem:[%s11444_s3 + $0x90] sm:$0xff]  }
 0x3f7   : > { %7754 = vmatmul.mubr.msk.bf16.gmra.mrb[8].mxu1 %vm12209_vm13, %v8886_v1  ;;  %vm12221_vm13 = vmmov %vm12156_vm0  ;;  %v5850_v1 = vpack.c.bf16 %v5820_v12, %v5787_v3  ;;  %v5797_v12 = vld [vmem:[#allocation3 + $0x79] sm:$0xff]  ;;  %v5815_v3 = vld [vmem:[#allocation3 + $0x109] sm:$0xff] }
 0x3f8   : > { %7762 = vmatpush3.bf16.xpose.msra.mxu1 %v5429_v42  ;;  %7755 = vmatprep.mubr.msk.bf16.mxu1 %vm12210_vm6, %v8887_v45  ;;  %vm12223_vm6 = vmmov %vm12156_vm0 }
 0x3f9   : > { %8778 = vmatprep.subr.msk.bf16.mxu1 %vm12212_vm2, %v12211_v13  ;;  %v5438_v52 = vsel %vm12223_vm6, %v12222_v23, 0  ;;  %vm12224_vm2 = vmmov %vm12156_vm0  ;;  %v12263_v13 = vld [vmem:[#allocation44_spill] sm:$0xff] }
 0x3fa   : > { %vm12235_vm6 = vmmov %vm12156_vm0  ;;  %v5792_v23 = vld [vmem:[#allocation3 + $0x51] sm:$0xff] }
 0x3ff   : > { %7756 = vmatmul.mubr.msk.bf16.gmra.mrb[12].mxu1 %vm12215_vm11, %v8887_v45  ;;  %vm12227_vm11 = vmmov %vm12156_vm0  ;;  %v5790_v45 = vld [vmem:[#allocation3 + $0x41] sm:$0xff] }
 0x400   : > { %7764 = vmatpush3.bf16.xpose.msra.mxu1 %v5432_v10  ;;  %7773 = vmatprep.mubr.msk.bf16.mxu1 %vm12216_vm12, %v8888_v28  ;;  %vm12229_vm12 = vmmov %vm12156_vm0  ;;  %v5789_v10 = vld [vmem:[#allocation3 + $0x39] sm:$0xff] }
 0x401   : > { %8779 = vmatprep.subr.msk.bf16.mxu1 %vm12156_vm0, %v12217_v58  ;;  %v5444_v38 = vsel %vm12229_vm12, %v12228_v20, 0  ;;  %vm12241_vm12 = vmmov %vm12156_vm0  ;;  %v5810_v20 = vld [vmem:[#allocation3 + $0xe1] sm:$0xff] }
 0x408   : > { %7766 = vmatpush3.bf16.xpose.msra.mxu1 %v5435_v48 }
 0x409   : > { %8780 = vmatprep.subr.msk.bf16.mxu1 %vm12221_vm13, %v12220_v8  ;;  %vm12233_vm13 = vmmov %vm12156_vm0  ;;  %v8895_v8 = vld [vmem:[%s11444_s3 + $0x98] sm:$0xff]  }
 0x410   : > { %7768 = vmatpush3.bf16.xpose.msra.mxu1 %v5438_v52  ;;  %v5807_v52 = vld [vmem:[#allocation3 + $0xc9] sm:$0xff] }
 0x411   : > { %8781 = vmatprep.subr.msk.bf16.mxu1 %vm12224_vm2, %v10678_v19  ;;  %v8889_v19 = vld [vmem:[%s11444_s3 + $0x68] sm:$0xff]   ;;  %vm12236_vm2 = vmmov %vm12156_vm0 }
 0x418   : > { %7770 = vmatpush3.bf16.xpose.msra.mxu1 %v5441_v63  ;;  %v12270_v63 = vld [vmem:[#allocation47_spill] sm:$0xff] }
 0x419   : > { %8782 = vmatprep.subr.msk.bf16.mxu1 %vm12227_vm11, %v5380_v25  ;;  %vm12240_vm11 = vmmov %vm12156_vm0 }
 0x420   : > { %7772 = vmatpush3.bf16.xpose.msra.mxu1 %v5444_v38  ;;  %v5791_v38 = vld [vmem:[#allocation3 + $0x49] sm:$0xff] }
 0x421   : > { %8783 = vmatprep.subr.msk.bf16.mxu1 %vm12156_vm0, %v12230_v32 }
 0x427   : > { %7774 = vmatmul.mubr.msk.bf16.vlgmr.msra.gmra.mrb[0].mxu1 %vm12231_vm8, %v8888_v28  ;;  %vm12244_vm8 = vmmov %vm12156_vm0 }
 0x428   : > { %7782 = vmatpush3.bf16.xpose.msra.mxu1 %v12232_v34  ;;  %7775 = vmatprep.mubr.msk.bf16.mxu1 %vm12233_vm13, %v8889_v19  ;;  %vm12245_vm13 = vmmov %vm12156_vm0 }
 0x429   : > { %8784 = vmatprep.subr.msk.bf16.mxu1 %vm12235_vm6, %v12234_v43  ;;  %vm12246_vm6 = vmmov %vm12156_vm0  ;;  %v8896_v43 = vld [vmem:[%s11444_s3 + $0xa0] sm:$0xff]  }
 0x42f   : > { %7776 = vmatmul.mubr.msk.bf16.gmra.mrb[4].mxu1 %vm12236_vm2, %v8889_v19  ;;  %vm12248_vm2 = vmmov %vm12156_vm0  ;;  %v12274_v19 = vld [vmem:[#allocation73_spill] sm:$0xff] }
 0x430   : > { %7784 = vmatpush3.bf16.xpose.msra.mxu1 %v12237_v26  ;;  %7777 = vmatprep.mubr.msk.bf16.mxu1 %vm12238_vm4, %v8890_v40  ;;  %vm12249_vm4 = vmmov %vm12156_vm0  ;;  %v5809_v26 = vld [vmem:[#allocation3 + $0xd9] sm:$0xff] }
 0x431   : > { %8785 = vmatprep.subr.msk.bf16.mxu1 %vm12240_vm11, %v12239_v62  ;;  %vm12250_vm11 = vmmov %vm12156_vm0 }
 0x437   : > { %7778 = vmatmul.mubr.msk.bf16.gmra.mrb[8].mxu1 %vm12241_vm12, %v8890_v40  ;;  %vm12251_vm12 = vmmov %vm12156_vm0  ;;  %v5794_v40 = vld [vmem:[#allocation3 + $0x61] sm:$0xff] }
 0x438   : > { %7786 = vmatpush3.bf16.xpose.msra.mxu1 %v12242_v14  ;;  %7779 = vmatprep.mubr.msk.bf16.mxu1 %vm12156_vm0, %v8891_v27 }
 0x439   : > { %8786 = vmatprep.subr.msk.bf16.mxu1 %vm12244_vm8, %v12243_v59  ;;  %vm12253_vm8 = vmmov %vm12156_vm0  ;;  %v5812_v59 = vld [vmem:[#allocation3 + $0xf1] sm:$0xff] }
 0x43a   : > { %v5844_v39 = vsel %vm12050_vm15, %v5812_v59, 0.0  ;;  %vm12284_vm15 = vmmov %vm12156_vm0  ;;  %v12325_v59 = vld [vmem:[#allocation91_spill] sm:$0xff] }
 0x43f   : > { %7780 = vmatmul.mubr.msk.bf16.gmra.mrb[12].mxu1 %vm12245_vm13, %v8891_v27  ;;  %vm12254_vm13 = vmmov %vm12156_vm0 }
 0x440   : > { %7788 = vmatpush3.bf16.xpose.msra.mxu1 %v10694_v29  ;;  %7797 = vmatprep.mubr.msk.bf16.mxu1 %vm12246_vm6, %v8892_v41  ;;  %v5573_v29 = vld [vmem:[#allocation3 + $0x88] sm:$0xff]  ;;  %vm12256_vm6 = vmmov %vm12156_vm0 }
 0x441   : > { %8787 = vmatprep.subr.msk.bf16.mxu1 %vm12248_vm2, %v12247_v5  ;;  %v5907_v53 = vsel %vm12256_vm6, %v12255_v44, 0  ;;  %vm12257_vm2 = vmmov %vm12156_vm0 }
 0x442   : > { %vm12268_vm6 = vmmov %vm12156_vm0 }
 0x448   : > { %7790 = vmatpush3.bf16.xpose.msra.mxu1 %v10785_v22  ;;  %v5598_v22 = vpack.c.bf16 %v5574_v2, %v5573_v29  ;;  %v5811_v29 = vld [vmem:[#allocation3 + $0xe9] sm:$0xff] }
 0x449   : > { %8788 = vmatprep.subr.msk.bf16.mxu1 %vm12249_vm4, %v10787_v35  ;;  %v12252_v35 = vld [vmem:[#allocation77_spill] sm:$0xff]  ;;  %vm12258_vm4 = vmmov %vm12156_vm0 }
 0x44a   : > { %v11123_v50 = vsel %vm12156_vm0, %v5598_v22, 0  ;;  %v5862_v22 = vpack.c.bf16 %v5844_v39, %v5811_v29  ;;  %v6074_v39 = vld [vmem:[#allocation3 + $0x11f] sm:$0xff]  ;;  %v6057_v29 = vld [vmem:[#allocation3 + $0x97] sm:$0xff] }
 0x450   : > { %7792 = vmatpush3.bf16.xpose.msra.mxu1 %v10813_v30  ;;  %v5804_v30 = vld [vmem:[#allocation3 + $0xb1] sm:$0xff] }
 0x451   : > { %8789 = vmatprep.subr.msk.bf16.mxu1 %vm12250_vm11, %v10815_v31  ;;  %v5836_v31 = vsel %vm12158_vm5, %v5804_v30, 0.0  ;;  %vm12260_vm5 = vnez %v12259_v15  ;;  %vm12261_vm11 = vmmov %vm12156_vm0  ;;  %v5795_v30 = vld [vmem:[#allocation3 + $0x69] sm:$0xff] }
 0x452   : > { %v5858_v49 = vpack.c.bf16 %v5836_v31, %v5803_v9  ;;  %v5838_v51 = vsel %vm12260_vm5, %v5806_v54, 0.0  ;;  %v5910_v42 = vsel %vm12261_vm11, %v5850_v1, 0  ;;  %vm12272_vm5 = vmmov %vm12156_vm0 }
 0x453   : > { %v5859_v17 = vpack.c.bf16 %v5838_v51, %v5805_v60  ;;  %vm12273_vm11 = vmmov %vm12156_vm0  ;;  %v5799_v60 = vld [vmem:[#allocation3 + $0x89] sm:$0xff] }
 0x458   : > { %7794 = vmatpush3.bf16.xpose.msra.mxu1 %v10842_v21  ;;  %v8893_v21 = vld [vmem:[%s11444_s3 + $0x88] sm:$0xff]  }
 0x459   : > { %8790 = vmatprep.subr.msk.bf16.mxu1 %vm12251_vm12, %v11117_v56  ;;  %vm12264_vm12 = vnez %v12263_v13  ;;  %v12292_v13 = vld [vmem:[#allocation80_spill] sm:$0xff] }
 0x45a   : > { %v5822_v28 = vsel %vm12264_vm12, %v5790_v45, 0.0  ;;  %vm12276_vm12 = vmmov %vm12156_vm0 }
 0x45b   : > { %v5851_v58 = vpack.c.bf16 %v5822_v28, %v5789_v10  ;;  %v8897_v28 = vld [vmem:[%s11444_s3 + $0xa8] sm:$0xff]  }
 0x45d   : > { %v5913_v61 = vsel %vm12268_vm6, %v5851_v58, 0  ;;  %vm12279_vm6 = vmmov %vm12156_vm0  ;;  %v12300_v58 = vld [vmem:[#allocation81_spill] sm:$0xff] }
 0x460   : > { %7796 = vmatpush3.bf16.xpose.msra.mxu1 %v11123_v50 }
 0x461   : > { %8791 = vmatprep.subr.msk.bf16.mxu1 %vm12253_vm8, %v12252_v35  ;;  %vm12265_vm8 = vmmov %vm12156_vm0  ;;  %v5814_v35 = vld [vmem:[#allocation3 + $0x101] sm:$0xff] }
 0x467   : > { %7798 = vmatmul.mubr.msk.bf16.vlgmr.msra.gmra.mrb[0].mxu1 %vm12254_vm13, %v8892_v41  ;;  %vm12267_vm13 = vnez %v12266_v7  ;;  %v5793_v41 = vld [vmem:[#allocation3 + $0x59] sm:$0xff] }
 0x468   : > { %7806 = vmatpush3.bf16.xpose.msra.mxu1 %v5907_v53  ;;  %7799 = vmatprep.mubr.msk.bf16.mxu1 %vm12257_vm2, %v8893_v21  ;;  %v5840_v48 = vsel %vm12267_vm13, %v5808_v11, 0.0  ;;  %vm12269_vm2 = vmmov %vm12156_vm0  ;;  %v12297_v11 = vld [vmem:[#allocation19_spill] sm:$0xff]  ;;  %v8898_v7 = vld [vmem:[%s11444_s3 + $0xb0] sm:$0xff]  }
 0x469   : > { %8792 = vmatprep.subr.msk.bf16.mxu1 %vm12258_vm4, %v5858_v49  ;;  %v5860_v24 = vpack.c.bf16 %v5840_v48, %v5807_v52  ;;  %vm12271_vm4 = vnez %v12270_v63  ;;  %vm12278_vm13 = vmmov %vm12156_vm0  ;;  %v5830_v49 = vsel %vm12102_vm9, %v5798_v37, 0.0  ;;  %v12302_v48 = vld [vmem:[#allocation82_spill] sm:$0xff]  ;;  %v12311_v63 = vld [vmem:[#allocation85_spill] sm:$0xff] }
 0x46a   : > { %v5824_v25 = vsel %vm12271_vm4, %v5792_v23, 0.0  ;;  %vm12281_vm4 = vnez %v12093_v0  ;;  %v5816_v0 = vld [vmem:[#allocation3 + $0x111] sm:$0xff]  ;;  %v5855_v54 = vpack.c.bf16 %v5830_v49, %v5797_v12  ;;  %v8899_v52 = vld [vmem:[%s11444_s3 + $0xb8] sm:$0xff]   ;;  %v6320_v53 = vld [vmem:[#allocation3 + $0xc0] sm:$0xff] }
 0x46b   : > { %v5852_v32 = vpack.c.bf16 %v5824_v25, %v5791_v38  ;;  %v5848_v1 = vsel %vm12064_vm7, %v5816_v0, 0.0  ;;  %v12305_v23 = vld [vmem:[#allocation83_spill] sm:$0xff]  ;;  %v6303_v12 = vld [vmem:[#allocation3 + $0x38] sm:$0xff] }
 0x46c   : > { %v5864_v51 = vpack.c.bf16 %v5848_v1, %v5815_v3  ;;  %v8900_v25 = vld [vmem:[%s11444_s3 + $0xc0] sm:$0xff]   ;;  %v6321_v1 = vld [vmem:[#allocation3 + $0xc8] sm:$0xff] }
 0x46d   : > { %v5916_v62 = vsel %vm12276_vm12, %v5852_v32, 0  ;;  %vm12287_vm12 = vmmov %vm12156_vm0  ;;  %v12317_v32 = vld [vmem:[#allocation88_spill] sm:$0xff] }
 0x46e   : > { %v5925_v15 = vsel %vm12287_vm12, %v5855_v54, 0  ;;  %v6304_v54 = vld [vmem:[#allocation3 + $0x40] sm:$0xff] }
 0x46f   : > { %7800 = vmatmul.mubr.msk.bf16.gmra.mrb[4].mxu1 %vm12262_vm1, %v8893_v21  ;;  %vm12275_vm1 = vnez %v12274_v19  ;;  %v12319_v19 = vld [vmem:[#allocation89_spill] sm:$0xff]  ;;  %v6334_v3 = vpack.c.bf16 %v6304_v54, %v6303_v12  ;;  %v12370_v12 = vld [vmem:[#allocation86_spill] sm:$0xff]  ;;  %v12372_v54 = vld [vmem:[#allocation92_spill] sm:$0xff] }
 0x470   : > { %7808 = vmatpush3.bf16.xpose.msra.mxu1 %v5910_v42  ;;  %7801 = vmatprep.mubr.msk.bf16.mxu1 %vm12156_vm0, %v8894_v16  ;;  %v5842_v34 = vsel %vm12275_vm1, %v5810_v20, 0.0  ;;  %vm12286_vm1 = vmmov %vm12156_vm0  ;;  %v12313_v20 = vld [vmem:[#allocation87_spill] sm:$0xff] }
 0x471   : > { %8793 = vmatprep.subr.msk.bf16.mxu1 %vm12265_vm8, %v5859_v17  ;;  %v5861_v27 = vpack.c.bf16 %v5842_v34, %v5809_v26  ;;  %vm12277_vm8 = vnez %v11929_v4  ;;  %v5828_v4 = vsel %vm12281_vm4, %v5796_v18, 0.0  ;;  %vm12291_vm9 = vmmov %vm12286_vm1  ;;  %v12323_v26 = vld [vmem:[#allocation34_spill] sm:$0xff] }
 0x472   : > { %v5826_v14 = vsel %vm12277_vm8, %v5794_v40, 0.0  ;;  %v5854_v31 = vpack.c.bf16 %v5828_v4, %v5795_v30  ;;  %vm12290_vm8 = vmmov %vm12286_vm1  ;;  %v6055_v40 = vld [vmem:[#allocation3 + $0x87] sm:$0xff]  ;;  %v6058_v4 = vld [vmem:[#allocation3 + $0x9f] sm:$0xff] }
 0x473   : > { %v5853_v5 = vpack.c.bf16 %v5826_v14, %v5793_v41  ;;  %vm12294_vm7 = vmmov %vm12286_vm1  ;;  %v6087_v14 = vsel %vm12144_vm10, %v6055_v40, 0.0  ;;  %v6073_v41 = vld [vmem:[#allocation3 + $0x117] sm:$0xff]  ;;  %v6317_v30 = vld [vmem:[#allocation3 + $0xa8] sm:$0xff] }
 0x474   : > { %v5922_v9 = vsel %vm12284_vm15, %v5854_v31, 0  ;;  %7893 = vmatprep.mubr.msk.bf16.mxu0 %vm12294_vm7, %v8905_v57  ;;  %vm12298_vm4 = vmmov %vm12286_vm1  ;;  %v6105_v18 = vsel %vm12146_vm3, %v6073_v41, 0.0  ;;  %v6318_v31 = vld [vmem:[#allocation3 + $0xb0] sm:$0xff] }
 0x475   : > { %v6165_v10 = vsel %vm12298_vm4, %v12297_v11, 0  ;;  %vm12303_vm15 = vmmov %vm12286_vm1  ;;  %v6341_v37 = vpack.c.bf16 %v6318_v31, %v6317_v30 }
 0x476   : > { %vm12304_vm12 = vmmov %vm12286_vm1 }
 0x477   : > { %7802 = vmatmul.mubr.msk.bf16.gmra.mrb[8].mxu1 %vm12269_vm2, %v8894_v16  ;;  %vm12280_vm2 = vmmov %vm12156_vm0  ;;  %v12288_v16 = vld [vmem:[#allocation59_spill] sm:$0xff] }
 0x478   : > { %7810 = vmatpush3.bf16.xpose.msra.mxu1 %v5913_v61  ;;  %7803 = vmatprep.mubr.msk.bf16.mxu1 %vm12272_vm5, %v8895_v8  ;;  %v5919_v2 = vsel %vm12280_vm2, %v5853_v5, 0  ;;  %vm12282_vm5 = vmmov %vm12156_vm0  ;;  %v12307_v61 = vld [vmem:[#allocation84_spill] sm:$0xff] }
 0x479   : > { %8794 = vmatprep.subr.msk.bf16.mxu1 %vm12273_vm11, %v5860_v24  ;;  %vm12283_vm11 = vnez %v11951_v47  ;;  %v5800_v47 = vld [vmem:[#allocation3 + $0x91] sm:$0xff]  ;;  %vm12296_vm2 = vmmov %vm12286_vm1 }
 0x47a   : > { %v5846_v21 = vsel %vm12283_vm11, %v5814_v35, 0.0  ;;  %vm12301_vm11 = vmmov %vm12286_vm1  ;;  %v6089_v35 = vsel %vm12149_vm14, %v6057_v29, 0.0 }
 0x47b   : > { %v5863_v44 = vpack.c.bf16 %v5846_v21, %v5813_v46  ;;  %v6114_v55 = vpack.c.bf16 %v6058_v4, %v6089_v35  ;;  %v6302_v46 = vld [vmem:[#allocation3 + $0x30] sm:$0xff]  ;;  %v6315_v35 = vld [vmem:[#allocation3 + $0x98] sm:$0xff] }
 0x47f   : > { %7804 = vmatmul.mubr.msk.bf16.gmra.mrb[12].mxu1 %vm12156_vm0, %v8895_v8  ;;  %vm12289_vm0 = vnez %v12288_v16  ;;  %v6168_v8 = vsel %vm12303_vm15, %v12302_v48, 0  ;;  %v6787_v48 = vld [vmem:[%s11445_s4 + $0x10] sm:$0xff] }
 0x480   : > { %7812 = vmatpush3.bf16.xpose.msra.mxu1 %v5916_v62  ;;  %7821 = vmatprep.mubr.msk.bf16.mxu1 %vm12278_vm13, %v8896_v43  ;;  %v5832_v45 = vsel %vm12289_vm0, %v5800_v47, 0.0  ;;  %vm12293_vm13 = vmmov %vm12286_vm1  ;;  %v6322_v47 = vld [vmem:[#allocation3 + $0xd0] sm:$0xff] }
 0x481   : > { %8795 = vmatprep.subr.msk.bf16.mxu1 %vm12279_vm6, %v5861_v27  ;;  %v5856_v42 = vpack.c.bf16 %v5832_v45, %v5799_v60  ;;  %vm12295_vm6 = vmmov %vm12286_vm1  ;;  %v6056_v27 = vld [vmem:[#allocation3 + $0x8f] sm:$0xff]  ;;  %v6343_v16 = vpack.c.bf16 %v6322_v47, %v6321_v1  ;;  %v12376_v47 = vld [vmem:[#allocation53_spill] sm:$0xff] }
 0x482   : > { %7894 = vmatmul.mubr.msk.bf16.vlgmr.msra.gmra.mrb[32].mxu0 %vm12295_vm6, %v8905_v57  ;;  %vm12306_vm0 = vmmov %vm12286_vm1  ;;  %v6113_v5 = vpack.c.bf16 %v6056_v27, %v6087_v14  ;;  %v6305_v45 = vld [vmem:[#allocation3 + $0x48] sm:$0xff]  ;;  %v6306_v60 = vld [vmem:[#allocation3 + $0x50] sm:$0xff] }
 0x483   : > { %v5928_v17 = vsel %vm12291_vm9, %v5856_v42, 0  ;;  %vm12309_vm9 = vmmov %vm12306_vm0  ;;  %v6335_v42 = vpack.c.bf16 %v6306_v60, %v6305_v45  ;;  %v8903_v57 = vld [vmem:[%s11444_s3 + $0xd8] sm:$0xff]   ;;  %v6328_v27 = vld [vmem:[#allocation3 + $0x100] sm:$0xff] }
 0x484   : > { %vm12312_vm7 = vmmov %vm12306_vm0  ;;  %v6792_v14 = vld [vmem:[%s11445_s4 + $0x38] sm:$0xff]  ;;  %v12375_v1 = vld [vmem:[#allocation27_spill] sm:$0xff] }
 0x485   : > { %vm12314_vm6 = vmmov %vm12306_vm0  ;;  %v8911_v45 = vld [vmem:[%s11444_s3 + $0x118] sm:$0xff]  }
 0x486   : > { %v6174_v38 = vsel %vm12314_vm6, %v12313_v20, 0  ;;  %vm12316_vm4 = vmmov %vm12306_vm0 }
 0x487   : > { %vm12322_vm15 = vmmov %vm12306_vm0 }
 0x488   : > { %7814 = vmatpush3.bf16.xpose.msra.mxu1 %v5919_v2  ;;  %v6183_v2 = vsel %vm12306_vm0, %v6113_v5, 0  ;;  %vm12328_vm10 = vmmov %vm12306_vm0  ;;  %v6311_v5 = vld [vmem:[#allocation3 + $0x78] sm:$0xff] }
 0x489   : > { %8796 = vmatprep.subr.msk.bf16.mxu1 %vm12282_vm5, %v5862_v22  ;;  %vm12299_vm5 = vmmov %vm12286_vm1  ;;  %v6122_v22 = vpack.c.bf16 %v6074_v39, %v6105_v18  ;;  %v6186_v21 = vsel %vm12328_vm10, %v6114_v55, 0  ;;  %v6312_v39 = vld [vmem:[#allocation3 + $0x80] sm:$0xff] }
 0x48a   : > { %vm12329_vm3 = vmmov %vm12306_vm0  ;;  %v6338_v18 = vpack.c.bf16 %v6312_v39, %v6311_v5  ;;  %v6316_v55 = vld [vmem:[#allocation3 + $0xa0] sm:$0xff] }
 0x48b   : > { %vm12330_vm14 = vmmov %vm12306_vm0  ;;  %v6340_v30 = vpack.c.bf16 %v6316_v55, %v6315_v35 }
 0x48c   : > { %vm12334_vm6 = vmmov %vm12306_vm0 }
 0x48d   : > { %vm12343_vm10 = vmmov %vm12306_vm0 }
 0x490   : > { %7816 = vmatpush3.bf16.xpose.msra.mxu1 %v5922_v9  ;;  %v6333_v9 = vpack.c.bf16 %v6302_v46, %v6301_v36  ;;  %v8907_v36 = vld [vmem:[%s11444_s3 + $0xf0] sm:$0xff]   ;;  %v12359_v46 = vld [vmem:[#allocation55_spill] sm:$0xff] }
 0x491   : > { %8797 = vmatprep.subr.msk.bf16.mxu1 %vm12286_vm1, %v5863_v44  ;;  %v6319_v44 = vld [vmem:[#allocation3 + $0xb8] sm:$0xff] }
 0x492   : > { %v6342_v0 = vpack.c.bf16 %v6320_v53, %v6319_v44  ;;  %v8908_v44 = vld [vmem:[%s11444_s3 + $0xf8] sm:$0xff]   ;;  %v12363_v53 = vld [vmem:[#allocation67_spill] sm:$0xff] }
 0x498   : > { %7818 = vmatpush3.bf16.xpose.msra.mxu1 %v5925_v15  ;;  %v8902_v15 = vld [vmem:[%s11444_s3 + $0xd0] sm:$0xff]  }
 0x499   : > { %8798 = vmatprep.subr.msk.bf16.mxu1 %vm12290_vm8, %v5864_v51  ;;  %vm12308_vm8 = vmmov %vm12306_vm0  ;;  %v6394_v51 = vsel %vm12334_vm6, %v6334_v3, 0  ;;  %v12373_v3 = vld [vmem:[#allocation93_spill] sm:$0xff] }
 0x49a   : > { %v6171_v24 = vsel %vm12308_vm8, %v12307_v61, 0  ;;  %vm12327_vm8 = vmmov %vm12306_vm0  ;;  %v6786_v61 = vld [vmem:[%s11445_s4 + $0x8] sm:$0xff] }
 0x49b   : > { %vm12349_vm6 = vmmov %vm12306_vm0 }
 0x4a0   : > { %7820 = vmatpush3.bf16.xpose.msra.mxu1 %v5928_v17  ;;  %v6323_v17 = vld [vmem:[#allocation3 + $0xd8] sm:$0xff] }
 0x4a1   : > { %8799 = vmatprep.subr.msk.bf16.mxu1 %vm12293_vm13, %v12292_v13  ;;  %vm12310_vm13 = vmmov %vm12306_vm0  ;;  %v6324_v13 = vld [vmem:[#allocation3 + $0xe0] sm:$0xff] }
 0x4a2   : > { %v6344_v11 = vpack.c.bf16 %v6324_v13, %v6323_v17 }
 0x4a7   : > { %7822 = vmatmul.mubr.msk.bf16.vlgmr.msra.gmra.mrb[0].mxu1 %vm12296_vm2, %v8896_v43  ;;  %vm12315_vm2 = vmmov %vm12306_vm0  ;;  %v12321_v43 = vld [vmem:[#allocation90_spill] sm:$0xff] }
 0x4a8   : > { %7830 = vmatpush3.bf16.xpose.msra.mxu1 %v6165_v10  ;;  %7823 = vmatprep.mubr.msk.bf16.mxu1 %vm12299_vm5, %v8897_v28  ;;  %vm12318_vm5 = vmmov %vm12306_vm0  ;;  %v6785_v10 = vld [vmem:[%s11445_s4] sm:$0xff] }
 0x4a9   : > { %8800 = vmatprep.subr.msk.bf16.mxu1 %vm12301_vm11, %v12300_v58  ;;  %vm12320_vm11 = vmmov %vm12306_vm0  ;;  %v6307_v58 = vld [vmem:[#allocation3 + $0x58] sm:$0xff] }
 0x4aa   : > { %v6177_v34 = vsel %vm12320_vm11, %v12319_v19, 0  ;;  %vm12338_vm11 = vmmov %vm12306_vm0  ;;  %v6309_v19 = vld [vmem:[#allocation3 + $0x68] sm:$0xff] }
 0x4af   : > { %7824 = vmatmul.mubr.msk.bf16.gmra.mrb[4].mxu1 %vm12286_vm1, %v8897_v28  ;;  %vm12324_vm1 = vmmov %vm12306_vm0  ;;  %v6397_v28 = vsel %vm12338_vm11, %v6335_v42, 0 }
 0x4b0   : > { %7832 = vmatpush3.bf16.xpose.msra.mxu1 %v6168_v8  ;;  %7825 = vmatprep.mubr.msk.bf16.mxu1 %vm12304_vm12, %v8898_v7  ;;  %v6180_v62 = vsel %vm12324_vm1, %v12323_v26, 0  ;;  %vm12326_vm12 = vmmov %vm12306_vm0  ;;  %v8977_v8 = vmov 0   ;;  %v6791_v26 = vld [vmem:[%s11445_s4 + $0x30] sm:$0xff] }
 0x4b1   : > { %8801 = vmatprep.subr.msk.bf16.mxu1 %vm12306_vm0, %v12305_v23  ;;  %vm12340_vm1 = vmmov %vm12306_vm0  ;;  %8874 = vset.pattern.permute.xlu0 %v8977_v8 }
 0x4b2   : > { %6795 = vperm.xlu0 %8874, %v6785_v10   ;;  %8875 = vset.pattern.permute.xlu1 %v8977_v8  ;;  %vm12355_vm11 = vmmov %vm12306_vm0 }
 0x4b3   : > { %6805 = vperm.xlu1 %8875, %v6787_v48  }
 0x4b6   : > { %6800 = vperm.xlu0 %8874, %v6786_v61  }
 0x4b7   : > { %7826 = vmatmul.mubr.msk.bf16.gmra.mrb[8].mxu1 %vm12309_vm9, %v8898_v7  ;;  %vm12331_vm9 = vmmov %vm12306_vm0  ;;  %v6308_v7 = vld [vmem:[#allocation3 + $0x60] sm:$0xff] }
 0x4b8   : > { %7834 = vmatpush3.bf16.xpose.msra.mxu1 %v6171_v24  ;;  %7827 = vmatprep.mubr.msk.bf16.mxu1 %vm12310_vm13, %v8899_v52  ;;  %v6391_v49 = vsel %vm12331_vm9, %v6333_v9, 0  ;;  %vm12332_vm13 = vmmov %vm12306_vm0  ;;  %v6336_v23 = vpack.c.bf16 %v6308_v7, %v6307_v58  ;;  %v6325_v24 = vld [vmem:[#allocation3 + $0xe8] sm:$0xff]  ;;  %v12361_v9 = vld [vmem:[#allocation57_spill] sm:$0xff] }
 0x4b9   : > { %8802 = vmatprep.subr.msk.bf16.mxu1 %vm12312_vm7, %v12311_v63  ;;  %vm12333_vm7 = vmmov %vm12306_vm0  ;;  %v8904_v63 = vld [vmem:[%s11444_s3 + $0xe0] sm:$0xff]  }
 0x4ba   : > { %v6400_v20 = vsel %vm12306_vm0, %v6336_v23, 0  ;;  %vm12346_vm9 = vmmov %vm12306_vm0 }
 0x4bf   : > { %7828 = vmatmul.mubr.msk.bf16.gmra.mrb[12].mxu1 %vm12315_vm2, %v8899_v52  ;;  %vm12335_vm2 = vmmov %vm12306_vm0  ;;  %v6326_v52 = vld [vmem:[#allocation3 + $0xf0] sm:$0xff] }
 0x4c0   : > { %7836 = vmatpush3.bf16.xpose.msra.mxu1 %v6174_v38  ;;  %7845 = vmatprep.mubr.msk.bf16.mxu1 %vm12316_vm4, %v8900_v25  ;;  %vm12336_vm4 = vmmov %vm12306_vm0  ;;  %v6345_v38 = vpack.c.bf16 %v6326_v52, %v6325_v24 }
 0x4c1   : > { %8803 = vmatprep.subr.msk.bf16.mxu1 %vm12318_vm5, %v12317_v32  ;;  %vm12337_vm5 = vmmov %vm12306_vm0  ;;  %v6789_v32 = vld [vmem:[%s11445_s4 + $0x20] sm:$0xff] }
 0x4c2   : > { %6815 = vperm.xlu0 %8874, %v6789_v32  }
 0x4c6   : > { %6825 = vperm.xlu0 %8874, %v6791_v26  }
 0x4c8   : > { %7838 = vmatpush3.bf16.xpose.msra.mxu1 %v6177_v34  ;;  %v6310_v34 = vld [vmem:[#allocation3 + $0x70] sm:$0xff] }
 0x4c9   : > { %8804 = vmatprep.subr.msk.bf16.mxu1 %vm12322_vm15, %v12321_v43  ;;  %vm12339_vm15 = vmmov %vm12306_vm0  ;;  %v6790_v43 = vld [vmem:[%s11445_s4 + $0x28] sm:$0xff]  ;;  %v6337_v40 = vpack.c.bf16 %v6310_v34, %v6309_v19 }
 0x4d0   : > { %7840 = vmatpush3.bf16.xpose.msra.mxu1 %v6180_v62  ;;  %v6327_v62 = vld [vmem:[#allocation3 + $0xf8] sm:$0xff] }
 0x4d1   : > { %8805 = vmatprep.subr.msk.bf16.mxu1 %vm12326_vm12, %v12325_v59  ;;  %vm12341_vm12 = vmmov %vm12306_vm0  ;;  %v6346_v41 = vpack.c.bf16 %v6328_v27, %v6327_v62 }
 0x4d8   : > { %7842 = vmatpush3.bf16.xpose.msra.mxu1 %v6183_v2  ;;  %v6331_v2 = vld [vmem:[#allocation3 + $0x118] sm:$0xff] }
 0x4d9   : > { %8806 = vmatprep.subr.msk.bf16.mxu1 %vm12327_vm8, %v6122_v22  ;;  %vm12342_vm8 = vmmov %vm12306_vm0  ;;  %v6332_v22 = vld [vmem:[#allocation3 + $0x120] sm:$0xff] }
 0x4da   : > { %v6348_v4 = vpack.c.bf16 %v6332_v22, %v6331_v2 }
 0x4e0   : > { %7844 = vmatpush3.bf16.xpose.msra.mxu1 %v6186_v21  ;;  %v12351_v21 = vld [vmem:[#allocation7_spill] sm:$0xff] }
 0x4e1   : > { %8807 = vmatprep.subr.msk.bf16.mxu1 %vm12329_vm3, %v6341_v37  ;;  %vm12344_vm3 = vmmov %vm12306_vm0  ;;  %v12354_v37 = vld [vmem:[#allocation43_spill] sm:$0xff] }
 0x4e7   : > { %7846 = vmatmul.mubr.msk.bf16.vlgmr.msra.gmra.mrb[0].mxu1 %vm12330_vm14, %v8900_v25  ;;  %v6788_v25 = vld [vmem:[%s11445_s4 + $0x18] sm:$0xff]  ;;  %vm12345_vm14 = vmmov %vm12306_vm0 }
 0x4e8   : > { %7854 = vmatpush3.bf16.xpose.msra.mxu1 %v6391_v49  ;;  %7847 = vmatprep.mubr.msk.bf16.mxu1 %vm12332_vm13, %v8901_v33  ;;  %v6403_v59 = vsel %vm12345_vm14, %v6337_v40, 0  ;;  %vm12347_vm13 = vmmov %vm12306_vm0  ;;  %v8909_v49 = vld [vmem:[%s11444_s3 + $0x108] sm:$0xff]  }
 0x4e9   : > { %8808 = vmatprep.subr.msk.bf16.mxu1 %vm12333_vm7, %v6342_v0  ;;  %6810 = vperm.xlu1 %8875, %v6788_v25   ;;  %v6406_v29 = vsel %vm12347_vm13, %v6338_v18, 0  ;;  %vm12348_vm7 = vmmov %vm12306_vm0  ;;  %v12368_v0 = vld [vmem:[#allocation79_spill] sm:$0xff] }
 0x4ea   : > { %vm12367_vm14 = vmmov %vm12306_vm0 }
 0x4eb   : > { %vm12371_vm13 = vmmov %vm12306_vm0 }
 0x4ed   : > { %6820 = vperm.xlu1 %8875, %v6790_v43  }
 0x4ef   : > { %7848 = vmatmul.mubr.msk.bf16.gmra.mrb[4].mxu1 %vm12335_vm2, %v8901_v33  ;;  %vm12350_vm2 = vmmov %vm12306_vm0  ;;  %v12365_v33 = vld [vmem:[#allocation76_spill] sm:$0xff] }
 0x4f0   : > { %7856 = vmatpush3.bf16.xpose.msra.mxu1 %v6394_v51  ;;  %7849 = vmatprep.mubr.msk.bf16.mxu1 %vm12336_vm4, %v8902_v15  ;;  %v6412_v31 = vsel %vm12350_vm2, %v6340_v30, 0  ;;  %vm12352_vm4 = vmmov %vm12306_vm0  ;;  %v12379_v51 = vld [vmem:[#allocation32_spill] sm:$0xff] }
 0x4f1   : > { %8809 = vmatprep.subr.msk.bf16.mxu1 %vm12337_vm5, %v6343_v16  ;;  %6830 = vperm.xlu1 %8875, %v6792_v14   ;;  %vm12353_vm5 = vmmov %vm12306_vm0  ;;  %v8910_v16 = vld [vmem:[%s11444_s3 + $0x110] sm:$0xff]  }
 0x4f2   : > { %vm12380_vm2 = vmmov %vm12306_vm0 }
 0x4f7   : > { %7850 = vmatmul.mubr.msk.bf16.gmra.mrb[8].mxu1 %vm12339_vm15, %v8902_v15  ;;  %vm12357_vm15 = vmmov %vm12306_vm0  ;;  %v12378_v15 = vld [vmem:[#allocation94_spill] sm:$0xff] }
 0x4f8   : > { %7858 = vmatpush3.bf16.xpose.msra.mxu1 %v6397_v28  ;;  %7851 = vmatprep.mubr.msk.bf16.mxu1 %vm12340_vm1, %v8903_v57  ;;  %vm12358_vm1 = vmmov %vm12306_vm0 }
 0x4f9   : > { %8810 = vmatprep.subr.msk.bf16.mxu1 %vm12341_vm12, %v6344_v11  ;;  %vm12360_vm12 = vmmov %vm12306_vm0 }
 0x4ff   : > { %7852 = vmatmul.mubr.msk.bf16.gmra.mrb[12].mxu1 %vm12342_vm8, %v8903_v57  ;;  %vm12362_vm8 = vmmov %vm12306_vm0 }
 0x500   : > { %7860 = vmatpush3.bf16.xpose.msra.mxu1 %v6400_v20  ;;  %7869 = vmatprep.mubr.msk.bf16.mxu1 %vm12343_vm10, %v8904_v63  ;;  %vm12364_vm10 = vmmov %vm12306_vm0 }
 0x501   : > { %8811 = vmatprep.subr.msk.bf16.mxu1 %vm12344_vm3, %v6345_v38  ;;  %vm12366_vm3 = vmmov %vm12306_vm0 }
 0x508   : > { %7862 = vmatpush3.bf16.xpose.msra.mxu1 %v6403_v59 }
 0x509   : > { %8812 = vmatprep.subr.msk.bf16.mxu1 %vm12346_vm9, %v6346_v41  ;;  %vm12369_vm9 = vmmov %vm12306_vm0 }
 0x510   : > { %7864 = vmatpush3.bf16.xpose.msra.mxu1 %v6406_v29 }
 0x511   : > { %8813 = vmatprep.subr.msk.bf16.mxu1 %vm12348_vm7, %v11117_v56  ;;  %v8906_v56 = vld [vmem:[%s11444_s3 + $0xe8] sm:$0xff]   ;;  %vm12374_vm7 = vmmov %vm12306_vm0 }
 0x518   : > { %7866 = vmatpush3.bf16.xpose.msra.mxu1 %v11123_v50  ;;  %v12356_v50 = vld [vmem:[#allocation46_spill] sm:$0xff] }
 0x519   : > { %8814 = vmatprep.subr.msk.bf16.mxu1 %vm12349_vm6, %v6348_v4  ;;  %vm12377_vm6 = vmmov %vm12306_vm0 }
 0x520   : > { %7868 = vmatpush3.bf16.xpose.msra.mxu1 %v6412_v31 }
 0x521   : > { %8816 = vmatprep.subr.msk.bf16.mxu1 %vm12352_vm4, %v12351_v21  ;;  %vm12381_vm4 = vmmov %vm12306_vm0 }
 0x527   : > { %7870 = vmatmul.mubr.msk.bf16.vlgmr.msra.gmra.mrb[0].mxu1 %vm12353_vm5, %v8904_v63  ;;  %vm12382_vm5 = vmmov %vm12306_vm0 }
 0x528   : > { %8359 = vmatpush3.bf16.xpose.msra.mxu1 %v12354_v37  ;;  %7871 = vmatprep.mubr.msk.bf16.mxu1 %vm12355_vm11, %v8906_v56  ;;  %vm12383_vm11 = vmmov %vm12306_vm0 }
 0x529   : > { %8818 = vmatprep.subr.msk.bf16.mxu1 %vm12357_vm15, %v12356_v50  ;;  %vm12384_vm15 = vmmov %vm12306_vm0 }
 0x52f   : > { %7872 = vmatmul.mubr.msk.bf16.gmra.mrb[4].mxu1 %vm12358_vm1, %v8906_v56  ;;  %vm12385_vm1 = vmmov %vm12306_vm0 }
 0x530   : > { %8360 = vmatpush3.bf16.xpose.msra.mxu1 %v12359_v46  ;;  %7873 = vmatprep.mubr.msk.bf16.mxu1 %vm12360_vm12, %v8907_v36 }
 0x531   : > { %8820 = vmatprep.subr.msk.bf16.mxu1 %vm12306_vm0, %v12361_v9  ;;  %v6796_v13 = vpop.permute.xlu0 %6795 }
 0x532   : > { %v6806_v25 = vpop.permute.xlu1 %6805 }
 0x535   : > { %v6801_v7 = vpop.permute.xlu0 %6800 }
 0x537   : > { %7874 = vmatmul.mubr.msk.bf16.gmra.mrb[8].mxu1 %vm12362_vm8, %v8907_v36 }
 0x538   : > { %8361 = vmatpush3.bf16.xpose.msra.mxu1 %v12363_v53  ;;  %7875 = vmatprep.mubr.msk.bf16.mxu1 %vm12364_vm10, %v8908_v44 }
 0x539   : > { %8822 = vmatprep.subr.msk.bf16.mxu1 %vm12366_vm3, %v12365_v33 }
 0x53f   : > { %7876 = vmatmul.mubr.msk.bf16.gmra.mrb[12].mxu1 %vm12367_vm14, %v8908_v44 }
 0x540   : > { %8362 = vmatpush3.bf16.xpose.msra.mxu1 %v12368_v0  ;;  %7895 = vmatprep.mubr.msk.bf16.mxu1 %vm12369_vm9, %v8909_v49 }
 0x541   : > { %8824 = vmatprep.subr.msk.bf16.mxu1 %vm12371_vm13, %v12370_v12  ;;  %v6816_v27 = vpop.permute.xlu0 %6815 }
 0x545   : > { %v6826_v4 = vpop.permute.xlu0 %6825 }
 0x548   : > { %8363 = vmatpush3.bf16.xpose.msra.mxu1 %v12372_v54 }
 0x549   : > { %8826 = vmatprep.subr.msk.bf16.mxu1 %vm12374_vm7, %v12373_v3 }
 0x550   : > { %8364 = vmatpush3.bf16.xpose.msra.mxu1 %v12375_v1 }
 0x551   : > { %8828 = vmatprep.subr.msk.bf16.mxu1 %vm12377_vm6, %v12376_v47 }
 0x555   : > { %v6730_v60 = vpop.f32.mrb[32].mxu0 }
 0x558   : > { %8365 = vmatpush3.bf16.xpose.msra.mxu1 %v12378_v15 }
 0x559   : > { %8830 = vmatprep.subr.msk.bf16.mxu1 %vm12380_vm2, %v12379_v51 }
 0x560   : > { %8366 = vmatpush3.bf16.xpose.msra.mxu1 %v10881_v6  ;;  %v6732_v6 = vpop.f32.mrb[33].mxu0 }
 0x561   : > { %v6734_v42 = vpop.f32.mrb[34].mxu0 }
 0x562   : > { %v6736_v17 = vpop.f32.mrb[35].mxu0 }
 0x567   : > { %7896 = vmatmul.mubr.msk.bf16.vlgmr.msra.gmra.mrb[4].mxu1 %vm12381_vm4, %v8909_v49 }
 0x568   : > { %7897 = vmatprep.mubr.msk.bf16.mxu1 %vm12382_vm5, %v8910_v16  ;;  %v6811_v19 = vpop.permute.xlu1 %6810 }
 0x56c   : > { %v6821_v5 = vpop.permute.xlu1 %6820 }
 0x56f   : > { %7898 = vmatmul.mubr.msk.bf16.gmra.mrb[8].mxu1 %vm12383_vm11, %v8910_v16 }
 0x570   : > { %7899 = vmatprep.mubr.msk.bf16.mxu1 %vm12384_vm15, %v8911_v45  ;;  %v6831_v31 = vpop.permute.xlu1 %6830 }
 0x577   : > { %7900 = vmatmul.mubr.msk.bf16.gmra.mrb[12].mxu1 %vm12385_vm1, %v8911_v45 }
 0x5fa   : > { %v6472_v57 = vpop.f32.mrb[0].mxu1 }
 0x5fb   : > { %v8367_v28 = vadd.f32 %v6730_v60, %v6472_v57  ;;  %v6474_v11 = vpop.f32.mrb[1].mxu1 }
 0x5fc   : > { %v8368_v10 = vadd.f32 %v6732_v6, %v6474_v11  ;;  %v6476_v58 = vpop.f32.mrb[2].mxu1 }
 0x5fd   : > { %v6833_v48 = vadd.f32 %v8367_v28, %v6796_v13  ;;  %v8369_v8 = vadd.f32 %v6734_v42, %v6476_v58  ;;  %v6478_v23 = vpop.f32.mrb[3].mxu1 }
 0x5fe   : > { %v6834_v52 = vadd.f32 %v8368_v10, %v6796_v13  ;;  %v8370_v61 = vadd.f32 %v6736_v17, %v6478_v23 }
 0x5ff   : > { %6849 = vst [vmem:[%s11371_s8] sm:$0xff] %v6833_v48  ;;  %v6835_v24 = vadd.f32 %v8369_v8, %v6801_v7 }
 0x600   : > { %6850 = vst [vmem:[%s11371_s8 + $0x8] sm:$0xff] %v6834_v52  ;;  %v6836_v63 = vadd.f32 %v8370_v61, %v6801_v7 }
 0x601   : > { %6851 = vst [vmem:[%s11371_s8 + $0x10] sm:$0xff] %v6835_v24 }
 0x602   : > { %6852 = vst [vmem:[%s11371_s8 + $0x18] sm:$0xff] %v6836_v63 }
 0x63a   : > { %v6740_v20 = vpop.f32.mrb[4].mxu1 }
 0x63b   : > { %v6837_v38 = vadd.f32 %v6806_v25, %v6740_v20  ;;  %v6742_v32 = vpop.f32.mrb[5].mxu1 }
 0x63c   : > { %v6838_v34 = vadd.f32 %v6806_v25, %v6742_v32  ;;  %v6744_v43 = vpop.f32.mrb[6].mxu1 }
 0x63d   : > { %6853 = vst [vmem:[%s11371_s8 + $0x20] sm:$0xff] %v6837_v38  ;;  %v6839_v40 = vadd.f32 %v6811_v19, %v6744_v43  ;;  %v6746_v26 = vpop.f32.mrb[7].mxu1 }
 0x63e   : > { %6854 = vst [vmem:[%s11371_s8 + $0x28] sm:$0xff] %v6838_v34  ;;  %v6840_v62 = vadd.f32 %v6811_v19, %v6746_v26 }
 0x63f   : > { %6855 = vst [vmem:[%s11371_s8 + $0x30] sm:$0xff] %v6839_v40 }
 0x640   : > { %6856 = vst [vmem:[%s11371_s8 + $0x38] sm:$0xff] %v6840_v62 }
 0x642   : > { %v6750_v14 = vpop.f32.mrb[8].mxu1 }
 0x643   : > { %v6841_v59 = vadd.f32 %v6816_v27, %v6750_v14  ;;  %v6752_v41 = vpop.f32.mrb[9].mxu1 }
 0x644   : > { %v6842_v39 = vadd.f32 %v6816_v27, %v6752_v41  ;;  %v6754_v18 = vpop.f32.mrb[10].mxu1 }
 0x645   : > { %6857 = vst [vmem:[%s11371_s8 + $0x40] sm:$0xff] %v6841_v59  ;;  %v6843_v29 = vadd.f32 %v6821_v5, %v6754_v18  ;;  %v6756_v2 = vpop.f32.mrb[11].mxu1 }
 0x646   : > { %6858 = vst [vmem:[%s11371_s8 + $0x48] sm:$0xff] %v6842_v39  ;;  %v6844_v22 = vadd.f32 %v6821_v5, %v6756_v2 }
 0x647   : > { %6859 = vst [vmem:[%s11371_s8 + $0x50] sm:$0xff] %v6843_v29 }
 0x648   : > { %6860 = vst [vmem:[%s11371_s8 + $0x58] sm:$0xff] %v6844_v22 }
 0x64a   : > { %v6760_v35 = vpop.f32.mrb[12].mxu1 }
 0x64b   : > { %v6845_v55 = vadd.f32 %v6826_v4, %v6760_v35  ;;  %v6762_v30 = vpop.f32.mrb[13].mxu1 }
 0x64c   : > { %v6846_v21 = vadd.f32 %v6826_v4, %v6762_v30  ;;  %v6764_v56 = vpop.f32.mrb[14].mxu1 }
 0x64d   : > { %6861 = vst [vmem:[%s11371_s8 + $0x60] sm:$0xff] %v6845_v55  ;;  %v6847_v37 = vadd.f32 %v6831_v31, %v6764_v56  ;;  %v6766_v50 = vpop.f32.mrb[15].mxu1 }
 0x64e   : > { %6862 = vst [vmem:[%s11371_s8 + $0x68] sm:$0xff] %v6846_v21  ;;  %v6848_v36 = vadd.f32 %v6831_v31, %v6766_v50 }
 0x64f   : > { %6863 = vst [vmem:[%s11371_s8 + $0x70] sm:$0xff] %v6847_v37 }
 0x650   : > { %6864 = vst [vmem:[%s11371_s8 + $0x78] sm:$0xff] %v6848_v36 }
 0x651   : > { %8925 = shalt.err (!%p8922_p3)
}
 0x652   : > { %s8926_s23 = scalar_lea.hbm %s11391_s13, 2048  ;;  %s8930_s30 = scalar_lea.hbm %s11446_s5, 4096 }
 0x653   : > { %p8927_p4 = scmp.ne.s32.totalorder %s11391_s13, %s8926_s23  ;;  %p8931_p9 = scmp.lt.u32.totalorder %s11391_s13, %s11446_s5 }
 0x654   : > { %p8932_p10 = scmp.lt.u32.totalorder %s8930_s30, %s8926_s23  ;;  %p8934_p12 = scmp.lt.u32.totalorder %s8926_s23, %s11391_s13 }
 0x655   : > { %p8928_p7 = pnand %p8927_p4, %p9049_p5 }
 0x656   : > { %p8933_p11 = por %p8932_p10, %p8931_p9 }
 0x657   : > { %p8929_p8 = pneg %p8928_p7 }
 0x658   : > { %p8935_p13 = por %p8934_p12, %p8933_p11 }
 0x65a   : > { %p8936_p0 = pnand %p8935_p13, %p8929_p8 }
 0x65c   : > { %8939 = shalt.err (!%p8936_p0)
}
 0x65d   : > { %s8979_s8 = smov 256   ;;  %s8980_s9 = smov 16  }
 0x65e   : > { %8831 = dma.vmem_to_hbm [thread:$0]  (%p9049_p5), %s11393_s10, 2048, %s11391_s13, %s11400_s22, %s8979_s8, %s8979_s8, %s8980_s9  }
 0x65f PF: > { %p8837_p1 = scmp.ge.s32.totalorder %s8974_s21, 2  ;;  %s6894_s11 = sand.u32 1, %s8962_s18  }
 0x660   : > { %s6895_s12 = scalar_lea.sflag [#allocation5], %s6894_s11 }
 0x661   : > { %p8834_p2 = pnand %p8837_p1, %p9053_p6 }
 0x663   : > { %8957 = dma.done.wait (!%p8834_p2), %s6895_s12, 2048  }
 0x664   : > { %8959 = vsyncadd (!%p8834_p2), %s6895_s12, 4294965248  ;;  %p15_p3 = scmp.ge.s32.totalorder %s9036_s24, 4   ;;  %s12386_s18 = smov %s8966_s19 }
 0x665   : > { %s12387_s19 = smov %s8970_s20  ;;  %s12388_s20 = smov %s9047_s27 }
 0x666   : > { %s12389_s21 = smov %s9036_s24  ;;  %17 = sbr.rel (!%p15_p3) target bundleno = 3 (0x3), region = 91 }
 0x66d   :  { %6900 = vsyncpa [#allocation5], 1 }
 0x66e   :  { %6902 = vsyncpa [#allocation5 + $0x1], 1 }

</bundles_post_ra>
